<compile_context>
chip_gen: v5e
topology: v5e:2x2
jax: 0.10.0
libtpu: 0.0.40
codegen_flags: <defaults>
</compile_context>

<pallas_src>
import jax
import jax.numpy as jnp
from jax.experimental import pallas as pl
from jax.experimental.pallas import tpu as pltpu


def hin2vec_kernel(
    sidx_ref,   # (1, 1, TILE_B) int32 VMEM — start-node ids for this tile
    eidx_ref,   # (1, 1, TILE_B) int32 VMEM — end-node ids
    pidx_ref,   # (1, 1, TILE_B) int32 VMEM — path ids
    node_ref,   # (N, D) f32 VMEM — resident node embedding table
    preg_ref,   # (P, D) f32 VMEM — resident pre-thresholded path table
    out_ref,    # (1, 1, TILE_B) f32 VMEM — lane-dense output slab
):
    tile_b = out_ref.shape[-1]
    d = node_ref.shape[1]

    node_tbl = node_ref[...]        # (N, D)
    preg_tbl = preg_ref[...]        # (P, D), already 0/1

    def gather_rows(ids_row, tbl):
        # ids_row: (1, tile_b) int32; tbl: (rows, D)
        rows = tbl.shape[0]
        iota = jax.lax.broadcasted_iota(jnp.int32, (rows, tile_b), 0)
        onehot = (iota == ids_row).astype(jnp.float32)           # (rows, tile_b)
        # Contract over the row axis on the MXU -> (tile_b, D).  HIGHEST keeps
        # the one-hot gather exact in f32.
        return jax.lax.dot_general(
            onehot, tbl,
            dimension_numbers=(((0,), (0,)), ((), ())),
            preferred_element_type=jnp.float32,
            precision=jax.lax.Precision.HIGHEST)

    s = gather_rows(sidx_ref[0], node_tbl)                       # (tile_b, D)
    e = gather_rows(eidx_ref[0], node_tbl)                       # (tile_b, D)
    p = gather_rows(pidx_ref[0], preg_tbl)                       # (tile_b, D)

    r = s * e * p                                                # VPU, f32

    # Lane-dense reduction on the MXU: (1, D) x (tile_b, D)^T -> (1, tile_b).
    ones_row = jnp.ones((1, d), jnp.float32)
    row = jax.lax.dot_general(
        ones_row, r,
        dimension_numbers=(((1,), (1,)), ((), ())),
        preferred_element_type=jnp.float32,
        precision=jax.lax.Precision.HIGHEST)

    out_ref[...] = jax.nn.sigmoid(row).reshape(1, 1, tile_b)


def hin2vec_forward(start_node, end_node, path, node_embeds, path_embeds,
                    *, tile_b=512):
    """JAX wrapper; returns (B,) float32, matching the PyTorch forward output."""
    B = start_node.shape[0]
    N, D = node_embeds.shape
    P = path_embeds.shape[0]

    # binary_reg forward value depends only on sign(path_embeds): threshold the
    # whole table once outside the kernel (P x D elementwise, negligible).
    preg_tbl = (path_embeds > 0).astype(jnp.float32)
    node_tbl = node_embeds.astype(jnp.float32)

    # Both tables are made VMEM-resident; guard against huge graphs.
    table_bytes = (N + P) * D * 4
    if 2 * table_bytes > 24 * 1024 * 1024:
        # TODO(synk): per-row DMA-gather fallback for tables too large for VMEM.
        raise NotImplementedError("embedding tables too large for VMEM-resident kernel")

    # Don't over-pad tiny batches; keep the tile a multiple of 128 lanes so the
    # output store is fully unmasked.
    tile_b = max(128, min(tile_b, pl.cdiv(B, 128) * 128))
    num_tiles = pl.cdiv(B, tile_b)
    b_pad = num_tiles * tile_b

    def prep_idx(x, hi):
        x = jnp.clip(x.astype(jnp.int32), 0, hi - 1)   # PyTorch-safe: no OOB rows
        if b_pad != B:
            x = jnp.pad(x, (0, b_pad - B))
        return x.reshape(num_tiles, 1, tile_b)

    sidx = prep_idx(start_node, N)
    eidx = prep_idx(end_node, N)
    pidx = prep_idx(path, P)

    idx_spec = pl.BlockSpec((1, 1, tile_b), lambda t: (t, 0, 0))
    grid_spec = pltpu.PrefetchScalarGridSpec(
        num_scalar_prefetch=0,
        grid=(num_tiles,),
        in_specs=[
            idx_spec, idx_spec, idx_spec,
            pl.BlockSpec((N, D), lambda t: (0, 0)),   # node table, VMEM-resident
            pl.BlockSpec((P, D), lambda t: (0, 0)),   # thresholded path table
        ],
        out_specs=pl.BlockSpec((1, 1, tile_b), lambda t: (t, 0, 0)),
    )

    out = pl.pallas_call(
        hin2vec_kernel,
        out_shape=jax.ShapeDtypeStruct((num_tiles, 1, tile_b), jnp.float32),
        grid_spec=grid_spec,
        compiler_params=pltpu.CompilerParams(
            dimension_semantics=("parallel",),   # megacore: split batch tiles
        ),
    )(sidx, eidx, pidx, node_tbl, preg_tbl)

    return out.reshape(b_pad)[:B]


def hin2vec_reference(start_node, end_node, path, node_embeds, path_embeds):
    """Pure-JAX reference mirroring the PyTorch module (directed=False, binary_reg)."""
    s = node_embeds[start_node]
    e = node_embeds[end_node]
    p = path_embeds[path]
    p_reg = (p > 0).astype(jnp.float32)
    return jax.nn.sigmoid(jnp.sum(s * e * p_reg, axis=1))


if __name__ == "__main__":
    # Small shapes consistent with the module's __init__ / forward.
    node_size, path_size, emb_dim, batch = 64, 16, 128, 200

    key = jax.random.PRNGKey(0)
    k_node, k_path, k_s, k_e, k_p = jax.random.split(key, 5)

    # nn.Embedding default init: N(0, 1).
    node_embeds = jax.random.normal(k_node, (node_size, emb_dim), dtype=jnp.float32)
    path_embeds = jax.random.normal(k_path, (path_size, emb_dim), dtype=jnp.float32)

    start_node = jax.random.randint(k_s, (batch,), 0, node_size, dtype=jnp.int32)
    end_node = jax.random.randint(k_e, (batch,), 0, node_size, dtype=jnp.int32)
    path = jax.random.randint(k_p, (batch,), 0, path_size, dtype=jnp.int32)

    out = hin2vec_forward(start_node, end_node, path, node_embeds, path_embeds)
    out = jax.block_until_ready(out)

    ref = hin2vec_reference(start_node, end_node, path, node_embeds, path_embeds)
    assert out.shape == (batch,)
    assert jnp.allclose(out, ref, atol=5e-5, rtol=5e-5), (out, ref)

    print("KERNEL_OK")
</pallas_src>

<mosaic_0001>
module attributes {stable_mosaic.version = 11 : i64} {
  func.func @hin2vec_kernel(%arg0: i32, %arg1: memref<1x1x256xi32, #tpu.memory_space<vmem>>, %arg2: memref<1x1x256xi32, #tpu.memory_space<vmem>>, %arg3: memref<1x1x256xi32, #tpu.memory_space<vmem>>, %arg4: memref<64x128xf32, #tpu.memory_space<vmem>>, %arg5: memref<16x128xf32, #tpu.memory_space<vmem>>, %arg6: memref<1x1x256xf32, #tpu.memory_space<vmem>>) attributes {dimension_semantics = [#tpu.dimension_semantics<parallel>], iteration_bounds = array<i64: 1>, scalar_prefetch = 0 : i64, scratch_operands = 0 : i64, tpu.core_type = #tpu.core_type<tc>, window_params = [{transform_indices = @transform_0, window_bounds = array<i64: 1, 1, 256>}, {transform_indices = @transform_1, window_bounds = array<i64: 1, 1, 256>}, {transform_indices = @transform_2, window_bounds = array<i64: 1, 1, 256>}, {pipeline_mode = #tpu.pipeline_mode<synchronous>, transform_indices = @transform_3, window_bounds = array<i64: 64, 128>}, {pipeline_mode = #tpu.pipeline_mode<synchronous>, transform_indices = @transform_4, window_bounds = array<i64: 16, 128>}, {transform_indices = @transform_5, window_bounds = array<i64: 1, 1, 256>}]} {
    %c0 = arith.constant 0 : index
    %c0_0 = arith.constant 0 : index
    %0 = vector.load %arg4[%c0, %c0_0] : memref<64x128xf32, #tpu.memory_space<vmem>>, vector<64x128xf32>
    %c0_1 = arith.constant 0 : index
    %c0_2 = arith.constant 0 : index
    %1 = vector.load %arg5[%c0_1, %c0_2] : memref<16x128xf32, #tpu.memory_space<vmem>>, vector<16x128xf32>
    %c0_3 = arith.constant 0 : index
    %c0_4 = arith.constant 0 : index
    %c0_5 = arith.constant 0 : index
    %2 = vector.load %arg1[%c0_3, %c0_4, %c0_5] : memref<1x1x256xi32, #tpu.memory_space<vmem>>, vector<1x1x256xi32>
    %3 = vector.shape_cast %2 : vector<1x1x256xi32> to vector<1x256xi32>
    %4 = tpu.iota {dimensions = array<i32: 0>} : vector<64x256xi32>
    %5 = vector.broadcast %3 : vector<1x256xi32> to vector<64x256xi32>
    %6 = arith.cmpi eq, %4, %5 : vector<64x256xi32>
    %7 = arith.extui %6 : vector<64x256xi1> to vector<64x256xi32>
    %8 = arith.sitofp %7 : vector<64x256xi32> to vector<64x256xf32>
    %cst = arith.constant dense<0.000000e+00> : vector<256x128xf32>
    %9 = tpu.matmul %8, %0, %cst {dimension_numbers = #tpu.dot_dimension_numbers<[0], [0], [1], [1], [0, 1, 1, 1], [], []>, precision = #tpu.contract_precision<fp32>} : vector<64x256xf32>, vector<64x128xf32>, vector<256x128xf32> -> vector<256x128xf32>
    %c0_6 = arith.constant 0 : index
    %c0_7 = arith.constant 0 : index
    %c0_8 = arith.constant 0 : index
    %10 = vector.load %arg2[%c0_6, %c0_7, %c0_8] : memref<1x1x256xi32, #tpu.memory_space<vmem>>, vector<1x1x256xi32>
    %11 = vector.shape_cast %10 : vector<1x1x256xi32> to vector<1x256xi32>
    %12 = tpu.iota {dimensions = array<i32: 0>} : vector<64x256xi32>
    %13 = vector.broadcast %11 : vector<1x256xi32> to vector<64x256xi32>
    %14 = arith.cmpi eq, %12, %13 : vector<64x256xi32>
    %15 = arith.extui %14 : vector<64x256xi1> to vector<64x256xi32>
    %16 = arith.sitofp %15 : vector<64x256xi32> to vector<64x256xf32>
    %cst_9 = arith.constant dense<0.000000e+00> : vector<256x128xf32>
    %17 = tpu.matmul %16, %0, %cst_9 {dimension_numbers = #tpu.dot_dimension_numbers<[0], [0], [1], [1], [0, 1, 1, 1], [], []>, precision = #tpu.contract_precision<fp32>} : vector<64x256xf32>, vector<64x128xf32>, vector<256x128xf32> -> vector<256x128xf32>
    %c0_10 = arith.constant 0 : index
    %c0_11 = arith.constant 0 : index
    %c0_12 = arith.constant 0 : index
    %18 = vector.load %arg3[%c0_10, %c0_11, %c0_12] : memref<1x1x256xi32, #tpu.memory_space<vmem>>, vector<1x1x256xi32>
    %19 = vector.shape_cast %18 : vector<1x1x256xi32> to vector<1x256xi32>
    %20 = tpu.iota {dimensions = array<i32: 0>} : vector<16x256xi32>
    %21 = vector.broadcast %19 : vector<1x256xi32> to vector<16x256xi32>
    %22 = arith.cmpi eq, %20, %21 : vector<16x256xi32>
    %23 = arith.extui %22 : vector<16x256xi1> to vector<16x256xi32>
    %24 = arith.sitofp %23 : vector<16x256xi32> to vector<16x256xf32>
    %cst_13 = arith.constant dense<0.000000e+00> : vector<256x128xf32>
    %25 = tpu.matmul %24, %1, %cst_13 {dimension_numbers = #tpu.dot_dimension_numbers<[0], [0], [1], [1], [0, 1, 1, 1], [], []>, precision = #tpu.contract_precision<fp32>} : vector<16x256xf32>, vector<16x128xf32>, vector<256x128xf32> -> vector<256x128xf32>
    %26 = arith.mulf %9, %17 : vector<256x128xf32>
    %27 = arith.mulf %26, %25 : vector<256x128xf32>
    %cst_14 = arith.constant 1.000000e+00 : f32
    %28 = vector.broadcast %cst_14 : f32 to vector<1x128xf32>
    %cst_15 = arith.constant dense<0.000000e+00> : vector<1x256xf32>
    %29 = tpu.matmul %28, %27, %cst_15 {dimension_numbers = #tpu.dot_dimension_numbers<[1], [1], [0], [0], [0, 0, 1, 0], [], []>, precision = #tpu.contract_precision<fp32>} : vector<1x128xf32>, vector<256x128xf32>, vector<1x256xf32> -> vector<1x256xf32>
    %30 = arith.negf %29 : vector<1x256xf32>
    %31 = math.exp %30 : vector<1x256xf32>
    %cst_16 = arith.constant 1.000000e+00 : f32
    %32 = vector.broadcast %cst_16 : f32 to vector<1x256xf32>
    %33 = arith.addf %32, %31 : vector<1x256xf32>
    %34 = arith.divf %32, %33 : vector<1x256xf32>
    %35 = vector.shape_cast %34 : vector<1x256xf32> to vector<1x1x256xf32>
    %c0_17 = arith.constant 0 : index
    %c0_18 = arith.constant 0 : index
    %c0_19 = arith.constant 0 : index
    %36 = vector.load %arg6[%c0_17, %c0_18, %c0_19] : memref<1x1x256xf32, #tpu.memory_space<vmem>>, vector<1x1x256xf32>
    tpu.vector_store %arg6[%c0_17, %c0_18, %c0_19], %35 {strides = array<i32>} : memref<1x1x256xf32, #tpu.memory_space<vmem>>, vector<1x1x256xf32>,
    return
  }
  func.func @transform_0(%arg0: i32) -> (i32, i32, i32) {
    %c0_i32 = arith.constant 0 : i32
    %c0_i32_0 = arith.constant 0 : i32
    %c0_i32_1 = arith.constant 0 : i32
    return %arg0, %c0_i32, %c0_i32_0 : i32, i32, i32
  }
  func.func @transform_1(%arg0: i32) -> (i32, i32, i32) {
    %c0_i32 = arith.constant 0 : i32
    %c0_i32_0 = arith.constant 0 : i32
    %c0_i32_1 = arith.constant 0 : i32
    return %arg0, %c0_i32, %c0_i32_0 : i32, i32, i32
  }
  func.func @transform_2(%arg0: i32) -> (i32, i32, i32) {
    %c0_i32 = arith.constant 0 : i32
    %c0_i32_0 = arith.constant 0 : i32
    %c0_i32_1 = arith.constant 0 : i32
    return %arg0, %c0_i32, %c0_i32_0 : i32, i32, i32
  }
  func.func @transform_3(%arg0: i32) -> (i32, i32) {
    %c0_i32 = arith.constant 0 : i32
    %c0_i32_0 = arith.constant 0 : i32
    %c0_i32_1 = arith.constant 0 : i32
    return %c0_i32, %c0_i32_0 : i32, i32
  }
  func.func @transform_4(%arg0: i32) -> (i32, i32) {
    %c0_i32 = arith.constant 0 : i32
    %c0_i32_0 = arith.constant 0 : i32
    %c0_i32_1 = arith.constant 0 : i32
    return %c0_i32, %c0_i32_0 : i32, i32
  }
  func.func @transform_5(%arg0: i32) -> (i32, i32, i32) {
    %c0_i32 = arith.constant 0 : i32
    %c0_i32_0 = arith.constant 0 : i32
    %c0_i32_1 = arith.constant 0 : i32
    return %arg0, %c0_i32, %c0_i32_0 : i32, i32, i32
  }
}

</mosaic_0001>

<bundles_post_ra>
// kernel: tpu_custom_call.1
= control target key start
LH: loop header
LB: loop body
LE: loop exit
PB: predicated region body
PF: predicated region fallthrough
CT: control target
= control target key end

     0   :  { %10 = vsyncpa [#allocation3], 0  ;;  %s7697_s0 = inlined_call_operand.hbm [shape: s32[1,1,256], index: 0, kind: input, shape index: {}]   ;;  %s7698_s1 = inlined_call_operand.hbm [shape: s32[1,1,256], index: 1, kind: input, shape index: {}]   ;;  %s7699_s2 = inlined_call_operand.hbm [shape: s32[1,1,256], index: 2, kind: input, shape index: {}]   ;;  %s7700_s3 = inlined_call_operand.hbm [shape: f32[64,128], index: 3, kind: input, shape index: {}]   ;;  %s7701_s4 = inlined_call_operand.hbm [shape: f32[16,128], index: 4, kind: input, shape index: {}]   ;;  %s7702_s5 = inlined_call_operand.hbm [shape: f32[1,1,256], index: 5, kind: output, shape index: {}]  }
   0x1   :  { %11 = vsyncpa [#allocation6], 0 }
   0x2   :  { %12 = vsyncpa [#allocation9], 0  ;;  %s30_s20 = sshll.u32 %s7698_s1, 4  ;;  %s31_s20 = int_to_ptr.hbm [resolvable:$true] %s30_s20 }
   0x3   :  { %13 = vsyncpa [#allocation4], 0  ;;  %s5223_s21 = smov [#allocation5]   ;;  %s51_s25 = sshll.u32 %s7700_s3, 4  ;;  %s52_s25 = int_to_ptr.hbm [resolvable:$true] %s51_s25 }
   0x4   :  { %s32_s22 = sshll.u32 %s5223_s21, 4  ;;  %s5224_s26 = smov [#allocation8]   ;;  %s33_s22 = int_to_ptr.vmem [resolvable:$true] %s32_s22 }
   0x5   :  { %35 = dma.hbm_to_vmem [thread:$0]  %s31_s20, 32, %s33_s22, [#allocation6]  }
   0x6   :  { %s53_s27 = sshll.u32 %s5224_s26, 4  ;;  %s5225_s28 = smov 128   ;;  %s54_s27 = int_to_ptr.vmem [resolvable:$true] %s53_s27 }
   0x7   :  { %s5226_s29 = smov 8   ;;  %s19_s1 = sshll.u32 %s7697_s0, 4  ;;  %s20_s1 = int_to_ptr.hbm [resolvable:$true] %s19_s1 }
   0x8   :  { %59 = dma.hbm_to_vmem [thread:$0]  %s52_s25, 1024, %s54_s27, [#allocation9], %s5225_s28, %s5225_s28, %s5226_s29  }
   0x9   :  { %s5227_s7 = smov [#allocation2]   ;;  %s41_s3 = sshll.u32 %s7699_s2, 4  ;;  %s42_s3 = int_to_ptr.hbm [resolvable:$true] %s41_s3 }
   0xa   :  { %s21_s8 = sshll.u32 %s5227_s7, 4  ;;  %s5228_s11 = smov [#allocation7]   ;;  %s22_s8 = int_to_ptr.vmem [resolvable:$true] %s21_s8 }
   0xb   :  { %24 = dma.hbm_to_vmem [thread:$0]  %s20_s1, 32, %s22_s8, [#allocation3]  }
   0xc   :  { %s43_s12 = sshll.u32 %s5228_s11, 4  ;;  %s64_s15 = sshll.u32 %s7701_s4, 4  ;;  %s44_s12 = int_to_ptr.vmem [resolvable:$true] %s43_s12  ;;  %s65_s15 = int_to_ptr.hbm [resolvable:$true] %s64_s15 }
   0xd   :  { %46 = dma.hbm_to_vmem [thread:$0]  %s42_s3, 32, %s44_s12, [#allocation6]  }
   0xe   :  { %s5229_s0 = smov [#allocation10]  }
   0xf   :  { %s66_s16 = sshll.u32 %s5229_s0, 4  ;;  %s67_s16 = int_to_ptr.vmem [resolvable:$true] %s66_s16 }
  0x10   :  { %72 = dma.hbm_to_vmem [thread:$0]  %s65_s15, 256, %s67_s16, [#allocation9], %s5225_s28, %s5225_s28, %s5226_s29  }
  0x11   :  { %5215 = dma.done.wait [#allocation3], 32  }
  0x12   :  { %5216 = vsyncadd [#allocation3], 4294967264 }
  0x13   :  { %5217 = dma.done.wait [#allocation6], 64  }
  0x14   :  { %5218 = vsyncadd [#allocation6], 4294967232 }
  0x15   :  { %5219 = dma.done.wait [#allocation9], 1280  }
  0x16   :  { %5220 = vsyncadd [#allocation9], 4294966016  ;;  %v7703_v0 = vlaneseq  ;;  %v103_v2 = vld [vmem:[#allocation2] sm:$0x3]  ;;  %v7714_v5 = vmov 0.0   ;;  %v99_v15 = vld [vmem:[#allocation8 + $0x30] sm:$0xff] }
  0x17   :  { %v5281_v3 = vperm.slane %v103_v2, 0  ;;  %v5307_v13 = vperm.slane %v103_v2, 1  ;;  %v100_v14 = vld [vmem:[#allocation8 + $0x38] sm:$0xff]  ;;  %v5311_v17 = vand.u32 4294901760, %v99_v15  ;;  %v98_v22 = vld [vmem:[#allocation8 + $0x28] sm:$0xff]  ;;  %v97_v23 = vld [vmem:[#allocation8 + $0x20] sm:$0xff] }
  0x18   :  { %v5279_v1 = vshrl.u32 %v7703_v0, 7  ;;  %v5309_v16 = vand.u32 4294901760, %v100_v14  ;;  %v96_v24 = vld [vmem:[#allocation8 + $0x18] sm:$0xff]  ;;  %v5330_v26 = vand.u32 4294901760, %v98_v22  ;;  %v5332_v27 = vand.u32 4294901760, %v97_v23  ;;  %v95_v29 = vld [vmem:[#allocation8 + $0x10] sm:$0xff] }
  0x19   :  { %v5327_v21 = vsub.f32 %v99_v15, %v5311_v17  ;;  %v5335_v28 = vand.u32 4294901760, %v96_v24  ;;  %v5347_v32 = vand.u32 4294901760, %v95_v29  ;;  %v94_v63 = vld [vmem:[#allocation8 + $0x8] sm:$0xff]  ;;  %s5232_s2 = smov [#allocation11]   ;;  %s5003_s19 = sshll.u32 %s7702_s5, 4  ;;  %s5004_s19 = int_to_ptr.hbm [resolvable:$true] %s5003_s19 }
  0x1a   :  { %7856 = vst [vmem:[#allocation16_spill] sm:$0xff] %v5279_v1  ;;  %vm115_vm0 = vcmp.eq.s32.totalorder %v5279_v1, %v5281_v3  ;;  %v5286_v4 = vadd.s32 8, %v5279_v1  ;;  %v5293_v8 = vadd.s32 16, %v5279_v1  ;;  %v5299_v10 = vadd.s32 24, %v5279_v1  ;;  %992 = vmatpush.msra.mxu3 %v5309_v16  ;;  %333 = vmatpush.msra.mxu0 %v5309_v16  ;;  %s5001_s4 = sshll.u32 %s5232_s2, 4  ;;  %s5002_s4 = int_to_ptr.vmem [resolvable:$true] %s5001_s4 }
  0x1b   :  { %v5015_v6 = vsel %vm115_vm0, 1.0, %v7714_v5  ;;  %v5305_v12 = vadd.s32 32, %v5279_v1  ;;  %vm116_vm5 = vcmp.eq.s32.totalorder %v5279_v1, %v5307_v13  ;;  %v5321_v19 = vadd.s32 40, %v5279_v1 }
  0x1c   :  { %7857 = vst [vmem:[#allocation17_spill] sm:$0xff] %v5286_v4  ;;  %163 = vxpose.xlu0.b32.start [1/8] (short) %v5015_v6, 128  ;;  %vm117_vm1 = vcmp.eq.s32.totalorder %v5286_v4, %v5281_v3  ;;  %vm119_vm2 = vcmp.eq.s32.totalorder %v5293_v8, %v5281_v3  ;;  %vm121_vm3 = vcmp.eq.s32.totalorder %v5299_v10, %v5281_v3  ;;  %v5016_v18 = vsel %vm116_vm5, 1.0, %v7714_v5 }
  0x1d   :  { %v5017_v7 = vsel %vm117_vm1, 1.0, %v7714_v5  ;;  %v5019_v9 = vsel %vm119_vm2, 1.0, %v7714_v5  ;;  %v5021_v11 = vsel %vm121_vm3, 1.0, %v7714_v5  ;;  %vm123_vm4 = vcmp.eq.s32.totalorder %v5305_v12, %v5281_v3  ;;  %195 = vxpose.xlu1.b32.start [1/8] (short) %v5016_v18, 128  ;;  %994 = vmatpush.msra.mxu3 %v5311_v17 }
  0x1e   :  { %v5324_v20 = vsub.f32 %v100_v14, %v5309_v16  ;;  %v5023_v25 = vsel %vm123_vm4, 1.0, %v7714_v5  ;;  %335 = vmatpush.msra.mxu0 %v5311_v17  ;;  %vm118_vm6 = vcmp.eq.s32.totalorder %v5286_v4, %v5307_v13  ;;  %v5344_v31 = vand.u32 4294901760, %v5327_v21 }
  0x1f   :  { %v5350_v33 = vsub.f32 %v98_v22, %v5330_v26  ;;  %v5353_v34 = vsub.f32 %v97_v23, %v5332_v27  ;;  %v5356_v35 = vsub.f32 %v96_v24, %v5335_v28  ;;  %996 = vmatpush.msra.mxu3 %v5330_v26  ;;  %v5366_v38 = vsub.f32 %v95_v29, %v5347_v32 }
  0x20   :  { %v5341_v30 = vand.u32 4294901760, %v5324_v20  ;;  %800 = vmatpush.msra.mxu2 %v5324_v20  ;;  %337 = vmatpush.msra.mxu0 %v5330_v26  ;;  %v622_v37 = vsub.f32 %v5327_v21, %v5344_v31  ;;  %v5018_v39 = vsel %vm118_vm6, 1.0, %v7714_v5  ;;  %vm125_vm7 = vcmp.eq.s32.totalorder %v5321_v19, %v5281_v3 }
  0x21   :  { %v5370_v40 = vand.u32 4294901760, %v5350_v33  ;;  %v5373_v41 = vand.u32 4294901760, %v5353_v34  ;;  %v5376_v42 = vand.u32 4294901760, %v5356_v35  ;;  %998 = vmatpush.msra.mxu3 %v5332_v27  ;;  %v5386_v45 = vand.u32 4294901760, %v5366_v38 }
  0x22   :  { %v616_v36 = vsub.f32 %v5324_v20, %v5341_v30  ;;  %803 = vmatpush.msra.mxu2 %v5327_v21  ;;  %339 = vmatpush.msra.mxu0 %v5332_v27  ;;  %v5382_v44 = vand.u32 4294901760, %v622_v37  ;;  %v5025_v49 = vsel %vm125_vm7, 1.0, %v7714_v5  ;;  %v5400_v51 = vadd.s32 48, %v5279_v1 }
  0x23   :  { %v628_v46 = vsub.f32 %v5350_v33, %v5370_v40  ;;  %v634_v47 = vsub.f32 %v5353_v34, %v5373_v41  ;;  %1000 = vmatpush.msra.mxu3 %v5335_v28  ;;  %v640_v48 = vsub.f32 %v5356_v35, %v5376_v42  ;;  %vm120_vm8 = vcmp.eq.s32.totalorder %v5293_v8, %v5307_v13 }
  0x24   :  { %164 = vxpose.xlu0.b32.cont [2/8] (short) %v5017_v7, 128  ;;  %v617_v43 = vand.u32 4294901760, %v616_v36  ;;  %806 = vmatpush.msra.mxu2 %v5350_v33  ;;  %v646_v53 = vsub.f32 %v5366_v38, %v5386_v45  ;;  %v5020_v55 = vsel %vm120_vm8, 1.0, %v7714_v5  ;;  %vm127_vm9 = vcmp.eq.s32.totalorder %v5400_v51, %v5281_v3 }
  0x25   :  { %341 = vmatpush.msra.mxu0 %v5335_v28  ;;  %196 = vxpose.xlu1.b32.cont [2/8] (short) %v5018_v39, 128  ;;  %v629_v50 = vand.u32 4294901760, %v628_v46  ;;  %v635_v52 = vand.u32 4294901760, %v634_v47  ;;  %v641_v54 = vand.u32 4294901760, %v640_v48  ;;  %v5027_v57 = vsel %vm127_vm9, 1.0, %v7714_v5 }
  0x26   :  { %618 = vmatpush.msra.mxu1 %v617_v43  ;;  %809 = vmatpush.msra.mxu2 %v5353_v34  ;;  %v647_v56 = vand.u32 4294901760, %v646_v53  ;;  %v5415_v58 = vadd.s32 56, %v5279_v1  ;;  %vm122_vm10 = vcmp.eq.s32.totalorder %v5299_v10, %v5307_v13  ;;  %vm124_vm12 = vcmp.eq.s32.totalorder %v5305_v12, %v5307_v13 }
  0x27   :  { %1002 = vmatpush.msra.mxu3 %v5347_v32  ;;  %343 = vmatpush.msra.mxu0 %v5347_v32  ;;  %v5022_v59 = vsel %vm122_vm10, 1.0, %v7714_v5  ;;  %v5024_v61 = vsel %vm124_vm12, 1.0, %v7714_v5  ;;  %vm126_vm13 = vcmp.eq.s32.totalorder %v5321_v19, %v5307_v13  ;;  %v5429_v2 = vand.u32 4294901760, %v94_v63 }
  0x28   :  { %624 = vmatpush.msra.mxu1 %v5382_v44  ;;  %812 = vmatpush.msra.mxu2 %v5356_v35  ;;  %vm129_vm11 = vcmp.eq.s32.totalorder %v5415_v58, %v5281_v3  ;;  %v5026_v62 = vsel %vm126_vm13, 1.0, %v7714_v5  ;;  %v93_v3 = vld [vmem:[#allocation8] sm:$0xff]  ;;  %vm128_vm14 = vcmp.eq.s32.totalorder %v5400_v51, %v5307_v13  ;;  %vm130_vm15 = vcmp.eq.s32.totalorder %v5415_v58, %v5307_v13 }
  0x29   :  { %v5029_v60 = vsel %vm129_vm11, 1.0, %v7714_v5  ;;  %v5432_v6 = vsub.f32 %v94_v63, %v5429_v2  ;;  %v5434_v7 = vand.u32 4294901760, %v93_v3  ;;  %1004 = vmatpush.msra.mxu3 %v5429_v2  ;;  %345 = vmatpush.msra.mxu0 %v5429_v2  ;;  %v5028_v24 = vsel %vm128_vm14, 1.0, %v7714_v5 }
  0x2a   :  { %630 = vmatpush.msra.mxu1 %v629_v50  ;;  %815 = vmatpush.msra.mxu2 %v5366_v38  ;;  %vm227_vm0 = vcmask 523264  }
  0x2b   :  { %1006 = vmatpush.msra.mxu3 %v5434_v7  ;;  %347 = vmatpush.msra.mxu0 %v5434_v7 }
  0x2c   :  { %165 = vxpose.xlu0.b32.cont [3/8] (short) %v5019_v9, 128  ;;  %636 = vmatpush.msra.mxu1 %v635_v52  ;;  %v5439_v9 = vand.u32 4294901760, %v5432_v6 }
  0x2d   :  { %197 = vxpose.xlu1.b32.cont [3/8] (short) %v5020_v55, 128  ;;  %818 = vmatpush.msra.mxu2 %v5432_v6 }
  0x2e   :  { %642 = vmatpush.msra.mxu1 %v641_v54  ;;  %2027 = vmatpush.msrb.mxu3 %v617_v43  ;;  %v652_v14 = vsub.f32 %v5432_v6, %v5439_v9 }
  0x2f   :  { %1211 = vmatpush.msrb.mxu0 %v5341_v30 }
  0x30   :  { %648 = vmatpush.msra.mxu1 %v647_v56  ;;  %2033 = vmatpush.msrb.mxu3 %v5382_v44  ;;  %v653_v18 = vand.u32 4294901760, %v652_v14 }
  0x31   :  { %1215 = vmatpush.msrb.mxu0 %v5344_v31 }
  0x32   :  { %2039 = vmatpush.msrb.mxu3 %v629_v50  ;;  %654 = vmatpush.msra.mxu1 %v653_v18 }
  0x33   :  { %1219 = vmatpush.msrb.mxu0 %v5370_v40 }
  0x34   :  { %166 = vxpose.xlu0.b32.cont [4/8] (short) %v5021_v11, 128  ;;  %v5442_v11 = vsub.f32 %v93_v3, %v5434_v7  ;;  %2045 = vmatpush.msrb.mxu3 %v635_v52 }
  0x35   :  { %198 = vxpose.xlu1.b32.cont [4/8] (short) %v5022_v59, 128  ;;  %1223 = vmatpush.msrb.mxu0 %v5373_v41 }
  0x36   :  { %v5450_v15 = vand.u32 4294901760, %v5442_v11  ;;  %821 = vmatpush.msra.mxu2 %v5442_v11  ;;  %2051 = vmatpush.msrb.mxu3 %v641_v54 }
  0x37   :  { %1227 = vmatpush.msrb.mxu0 %v5376_v42 }
  0x38   :  { %1742 = vmatpush.msrb.mxu2 %v5309_v16  ;;  %v658_v22 = vsub.f32 %v5442_v11, %v5450_v15  ;;  %2057 = vmatpush.msrb.mxu3 %v647_v56 }
  0x39   :  { %1231 = vmatpush.msrb.mxu0 %v5386_v45 }
  0x3a   :  { %1744 = vmatpush.msrb.mxu2 %v5311_v17  ;;  %v659_v23 = vand.u32 4294901760, %v658_v22  ;;  %2063 = vmatpush.msrb.mxu3 %v653_v18 }
  0x3b   :  { %1235 = vmatpush.msrb.mxu0 %v5439_v9 }
  0x3c   :  { %167 = vxpose.xlu0.b32.cont [5/8] (short) %v5023_v25, 128  ;;  %1746 = vmatpush.msrb.mxu2 %v5330_v26  ;;  %v5030_v25 = vsel %vm130_vm15, 1.0, %v7714_v5 }
  0x3d   :  { %199 = vxpose.xlu1.b32.cont [5/8] (short) %v5024_v61, 128  ;;  %660 = vmatpush.msra.mxu1 %v659_v23 }
  0x3e   :  { %1748 = vmatpush.msrb.mxu2 %v5332_v27  ;;  %2069 = vmatpush.msrb.mxu3 %v659_v23 }
  0x3f   :  { %1378 = vmatpush.msrb.mxu1 %v5309_v16  ;;  %1239 = vmatpush.msrb.mxu0 %v5450_v15 }
  0x40   :  { %1750 = vmatpush.msrb.mxu2 %v5335_v28 }
  0x41   :  { %1380 = vmatpush.msrb.mxu1 %v5311_v17 }
  0x42   :  { %1752 = vmatpush.msrb.mxu2 %v5347_v32 }
  0x43   :  { %1382 = vmatpush.msrb.mxu1 %v5330_v26 }
  0x44   :  { %168 = vxpose.xlu0.b32.cont [6/8] (short) %v5025_v49, 128  ;;  %1754 = vmatpush.msrb.mxu2 %v5429_v2 }
  0x45   :  { %200 = vxpose.xlu1.b32.cont [6/8] (short) %v5026_v62, 128  ;;  %1384 = vmatpush.msrb.mxu1 %v5332_v27 }
  0x46   :  { %1756 = vmatpush.msrb.mxu2 %v5434_v7 }
  0x47   :  { %1386 = vmatpush.msrb.mxu1 %v5335_v28 }
  0x49   :  { %1388 = vmatpush.msrb.mxu1 %v5347_v32 }
  0x4b   :  { %1390 = vmatpush.msrb.mxu1 %v5429_v2 }
  0x4c   :  { %169 = vxpose.xlu0.b32.cont [7/8] (short) %v5027_v57, 128 }
  0x4d   :  { %201 = vxpose.xlu1.b32.cont [7/8] (short) %v5028_v24, 128  ;;  %1392 = vmatpush.msrb.mxu1 %v5434_v7 }
  0x54   :  { %170 = vxpose.xlu0.b32.end [8/8] (short) %v5029_v60, 128 }
  0x55   :  { %202 = vxpose.xlu1.b32.end [8/8] (short) %v5030_v25, 128  ;;  %v5558_v25 = vld [vmem:[#allocation5] sm:$0x3] }
  0xc0   :  { %v179_v29 = vpop.trf.xlu0 }
  0xc1   :  { %v229_v36 = vsel %vm227_vm0, %v179_v29, 0  ;;  %v5561_v29 = vperm.slane %v5558_v25, 0 }
  0xc2   :  { %v5487_v37 = vand.u32 4294901760, %v229_v36 }
  0xc3   :  { %vm1525_vm1 = vcmp.eq.s32.totalorder %v5279_v1, %v5561_v29  ;;  %vm1527_vm2 = vcmp.eq.s32.totalorder %v5286_v4, %v5561_v29  ;;  %vm1529_vm3 = vcmp.eq.s32.totalorder %v5293_v8, %v5561_v29  ;;  %vm1531_vm4 = vcmp.eq.s32.totalorder %v5299_v10, %v5561_v29 }
  0xc4   :  { %v349_v39 = vsub.f32 %v229_v36, %v5487_v37  ;;  %662 = vmatmul.f32.vlgmr.msra.gmra.mxu1 %v5487_v37  ;;  %vm1533_vm5 = vcmp.eq.s32.totalorder %v5305_v12, %v5561_v29  ;;  %vm1535_vm6 = vcmp.eq.s32.totalorder %v5321_v19, %v5561_v29  ;;  %vm1537_vm7 = vcmp.eq.s32.totalorder %v5400_v51, %v5561_v29 }
  0xc5   :  { %2401 = vmatpush.msra.mxu1 %v5309_v16  ;;  %vm1539_vm8 = vcmp.eq.s32.totalorder %v5415_v58, %v5561_v29 }
  0xc6   :  { %824 = vmatmul.f32.vlgmr.msra.gmra.mxu2 %v349_v39  ;;  %v350_v13 = vand.u32 4294901760, %v349_v39 }
  0xc7   :  { %2403 = vmatpush.msra.mxu1 %v5311_v17  ;;  %2620 = vmatpush.msra.mxu2 %v5341_v30 }
  0xc8   :  { %v180_v43 = vpop.trf.xlu0  ;;  %1010 = vmatmul.f32.vlgmr.msra.gmra.mxu3 %v350_v13  ;;  %v351_v44 = vsub.f32 %v349_v39, %v350_v13 }
  0xc9   :  { %v232_v46 = vsel %vm227_vm0, %v180_v43, 0  ;;  %2405 = vmatpush.msra.mxu1 %v5330_v26  ;;  %2624 = vmatpush.msra.mxu2 %v5344_v31  ;;  %v5031_v43 = vsel %vm1525_vm1, 1.0, %v7714_v5 }
  0xca   :  { %v5497_v47 = vand.u32 4294901760, %v232_v46  ;;  %v352_v48 = vand.u32 4294901760, %v351_v44  ;;  %2787 = vmatpush.msra.mxu3 %v5309_v16  ;;  %1573 = vxpose.xlu2.b32.start [1/8] (short) %v5031_v43, 128 }
  0xcb   :  { %2407 = vmatpush.msra.mxu1 %v5332_v27  ;;  %2628 = vmatpush.msra.mxu2 %v5370_v40 }
  0xcc   :  { %v357_v30 = vsub.f32 %v232_v46, %v5497_v47  ;;  %353 = vmatmul.f32.vlgmr.msra.gmra.mxu0 %v352_v48  ;;  %666 = vmatmul.f32.gmra.mxu1 %v5497_v47 }
  0xcd   :  { %2209 = vmatpush.msra.mxu0 %v5324_v20  ;;  %2789 = vmatpush.msra.mxu3 %v5311_v17 }
  0xce   :  { %829 = vmatmul.f32.gmra.mxu2 %v357_v30  ;;  %v358_v31 = vand.u32 4294901760, %v357_v30  ;;  %2409 = vmatpush.msra.mxu1 %v5335_v28 }
  0xcf   :  { %2212 = vmatpush.msra.mxu0 %v5327_v21  ;;  %2632 = vmatpush.msra.mxu2 %v5373_v41 }
  0xd0   :  { %v181_v16 = vpop.trf.xlu0  ;;  %1016 = vmatmul.f32.gmra.mxu3 %v358_v31  ;;  %v359_v40 = vsub.f32 %v357_v30, %v358_v31  ;;  %2411 = vmatpush.msra.mxu1 %v5347_v32 }
  0xd1   :  { %v235_v49 = vsel %vm227_vm0, %v181_v16, 0  ;;  %2791 = vmatpush.msra.mxu3 %v5330_v26  ;;  %2636 = vmatpush.msra.mxu2 %v5376_v42 }
  0xd2   :  { %v5513_v17 = vand.u32 4294901760, %v235_v49  ;;  %v360_v20 = vand.u32 4294901760, %v359_v40  ;;  %2215 = vmatpush.msra.mxu0 %v5350_v33  ;;  %2413 = vmatpush.msra.mxu1 %v5429_v2 }
  0xd3   :  { %2793 = vmatpush.msra.mxu3 %v5332_v27  ;;  %2640 = vmatpush.msra.mxu2 %v5386_v45 }
  0xd4   :  { %v365_v21 = vsub.f32 %v235_v49, %v5513_v17  ;;  %361 = vmatmul.f32.gmra.mxu0 %v360_v20  ;;  %670 = vmatmul.f32.gmra.mxu1 %v5513_v17  ;;  %v5033_v49 = vsel %vm1527_vm2, 1.0, %v7714_v5 }
  0xd5   :  { %2795 = vmatpush.msra.mxu3 %v5335_v28  ;;  %2218 = vmatpush.msra.mxu0 %v5353_v34 }
  0xd6   :  { %834 = vmatmul.f32.gmra.mxu2 %v365_v21  ;;  %v366_v26 = vand.u32 4294901760, %v365_v21  ;;  %2415 = vmatpush.msra.mxu1 %v5434_v7 }
  0xd7   :  { %2644 = vmatpush.msra.mxu2 %v5439_v9  ;;  %2797 = vmatpush.msra.mxu3 %v5347_v32 }
  0xd8   :  { %v182_v27 = vpop.trf.xlu0  ;;  %1022 = vmatmul.f32.gmra.mxu3 %v366_v26  ;;  %v367_v33 = vsub.f32 %v365_v21, %v366_v26  ;;  %2221 = vmatpush.msra.mxu0 %v5356_v35 }
  0xd9   :  { %v238_v41 = vsel %vm227_vm0, %v182_v27, 0  ;;  %2648 = vmatpush.msra.mxu2 %v5450_v15  ;;  %2799 = vmatpush.msra.mxu3 %v5429_v2 }
  0xda   :  { %v5530_v28 = vand.u32 4294901760, %v238_v41  ;;  %v368_v34 = vand.u32 4294901760, %v367_v33  ;;  %2224 = vmatpush.msra.mxu0 %v5366_v38  ;;  %1574 = vxpose.xlu2.b32.cont [2/8] (short) %v5033_v49, 128 }
  0xdb   :  { %2801 = vmatpush.msra.mxu3 %v5434_v7 }
  0xdc   :  { %v373_v32 = vsub.f32 %v238_v41, %v5530_v28  ;;  %369 = vmatmul.f32.gmra.mxu0 %v368_v34  ;;  %674 = vmatmul.f32.gmra.mxu1 %v5530_v28 }
  0xdd   :  { %2227 = vmatpush.msra.mxu0 %v5432_v6 }
  0xde   :  { %839 = vmatmul.f32.gmra.mxu2 %v373_v32  ;;  %v374_v35 = vand.u32 4294901760, %v373_v32 }
  0xdf   :  { %2230 = vmatpush.msra.mxu0 %v5442_v11 }
  0xe0   :  { %v183_v42 = vpop.trf.xlu0  ;;  %1028 = vmatmul.f32.gmra.mxu3 %v374_v35  ;;  %v375_v45 = vsub.f32 %v373_v32, %v374_v35  ;;  %v5035_v32 = vsel %vm1529_vm3, 1.0, %v7714_v5 }
  0xe1   :  { %v241_v50 = vsel %vm227_vm0, %v183_v42, 0 }
  0xe2   :  { %v5539_v52 = vand.u32 4294901760, %v241_v50  ;;  %v376_v38 = vand.u32 4294901760, %v375_v45  ;;  %1575 = vxpose.xlu2.b32.cont [3/8] (short) %v5035_v32, 128 }
  0xe4   :  { %v381_v53 = vsub.f32 %v241_v50, %v5539_v52  ;;  %377 = vmatmul.f32.gmra.mxu0 %v376_v38  ;;  %678 = vmatmul.f32.gmra.mxu1 %v5539_v52 }
  0xe6   :  { %844 = vmatmul.f32.gmra.mxu2 %v381_v53  ;;  %v382_v54 = vand.u32 4294901760, %v381_v53 }
  0xe8   :  { %v184_v55 = vpop.trf.xlu0  ;;  %1034 = vmatmul.f32.gmra.mxu3 %v382_v54  ;;  %v383_v56 = vsub.f32 %v381_v53, %v382_v54 }
  0xe9   :  { %v244_v57 = vsel %vm227_vm0, %v184_v55, 0  ;;  %v5037_v55 = vsel %vm1531_vm4, 1.0, %v7714_v5 }
  0xea   :  { %v5544_v59 = vand.u32 4294901760, %v244_v57  ;;  %v384_v60 = vand.u32 4294901760, %v383_v56  ;;  %1576 = vxpose.xlu2.b32.cont [4/8] (short) %v5037_v55, 128 }
  0xec   :  { %v389_v61 = vsub.f32 %v244_v57, %v5544_v59  ;;  %385 = vmatmul.f32.gmra.mxu0 %v384_v60  ;;  %682 = vmatmul.f32.gmra.mxu1 %v5544_v59 }
  0xee   :  { %849 = vmatmul.f32.gmra.mxu2 %v389_v61  ;;  %v390_v62 = vand.u32 4294901760, %v389_v61 }
  0xf0   :  { %v185_v63 = vpop.trf.xlu0  ;;  %1040 = vmatmul.f32.gmra.mxu3 %v390_v62  ;;  %v391_v2 = vsub.f32 %v389_v61, %v390_v62  ;;  %v211_v62 = vpop.trf.xlu1 }
  0xf1   :  { %v247_v3 = vsel %vm227_vm0, %v185_v63, 0  ;;  %v277_v32 = vsel %vm227_vm0, %v211_v62, 0 }
  0xf2   :  { %v5549_v6 = vand.u32 4294901760, %v247_v3  ;;  %v392_v7 = vand.u32 4294901760, %v391_v2 }
  0xf4   :  { %v397_v9 = vsub.f32 %v247_v3, %v5549_v6  ;;  %393 = vmatmul.f32.gmra.mxu0 %v392_v7  ;;  %686 = vmatmul.f32.gmra.mxu1 %v5549_v6  ;;  %v5039_v7 = vsel %vm1533_vm5, 1.0, %v7714_v5  ;;  %vm3010_vm5 = vcmask 130048  }
  0xf5   :  { %1577 = vxpose.xlu2.b32.cont [5/8] (short) %v5039_v7, 128 }
  0xf6   :  { %854 = vmatmul.f32.gmra.mxu2 %v397_v9  ;;  %v398_v11 = vand.u32 4294901760, %v397_v9 }
  0xf8   :  { %v186_v14 = vpop.trf.xlu0  ;;  %1046 = vmatmul.f32.gmra.mxu3 %v398_v11  ;;  %v399_v15 = vsub.f32 %v397_v9, %v398_v11 }
  0xf9   :  { %v250_v18 = vsel %vm227_vm0, %v186_v14, 0 }
  0xfa   :  { %v5554_v22 = vand.u32 4294901760, %v250_v18  ;;  %v400_v23 = vand.u32 4294901760, %v399_v15 }
  0xfc   :  { %v405_v24 = vsub.f32 %v250_v18, %v5554_v22  ;;  %401 = vmatmul.f32.gmra.mxu0 %v400_v23  ;;  %690 = vmatmul.f32.gmra.mxu1 %v5554_v22  ;;  %v212_v18 = vpop.trf.xlu1 }
  0xfd   :  { %v280_v62 = vsel %vm227_vm0, %v212_v18, 0 }
  0xfe   :  { %859 = vmatmul.f32.gmra.mxu2 %v405_v24  ;;  %v406_v36 = vand.u32 4294901760, %v405_v24 }
 0x100   :  { %v187_v39 = vpop.trf.xlu0  ;;  %1052 = vmatmul.f32.gmra.mxu3 %v406_v36  ;;  %v407_v13 = vsub.f32 %v405_v24, %v406_v36 }
 0x101   :  { %v253_v44 = vsel %vm227_vm0, %v187_v39, 0  ;;  %v5041_v39 = vsel %vm1535_vm6, 1.0, %v7714_v5 }
 0x102   :  { %v5567_v46 = vand.u32 4294901760, %v253_v44  ;;  %v408_v48 = vand.u32 4294901760, %v407_v13  ;;  %1578 = vxpose.xlu2.b32.cont [6/8] (short) %v5041_v39, 128 }
 0x104   :  { %v413_v30 = vsub.f32 %v253_v44, %v5567_v46  ;;  %409 = vmatmul.f32.gmra.mxu0 %v408_v48  ;;  %694 = vmatmul.f32.gmra.mxu1 %v5567_v46 }
 0x106   :  { %864 = vmatmul.f32.gmra.mxu2 %v413_v30  ;;  %v414_v31 = vand.u32 4294901760, %v413_v30 }
 0x108   :  { %v188_v16 = vpop.trf.xlu0  ;;  %1058 = vmatmul.f32.gmra.mxu3 %v414_v31  ;;  %v415_v40 = vsub.f32 %v413_v30, %v414_v31  ;;  %v213_v30 = vpop.trf.xlu1 }
 0x109   :  { %v256_v20 = vsel %vm227_vm0, %v188_v16, 0 }
 0x10a   :  { %v5575_v21 = vand.u32 4294901760, %v256_v20  ;;  %v416_v26 = vand.u32 4294901760, %v415_v40 }
 0x10c   :  { %v421_v27 = vsub.f32 %v256_v20, %v5575_v21  ;;  %417 = vmatmul.f32.gmra.mxu0 %v416_v26  ;;  %698 = vmatmul.f32.gmra.mxu1 %v5575_v21  ;;  %v5043_v20 = vsel %vm1537_vm7, 1.0, %v7714_v5 }
 0x10d   :  { %1579 = vxpose.xlu2.b32.cont [7/8] (short) %v5043_v20, 128 }
 0x10e   :  { %869 = vmatmul.f32.gmra.mxu2 %v421_v27  ;;  %v422_v33 = vand.u32 4294901760, %v421_v27 }
 0x110   :  { %v189_v41 = vpop.trf.xlu0  ;;  %1064 = vmatmul.f32.gmra.mxu3 %v422_v33  ;;  %v423_v34 = vsub.f32 %v421_v27, %v422_v33 }
 0x111   :  { %v259_v35 = vsel %vm227_vm0, %v189_v41, 0  ;;  %v214_v41 = vpop.trf.xlu1 }
 0x112   :  { %v5583_v42 = vand.u32 4294901760, %v259_v35  ;;  %v424_v45 = vand.u32 4294901760, %v423_v34 }
 0x114   :  { %v429_v50 = vsub.f32 %v259_v35, %v5583_v42  ;;  %425 = vmatmul.f32.gmra.mxu0 %v424_v45  ;;  %702 = vmatmul.f32.gmra.mxu1 %v5583_v42 }
 0x116   :  { %874 = vmatmul.f32.gmra.mxu2 %v429_v50  ;;  %v430_v38 = vand.u32 4294901760, %v429_v50 }
 0x118   :  { %v190_v53 = vpop.trf.xlu0  ;;  %1070 = vmatmul.f32.gmra.mxu3 %v430_v38  ;;  %v431_v54 = vsub.f32 %v429_v50, %v430_v38  ;;  %v5045_v38 = vsel %vm1539_vm8, 1.0, %v7714_v5 }
 0x119   :  { %v262_v56 = vsel %vm227_vm0, %v190_v53, 0  ;;  %1580 = vxpose.xlu2.b32.end [8/8] (short) %v5045_v38, 128 }
 0x11a   :  { %v5591_v57 = vand.u32 4294901760, %v262_v56  ;;  %v432_v60 = vand.u32 4294901760, %v431_v54  ;;  %v5626_v54 = vand.u32 4294901760, %v277_v32 }
 0x11c   :  { %v437_v61 = vsub.f32 %v262_v56, %v5591_v57  ;;  %433 = vmatmul.f32.gmra.mxu0 %v432_v60  ;;  %706 = vmatmul.f32.gmra.mxu1 %v5591_v57  ;;  %v215_v60 = vpop.trf.xlu1 }
 0x11e   :  { %879 = vmatmul.f32.gmra.mxu2 %v437_v61  ;;  %v438_v63 = vand.u32 4294901760, %v437_v61 }
 0x120   :  { %v191_v2 = vpop.trf.xlu0  ;;  %1076 = vmatmul.f32.gmra.mxu3 %v438_v63  ;;  %v439_v3 = vsub.f32 %v437_v61, %v438_v63  ;;  %v477_v61 = vsub.f32 %v277_v32, %v5626_v54 }
 0x121   :  { %v265_v9 = vsel %vm227_vm0, %v191_v2, 0 }
 0x122   :  { %v5599_v11 = vand.u32 4294901760, %v265_v9  ;;  %v440_v14 = vand.u32 4294901760, %v439_v3  ;;  %v5632_v3 = vand.u32 4294901760, %v280_v62 }
 0x124   :  { %v445_v15 = vsub.f32 %v265_v9, %v5599_v11  ;;  %441 = vmatmul.f32.gmra.mxu0 %v440_v14  ;;  %710 = vmatmul.f32.gmra.mxu1 %v5599_v11  ;;  %v478_v9 = vand.u32 4294901760, %v477_v61  ;;  %v485_v14 = vsub.f32 %v280_v62, %v5632_v3 }
 0x126   :  { %884 = vmatmul.f32.gmra.mxu2 %v445_v15  ;;  %v446_v23 = vand.u32 4294901760, %v445_v15 }
 0x128   :  { %v192_v24 = vpop.trf.xlu0  ;;  %1082 = vmatmul.f32.gmra.mxu3 %v446_v23  ;;  %v447_v36 = vsub.f32 %v445_v15, %v446_v23  ;;  %v479_v15 = vsub.f32 %v477_v61, %v478_v9  ;;  %v216_v23 = vpop.trf.xlu1 }
 0x129   :  { %v268_v13 = vsel %vm227_vm0, %v192_v24, 0  ;;  %v283_v24 = vsel %vm227_vm0, %v213_v30, 0 }
 0x12a   :  { %v5607_v43 = vand.u32 4294901760, %v268_v13  ;;  %v448_v44 = vand.u32 4294901760, %v447_v36 }
 0x12c   :  { %v453_v48 = vsub.f32 %v268_v13, %v5607_v43  ;;  %449 = vmatmul.f32.gmra.mxu0 %v448_v44  ;;  %714 = vmatmul.f32.gmra.mxu1 %v5607_v43  ;;  %v5637_v44 = vand.u32 4294901760, %v283_v24 }
 0x12e   :  { %889 = vmatmul.f32.gmra.mxu2 %v453_v48  ;;  %v454_v31 = vand.u32 4294901760, %v453_v48  ;;  %v493_v20 = vsub.f32 %v283_v24, %v5637_v44 }
 0x130   :  { %v193_v16 = vpop.trf.xlu0  ;;  %1088 = vmatmul.f32.gmra.mxu3 %v454_v31  ;;  %v455_v40 = vsub.f32 %v453_v48, %v454_v31  ;;  %v480_v48 = vand.u32 4294901760, %v479_v15  ;;  %v486_v31 = vand.u32 4294901760, %v485_v14 }
 0x131   :  { %v271_v49 = vsel %vm227_vm0, %v193_v16, 0 }
 0x132   :  { %v5615_v26 = vand.u32 4294901760, %v271_v49  ;;  %v456_v27 = vand.u32 4294901760, %v455_v40  ;;  %v487_v30 = vsub.f32 %v485_v14, %v486_v31 }
 0x134   :  { %v461_v33 = vsub.f32 %v271_v49, %v5615_v26  ;;  %457 = vmatmul.f32.gmra.mxu0 %v456_v27  ;;  %718 = vmatmul.f32.gmra.mxu1 %v5615_v26  ;;  %v286_v27 = vsel %vm227_vm0, %v214_v41, 0  ;;  %v488_v38 = vand.u32 4294901760, %v487_v30 }
 0x136   :  { %894 = vmatmul.f32.gmra.mxu2 %v461_v33  ;;  %v462_v34 = vand.u32 4294901760, %v461_v33 }
 0x138   :  { %v194_v35 = vpop.trf.xlu0  ;;  %1094 = vmatmul.f32.gmra.mxu3 %v462_v34  ;;  %v463_v45 = vsub.f32 %v461_v33, %v462_v34  ;;  %v217_v33 = vpop.trf.xlu1 }
 0x139   :  { %v274_v50 = vsel %vm227_vm0, %v194_v35, 0 }
 0x13a   :  { %v5624_v53 = vand.u32 4294901760, %v274_v50  ;;  %v464_v55 = vand.u32 4294901760, %v463_v45 }
 0x13c   :  { %v469_v56 = vsub.f32 %v274_v50, %v5624_v53  ;;  %465 = vmatmul.f32.gmra.mxu0 %v464_v55  ;;  %722 = vmatmul.f32.gmra.mxu1 %v5624_v53  ;;  %v5644_v50 = vand.u32 4294901760, %v286_v27  ;;  %v494_v55 = vand.u32 4294901760, %v493_v20 }
 0x13e   :  { %899 = vmatmul.f32.gmra.mxu2 %v469_v56  ;;  %v470_v29 = vand.u32 4294901760, %v469_v56  ;;  %v501_v62 = vsub.f32 %v286_v27, %v5644_v50  ;;  %v495_v41 = vsub.f32 %v493_v20, %v494_v55 }
 0x140   :  { %1100 = vmatmul.f32.gmra.mxu3 %v470_v29  ;;  %v471_v63 = vsub.f32 %v469_v56, %v470_v29  ;;  %v496_v24 = vand.u32 4294901760, %v495_v41 }
 0x141   :  { %v663_v2 = vpop.f32.mrf.mxu1 }
 0x142   :  { %v472_v7 = vand.u32 4294901760, %v471_v63  ;;  %v289_v63 = vsel %vm227_vm0, %v215_v60, 0 }
 0x143   :  { %v5651_v15 = vand.u32 4294901760, %v289_v63 }
 0x144   :  { %473 = vmatmul.f32.gmra.mxu0 %v472_v7  ;;  %726 = vmatmul.f32.gmra.mxu1 %v5626_v54 }
 0x146   :  { %904 = vmatmul.f32.gmra.mxu2 %v477_v61 }
 0x148   :  { %1106 = vmatmul.f32.gmra.mxu3 %v478_v9 }
 0x149   :  { %v354_v36 = vpop.f32.mrf.mxu0  ;;  %v667_v18 = vpop.f32.mrf.mxu1 }
 0x14a   :  { %v664_v39 = vadd.f32 %v663_v2, %v354_v36  ;;  %v825_v13 = vpop.f32.mrf.mxu2  ;;  %v502_v36 = vand.u32 4294901760, %v501_v62 }
 0x14b   :  { %v1011_v16 = vpop.f32.mrf.mxu3 }
 0x14c   :  { %v826_v40 = vadd.f32 %v825_v13, %v664_v39  ;;  %481 = vmatmul.f32.gmra.mxu0 %v480_v48  ;;  %730 = vmatmul.f32.gmra.mxu1 %v5632_v3  ;;  %v503_v60 = vsub.f32 %v501_v62, %v502_v36 }
 0x14e   :  { %v5640_v49 = vadd.f32 %v1011_v16, %v826_v40  ;;  %909 = vmatmul.f32.gmra.mxu2 %v485_v14  ;;  %v292_v16 = vsel %vm227_vm0, %v216_v23, 0 }
 0x150   :  { %1112 = vmatmul.f32.gmra.mxu3 %v486_v31  ;;  %v509_v31 = vsub.f32 %v289_v63, %v5651_v15 }
 0x151   :  { %v362_v34 = vpop.f32.mrf.mxu0  ;;  %v671_v32 = vpop.f32.mrf.mxu1 }
 0x152   :  { %v668_v35 = vadd.f32 %v667_v18, %v362_v34  ;;  %v830_v45 = vpop.f32.mrf.mxu2  ;;  %v218_v18 = vpop.trf.xlu1  ;;  %v5658_v34 = vand.u32 4294901760, %v292_v16 }
 0x153   :  { %v1017_v56 = vpop.f32.mrf.mxu3 }
 0x154   :  { %v831_v61 = vadd.f32 %v830_v45, %v668_v35  ;;  %489 = vmatmul.f32.gmra.mxu0 %v488_v38  ;;  %734 = vmatmul.f32.gmra.mxu1 %v5637_v44  ;;  %v510_v35 = vand.u32 4294901760, %v509_v31 }
 0x156   :  { %v5647_v29 = vadd.f32 %v1017_v56, %v831_v61  ;;  %914 = vmatmul.f32.gmra.mxu2 %v493_v20  ;;  %v517_v61 = vsub.f32 %v292_v16, %v5658_v34  ;;  %v511_v23 = vsub.f32 %v509_v31, %v510_v35 }
 0x158   :  { %1118 = vmatmul.f32.gmra.mxu3 %v494_v55 }
 0x159   :  { %v370_v2 = vpop.f32.mrf.mxu0  ;;  %v675_v7 = vpop.f32.mrf.mxu1 }
 0x15a   :  { %v672_v9 = vadd.f32 %v671_v32, %v370_v2  ;;  %v835_v14 = vpop.f32.mrf.mxu2  ;;  %v504_v32 = vand.u32 4294901760, %v503_v60  ;;  %v219_v55 = vpop.trf.xlu1 }
 0x15b   :  { %v1023_v39 = vpop.f32.mrf.mxu3 }
 0x15c   :  { %v836_v13 = vadd.f32 %v835_v14, %v672_v9  ;;  %497 = vmatmul.f32.gmra.mxu0 %v496_v24  ;;  %738 = vmatmul.f32.gmra.mxu1 %v5644_v50  ;;  %v512_v14 = vand.u32 4294901760, %v511_v23  ;;  %v518_v24 = vand.u32 4294901760, %v517_v61  ;;  %v5675_v23 = vperm.slane %v5558_v25, 1 }
 0x15e   :  { %v5654_v48 = vadd.f32 %v1023_v39, %v836_v13  ;;  %919 = vmatmul.f32.gmra.mxu2 %v501_v62  ;;  %v295_v62 = vsel %vm227_vm0, %v217_v33, 0  ;;  %v298_v33 = vsel %vm227_vm0, %v218_v18, 0  ;;  %v519_v60 = vsub.f32 %v517_v61, %v518_v24 }
 0x15f   :  { %v5665_v9 = vand.u32 4294901760, %v295_v62  ;;  %vm1526_vm9 = vcmp.eq.s32.totalorder %v5279_v1, %v5675_v23  ;;  %vm1528_vm10 = vcmp.eq.s32.totalorder %v5286_v4, %v5675_v23  ;;  %vm1530_vm11 = vcmp.eq.s32.totalorder %v5293_v8, %v5675_v23 }
 0x160   :  { %1124 = vmatmul.f32.gmra.mxu3 %v502_v36  ;;  %vm1532_vm12 = vcmp.eq.s32.totalorder %v5299_v10, %v5675_v23  ;;  %vm1534_vm13 = vcmp.eq.s32.totalorder %v5305_v12, %v5675_v23  ;;  %vm1536_vm14 = vcmp.eq.s32.totalorder %v5321_v19, %v5675_v23  ;;  %vm1538_vm15 = vcmp.eq.s32.totalorder %v5400_v51, %v5675_v23 }
 0x161   :  { %v378_v40 = vpop.f32.mrf.mxu0  ;;  %v679_v20 = vpop.f32.mrf.mxu1  ;;  %vm1540_vm1 = vcmp.eq.s32.totalorder %v5415_v58, %v5675_v23 }
 0x162   :  { %v676_v30 = vadd.f32 %v675_v7, %v378_v40  ;;  %v840_v27 = vpop.f32.mrf.mxu2  ;;  %v220_v16 = vpop.trf.xlu1 }
 0x163   :  { %v1029_v45 = vpop.f32.mrf.mxu3 }
 0x164   :  { %v841_v38 = vadd.f32 %v840_v27, %v676_v30  ;;  %505 = vmatmul.f32.gmra.mxu0 %v504_v32  ;;  %742 = vmatmul.f32.gmra.mxu1 %v5651_v15  ;;  %v5672_v30 = vand.u32 4294901760, %v298_v33 }
 0x166   :  { %v5661_v56 = vadd.f32 %v1029_v45, %v841_v38  ;;  %924 = vmatmul.f32.gmra.mxu2 %v509_v31  ;;  %v525_v31 = vsub.f32 %v295_v62, %v5665_v9  ;;  %v533_v18 = vsub.f32 %v298_v33, %v5672_v30 }
 0x168   :  { %1130 = vmatmul.f32.gmra.mxu3 %v510_v35  ;;  %v520_v35 = vand.u32 4294901760, %v519_v60  ;;  %v526_v45 = vand.u32 4294901760, %v525_v31 }
 0x169   :  { %v386_v41 = vpop.f32.mrf.mxu0  ;;  %v683_v63 = vpop.f32.mrf.mxu1 }
 0x16a   :  { %v680_v2 = vadd.f32 %v679_v20, %v386_v41  ;;  %v845_v7 = vpop.f32.mrf.mxu2  ;;  %v527_v62 = vsub.f32 %v525_v31, %v526_v45  ;;  %v221_v25 = vpop.trf.xlu1 }
 0x16b   :  { %v1035_v36 = vpop.f32.mrf.mxu3 }
 0x16c   :  { %v846_v39 = vadd.f32 %v845_v7, %v680_v2  ;;  %513 = vmatmul.f32.gmra.mxu0 %v512_v14  ;;  %746 = vmatmul.f32.gmra.mxu1 %v5658_v34  ;;  %v301_v2 = vsel %vm227_vm0, %v219_v55, 0  ;;  %v528_v60 = vand.u32 4294901760, %v527_v62 }
 0x16d   :  { %v5685_v33 = vand.u32 4294901760, %v301_v2 }
 0x16e   :  { %v5668_v13 = vadd.f32 %v1035_v36, %v846_v39  ;;  %929 = vmatmul.f32.gmra.mxu2 %v517_v61 }
 0x170   :  { %1136 = vmatmul.f32.gmra.mxu3 %v518_v24  ;;  %v534_v24 = vand.u32 4294901760, %v533_v18 }
 0x171   :  { %v394_v40 = vpop.f32.mrf.mxu0  ;;  %v687_v20 = vpop.f32.mrf.mxu1 }
 0x172   :  { %v684_v27 = vadd.f32 %v683_v63, %v394_v40  ;;  %v850_v32 = vpop.f32.mrf.mxu2  ;;  %v5032_v63 = vsel %vm1526_vm9, 1.0, %v7714_v5 }
 0x173   :  { %v1041_v38 = vpop.f32.mrf.mxu3  ;;  %1605 = vxpose.xlu0.b32.start [1/8] (short) %v5032_v63, 128 }
 0x174   :  { %v851_v41 = vadd.f32 %v850_v32, %v684_v27  ;;  %521 = vmatmul.f32.gmra.mxu0 %v520_v35  ;;  %750 = vmatmul.f32.gmra.mxu1 %v5665_v9  ;;  %v541_v32 = vsub.f32 %v301_v2, %v5685_v33  ;;  %v5034_v35 = vsel %vm1528_vm10, 1.0, %v7714_v5 }
 0x176   :  { %v5681_v61 = vadd.f32 %v1041_v38, %v851_v41  ;;  %934 = vmatmul.f32.gmra.mxu2 %v525_v31  ;;  %v535_v31 = vsub.f32 %v533_v18, %v534_v24 }
 0x178   :  { %1142 = vmatmul.f32.gmra.mxu3 %v526_v45 }
 0x179   :  { %v402_v7 = vpop.f32.mrf.mxu0  ;;  %v691_v14 = vpop.f32.mrf.mxu1 }
 0x17a   :  { %v688_v36 = vadd.f32 %v687_v20, %v402_v7  ;;  %v855_v39 = vpop.f32.mrf.mxu2  ;;  %v304_v20 = vsel %vm227_vm0, %v220_v16, 0  ;;  %v536_v7 = vand.u32 4294901760, %v535_v31 }
 0x17b   :  { %v1047_v40 = vpop.f32.mrf.mxu3  ;;  %1606 = vxpose.xlu0.b32.cont [2/8] (short) %v5034_v35, 128  ;;  %v5695_v41 = vand.u32 4294901760, %v304_v20 }
 0x17c   :  { %v856_v27 = vadd.f32 %v855_v39, %v688_v36  ;;  %529 = vmatmul.f32.gmra.mxu0 %v528_v60  ;;  %754 = vmatmul.f32.gmra.mxu1 %v5672_v30  ;;  %v542_v36 = vand.u32 4294901760, %v541_v32  ;;  %v222_v39 = vpop.trf.xlu1 }
 0x17d   :  { %v549_v16 = vsub.f32 %v304_v20, %v5695_v41 }
 0x17e   :  { %v5690_v55 = vadd.f32 %v1047_v40, %v856_v27  ;;  %939 = vmatmul.f32.gmra.mxu2 %v533_v18  ;;  %v543_v2 = vsub.f32 %v541_v32, %v542_v36 }
 0x17f   :  { %v550_v35 = vand.u32 4294901760, %v549_v16 }
 0x180   :  { %1148 = vmatmul.f32.gmra.mxu3 %v534_v24  ;;  %v307_v24 = vsel %vm227_vm0, %v221_v25, 0  ;;  %v544_v20 = vand.u32 4294901760, %v543_v2 }
 0x181   :  { %v410_v45 = vpop.f32.mrf.mxu0  ;;  %v695_v38 = vpop.f32.mrf.mxu1 }
 0x182   :  { %v692_v62 = vadd.f32 %v691_v14, %v410_v45  ;;  %v860_v63 = vpop.f32.mrf.mxu2  ;;  %v5036_v14 = vsel %vm1530_vm11, 1.0, %v7714_v5 }
 0x183   :  { %v1053_v60 = vpop.f32.mrf.mxu3  ;;  %1607 = vxpose.xlu0.b32.cont [3/8] (short) %v5036_v14, 128 }
 0x184   :  { %v861_v40 = vadd.f32 %v860_v63, %v692_v62  ;;  %537 = vmatmul.f32.gmra.mxu0 %v536_v7  ;;  %758 = vmatmul.f32.gmra.mxu1 %v5685_v33  ;;  %v5705_v63 = vand.u32 4294901760, %v307_v24 }
 0x186   :  { %v5701_v18 = vadd.f32 %v1053_v60, %v861_v40  ;;  %944 = vmatmul.f32.gmra.mxu2 %v541_v32  ;;  %v223_v32 = vpop.trf.xlu1  ;;  %v551_v60 = vsub.f32 %v549_v16, %v550_v35  ;;  %v5038_v40 = vsel %vm1532_vm12, 1.0, %v7714_v5 }
 0x188   :  { %1154 = vmatmul.f32.gmra.mxu3 %v542_v36  ;;  %v557_v36 = vsub.f32 %v307_v24, %v5705_v63 }
 0x189   :  { %v418_v27 = vpop.f32.mrf.mxu0  ;;  %v699_v31 = vpop.f32.mrf.mxu1 }
 0x18a   :  { %v696_v45 = vadd.f32 %v695_v38, %v418_v27  ;;  %v865_v62 = vpop.f32.mrf.mxu2  ;;  %v310_v38 = vsel %vm227_vm0, %v222_v39, 0  ;;  %v558_v0 = vand.u32 4294901760, %v557_v36 }
 0x18b   :  { %v1059_v7 = vpop.f32.mrf.mxu3  ;;  %1608 = vxpose.xlu0.b32.cont [4/8] (short) %v5038_v40, 128  ;;  %v5715_v27 = vand.u32 4294901760, %v310_v38 }
 0x18c   :  { %v866_v8 = vadd.f32 %v865_v62, %v696_v45  ;;  %545 = vmatmul.f32.gmra.mxu0 %v544_v20  ;;  %762 = vmatmul.f32.gmra.mxu1 %v5695_v41  ;;  %v552_v20 = vand.u32 4294901760, %v551_v60  ;;  %v559_v24 = vsub.f32 %v557_v36, %v558_v0 }
 0x18d   :  { %7858 = vst [vmem:[#allocation18_spill] sm:$0xff] %v5715_v27 }
 0x18e   :  { %v5710_v25 = vadd.f32 %v1059_v7, %v866_v8  ;;  %949 = vmatmul.f32.gmra.mxu2 %v549_v16  ;;  %v565_v16 = vsub.f32 %v310_v38, %v5715_v27  ;;  %v313_v8 = vsel %vm227_vm0, %v223_v32, 0 }
 0x18f   :  { %v5725_v38 = vand.u32 4294901760, %v313_v8 }
 0x190   :  { %1160 = vmatmul.f32.gmra.mxu3 %v550_v35  ;;  %v224_v35 = vpop.trf.xlu1 }
 0x191   :  { %v426_v2 = vpop.f32.mrf.mxu0  ;;  %v703_v14 = vpop.f32.mrf.mxu1  ;;  %7859 = vst [vmem:[#allocation19_spill] sm:$0xff] %v5725_v38 }
 0x192   :  { %v700_v45 = vadd.f32 %v699_v31, %v426_v2  ;;  %v870_v62 = vpop.f32.mrf.mxu2  ;;  %v5040_v31 = vsel %vm1534_vm13, 1.0, %v7714_v5  ;;  %v566_v2 = vand.u32 4294901760, %v565_v16  ;;  %vm4988_vm13 = vcmask 1040384  }
 0x193   :  { %v1065_v10 = vpop.f32.mrf.mxu3  ;;  %1609 = vxpose.xlu0.b32.cont [5/8] (short) %v5040_v31, 128  ;;  %v5042_v31 = vsel %vm1536_vm14, 1.0, %v7714_v5 }
 0x194   :  { %v871_v7 = vadd.f32 %v870_v62, %v700_v45  ;;  %553 = vmatmul.f32.gmra.mxu0 %v552_v20  ;;  %766 = vmatmul.f32.gmra.mxu1 %v5705_v63  ;;  %v560_v20 = vand.u32 4294901760, %v559_v24 }
 0x196   :  { %v5721_v39 = vadd.f32 %v1065_v10, %v871_v7  ;;  %954 = vmatmul.f32.gmra.mxu2 %v557_v36  ;;  %v1589_v10 = vpop.trf.xlu2  ;;  %v567_v36 = vsub.f32 %v565_v16, %v566_v2 }
 0x198   :  { %1166 = vmatmul.f32.gmra.mxu3 %v558_v0  ;;  %v573_v0 = vsub.f32 %v313_v8, %v5725_v38  ;;  %v225_v24 = vpop.trf.xlu1  ;;  %v568_v1 = vand.u32 4294901760, %v567_v36 }
 0x199   :  { %v434_v60 = vpop.f32.mrf.mxu0  ;;  %v707_v40 = vpop.f32.mrf.mxu1 }
 0x19a   :  { %v704_v45 = vadd.f32 %v703_v14, %v434_v60  ;;  %v875_v62 = vpop.f32.mrf.mxu2  ;;  %v316_v14 = vsel %vm227_vm0, %v224_v35, 0  ;;  %v574_v19 = vand.u32 4294901760, %v573_v0 }
 0x19b   :  { %v1071_v12 = vpop.f32.mrf.mxu3  ;;  %1610 = vxpose.xlu0.b32.cont [6/8] (short) %v5042_v31, 128 }
 0x19c   :  { %v876_v7 = vadd.f32 %v875_v62, %v704_v45  ;;  %561 = vmatmul.f32.gmra.mxu0 %v560_v20  ;;  %770 = vmatmul.f32.gmra.mxu1 %v5715_v27  ;;  %v5735_v62 = vand.u32 4294901760, %v316_v14  ;;  %v575_v8 = vsub.f32 %v573_v0, %v574_v19 }
 0x19e   :  { %v5730_v32 = vadd.f32 %v1071_v12, %v876_v7  ;;  %959 = vmatmul.f32.gmra.mxu2 %v565_v16  ;;  %7860 = vst [vmem:[#allocation20_spill] sm:$0xff] %v5735_v62  ;;  %v1590_v7 = vpop.trf.xlu2  ;;  %v581_v16 = vsub.f32 %v316_v14, %v5735_v62  ;;  %v576_v14 = vand.u32 4294901760, %v575_v8  ;;  %v5046_v8 = vsel %vm1540_vm1, 1.0, %v7714_v5 }
 0x1a0   :  { %1172 = vmatmul.f32.gmra.mxu3 %v566_v2  ;;  %v319_v2 = vsel %vm227_vm0, %v225_v24, 0 }
 0x1a1   :  { %v442_v60 = vpop.f32.mrf.mxu0  ;;  %v711_v45 = vpop.f32.mrf.mxu1 }
 0x1a2   :  { %v708_v20 = vadd.f32 %v707_v40, %v442_v60  ;;  %v880_v4 = vpop.f32.mrf.mxu2  ;;  %v5044_v40 = vsel %vm1538_vm15, 1.0, %v7714_v5 }
 0x1a3   :  { %v1077_v12 = vpop.f32.mrf.mxu3  ;;  %1611 = vxpose.xlu0.b32.cont [7/8] (short) %v5044_v40, 128  ;;  %v1638_v40 = vsel %vm227_vm0, %v1589_v10, 0 }
 0x1a4   :  { %v881_v27 = vadd.f32 %v880_v4, %v708_v20  ;;  %569 = vmatmul.f32.gmra.mxu0 %v568_v1  ;;  %774 = vmatmul.f32.gmra.mxu1 %v5725_v38  ;;  %v582_v1 = vand.u32 4294901760, %v581_v16  ;;  %v5745_v20 = vand.u32 4294901760, %v319_v2  ;;  %v226_v38 = vpop.trf.xlu1 }
 0x1a6   :  { %v5741_v35 = vadd.f32 %v1077_v12, %v881_v27  ;;  %964 = vmatmul.f32.gmra.mxu2 %v573_v0  ;;  %7862 = vst [vmem:[#allocation22_spill] sm:$0xff] %v5745_v20  ;;  %v1591_v27 = vpop.trf.xlu2  ;;  %v583_v0 = vsub.f32 %v581_v16, %v582_v1 }
 0x1a8   :  { %7861 = vst [vmem:[#allocation21_spill] sm:$0xff] %v5741_v35  ;;  %1178 = vmatmul.f32.gmra.mxu3 %v574_v19  ;;  %v589_v19 = vsub.f32 %v319_v2, %v5745_v20  ;;  %v584_v58 = vand.u32 4294901760, %v583_v0  ;;  %v1641_v0 = vsel %vm227_vm0, %v1590_v7, 0 }
 0x1a9   :  { %v450_v36 = vpop.f32.mrf.mxu0  ;;  %v715_v4 = vpop.f32.mrf.mxu1 }
 0x1aa   :  { %v712_v31 = vadd.f32 %v711_v45, %v450_v36  ;;  %v885_v60 = vpop.f32.mrf.mxu2  ;;  %v322_v45 = vsel %vm227_vm0, %v226_v38, 0  ;;  %v590_v23 = vand.u32 4294901760, %v589_v19 }
 0x1ab   :  { %v1083_v51 = vpop.f32.mrf.mxu3  ;;  %1612 = vxpose.xlu0.b32.end [8/8] (short) %v5046_v8, 128 }
 0x1ac   :  { %v886_v12 = vadd.f32 %v885_v60, %v712_v31  ;;  %577 = vmatmul.f32.gmra.mxu0 %v576_v14  ;;  %778 = vmatmul.f32.gmra.mxu1 %v5735_v62  ;;  %v5756_v60 = vand.u32 4294901760, %v322_v45 }
 0x1ae   :  { %v5750_v24 = vadd.f32 %v1083_v51, %v886_v12  ;;  %969 = vmatmul.f32.gmra.mxu2 %v581_v16  ;;  %7864 = vst [vmem:[#allocation24_spill] sm:$0xff] %v5756_v60  ;;  %v5758_v51 = vand.u32 4294901760, %v1638_v40  ;;  %v1592_v16 = vpop.trf.xlu2  ;;  %v597_v38 = vsub.f32 %v322_v45, %v5756_v60 }
 0x1b0   :  { %7863 = vst [vmem:[#allocation23_spill] sm:$0xff] %v5750_v24  ;;  %1184 = vmatmul.f32.gmra.mxu3 %v582_v1  ;;  %v5765_v1 = vsub.f32 %v1638_v40, %v5758_v51  ;;  %v598_v5 = vand.u32 4294901760, %v597_v38 }
 0x1b1   :  { %v458_v36 = vpop.f32.mrf.mxu0  ;;  %v719_v31 = vpop.f32.mrf.mxu1 }
 0x1b2   :  { %v716_v14 = vadd.f32 %v715_v4, %v458_v36  ;;  %v890_v62 = vpop.f32.mrf.mxu2  ;;  %v591_v4 = vsub.f32 %v589_v19, %v590_v23 }
 0x1b3   :  { %v1089_v2 = vpop.f32.mrf.mxu3 }
 0x1b4   :  { %v891_v12 = vadd.f32 %v890_v62, %v716_v14  ;;  %585 = vmatmul.f32.gmra.mxu0 %v584_v58  ;;  %782 = vmatmul.f32.gmra.mxu1 %v5745_v20  ;;  %v7720_v14 = vand.u32 4294901760, %v5765_v1  ;;  %v592_v58 = vand.u32 4294901760, %v591_v4  ;;  %v5769_v20 = vand.u32 4294901760, %v1641_v0 }
 0x1b6   :  { %v5762_v10 = vadd.f32 %v1089_v2, %v891_v12  ;;  %974 = vmatmul.f32.gmra.mxu2 %v589_v19  ;;  %7866 = vst [vmem:[#allocation26_spill] sm:$0xff] %v5769_v20  ;;  %v1593_v2 = vpop.trf.xlu2  ;;  %v599_v19 = vsub.f32 %v597_v38, %v598_v5  ;;  %v1760_v7 = vsub.f32 %v5765_v1, %v7720_v14 }
 0x1b8   :  { %7865 = vst [vmem:[#allocation25_spill] sm:$0xff] %v5762_v10  ;;  %1190 = vmatmul.f32.gmra.mxu3 %v590_v23  ;;  %v1644_v23 = vsel %vm227_vm0, %v1591_v27, 0 }
 0x1b9   :  { %v466_v8 = vpop.f32.mrf.mxu0  ;;  %v723_v36 = vpop.f32.mrf.mxu1  ;;  %v5782_v35 = vand.u32 4294901760, %v1644_v23 }
 0x1ba   :  { %v720_v24 = vadd.f32 %v719_v31, %v466_v8  ;;  %v895_v62 = vpop.f32.mrf.mxu2  ;;  %v5778_v31 = vsub.f32 %v1641_v0, %v5769_v20  ;;  %v1647_v0 = vsel %vm227_vm0, %v1592_v16, 0 }
 0x1bb   :  { %v1095_v45 = vpop.f32.mrf.mxu3 }
 0x1bc   :  { %v896_v12 = vadd.f32 %v895_v62, %v720_v24  ;;  %593 = vmatmul.f32.gmra.mxu0 %v592_v58  ;;  %786 = vmatmul.f32.gmra.mxu1 %v5756_v60  ;;  %v600_v24 = vand.u32 4294901760, %v599_v19  ;;  %v1761_v62 = vand.u32 4294901760, %v1760_v7  ;;  %v7721_v10 = vand.u32 4294901760, %v5778_v31 }
 0x1be   :  { %v5775_v40 = vadd.f32 %v1095_v45, %v896_v12  ;;  %979 = vmatmul.f32.gmra.mxu2 %v597_v38  ;;  %v1594_v45 = vpop.trf.xlu2  ;;  %v1768_v27 = vsub.f32 %v5778_v31, %v7721_v10 }
 0x1c0   :  { %1196 = vmatmul.f32.gmra.mxu3 %v598_v5  ;;  %v5788_v5 = vsub.f32 %v1644_v23, %v5782_v35 }
 0x1c1   :  { %v474_v4 = vpop.f32.mrf.mxu0  ;;  %v727_v8 = vpop.f32.mrf.mxu1 }
 0x1c2   :  { %v724_v58 = vadd.f32 %v723_v36, %v474_v4  ;;  %v900_v60 = vpop.f32.mrf.mxu2  ;;  %7867 = vst [vmem:[#allocation27_spill] sm:$0xff] %v5788_v5  ;;  %v7722_v4 = vand.u32 4294901760, %v5788_v5 }
 0x1c3   :  { %v1101_v14 = vpop.f32.mrf.mxu3 }
 0x1c4   :  { %v901_v12 = vadd.f32 %v900_v60, %v724_v58  ;;  %601 = vmatmul.f32.gmra.mxu0 %v600_v24  ;;  %1394 = vmatmul.f32.vlgmr.msrb.gmra.mxu1 %v5487_v37  ;;  %v5796_v24 = vand.u32 4294901760, %v1647_v0 }
 0x1c6   :  { %v5785_v38 = vadd.f32 %v1101_v14, %v901_v12  ;;  %1762 = vmatmul.f32.vlgmr.msrb.gmra.mxu2 %v1761_v62  ;;  %v1769_v14 = vand.u32 4294901760, %v1768_v27  ;;  %v1595_v23 = vpop.trf.xlu2  ;;  %v5803_v16 = vsub.f32 %v1647_v0, %v5796_v24  ;;  %v1650_v27 = vsel %vm227_vm0, %v1593_v2, 0 }
 0x1c8   :  { %2071 = vmatmul.f32.vlgmr.msrb.gmra.mxu3 %v5758_v51  ;;  %7868 = vst [vmem:[#allocation28_spill] sm:$0xff] %v5803_v16  ;;  %v7727_v10 = vand.u32 4294901760, %v5803_v16 }
 0x1c9   :  { %v482_v36 = vpop.f32.mrf.mxu0  ;;  %v731_v19 = vpop.f32.mrf.mxu1 }
 0x1ca   :  { %v728_v60 = vadd.f32 %v727_v8, %v482_v36  ;;  %v905_v7 = vpop.f32.mrf.mxu2  ;;  %v1776_v8 = vsub.f32 %v5788_v5, %v7722_v4 }
 0x1cb   :  { %v1107_v62 = vpop.f32.mrf.mxu3 }
 0x1cc   :  { %v906_v58 = vadd.f32 %v905_v7, %v728_v60  ;;  %1241 = vmatmul.f32.vlgmr.msrb.gmra.mxu0 %v5487_v37  ;;  %1398 = vmatmul.f32.gmra.mxu1 %v5497_v47 }
 0x1ce   :  { %v5800_v12 = vadd.f32 %v1107_v62, %v906_v58  ;;  %1770 = vmatmul.f32.gmra.mxu2 %v1769_v14  ;;  %v1777_v62 = vand.u32 4294901760, %v1776_v8  ;;  %v5811_v58 = vand.u32 4294901760, %v1650_v27  ;;  %v1596_v4 = vpop.trf.xlu2  ;;  %v1653_v8 = vsel %vm227_vm0, %v1594_v45, 0 }
 0x1d0   :  { %2075 = vmatmul.f32.gmra.mxu3 %v5769_v20  ;;  %v5818_v2 = vsub.f32 %v1650_v27, %v5811_v58 }
 0x1d1   :  { %v490_v36 = vpop.f32.mrf.mxu0  ;;  %v735_v60 = vpop.f32.mrf.mxu1 }
 0x1d2   :  { %v732_v7 = vadd.f32 %v731_v19, %v490_v36  ;;  %v910_v37 = vpop.f32.mrf.mxu2  ;;  %7869 = vst [vmem:[#allocation29_spill] sm:$0xff] %v5818_v2  ;;  %v1784_v19 = vsub.f32 %v5803_v16, %v7727_v10  ;;  %v7730_v20 = vand.u32 4294901760, %v5818_v2 }
 0x1d3   :  { %v1113_v14 = vpop.f32.mrf.mxu3 }
 0x1d4   :  { %v911_v0 = vadd.f32 %v910_v37, %v732_v7  ;;  %1245 = vmatmul.f32.gmra.mxu0 %v5497_v47  ;;  %1402 = vmatmul.f32.gmra.mxu1 %v5513_v17 }
 0x1d6   :  { %v5815_v5 = vadd.f32 %v1113_v14, %v911_v0  ;;  %1778 = vmatmul.f32.gmra.mxu2 %v1777_v62  ;;  %v1785_v14 = vand.u32 4294901760, %v1784_v19  ;;  %v5826_v0 = vand.u32 4294901760, %v1653_v8  ;;  %v1656_v19 = vsel %vm227_vm0, %v1595_v23, 0 }
 0x1d8   :  { %2079 = vmatmul.f32.gmra.mxu3 %v5782_v35  ;;  %v5833_v45 = vsub.f32 %v1653_v8, %v5826_v0 }
 0x1d9   :  { %v498_v36 = vpop.f32.mrf.mxu0  ;;  %v739_v7 = vpop.f32.mrf.mxu1 }
 0x1da   :  { %v736_v47 = vadd.f32 %v735_v60, %v498_v36  ;;  %v915_v37 = vpop.f32.mrf.mxu2  ;;  %7871 = vst [vmem:[#allocation31_spill] sm:$0xff] %v5833_v45  ;;  %v1792_v60 = vsub.f32 %v5818_v2, %v7730_v20  ;;  %v1597_v36 = vpop.trf.xlu2 }
 0x1db   :  { %v1119_v62 = vpop.f32.mrf.mxu3 }
 0x1dc   :  { %v916_v27 = vadd.f32 %v915_v37, %v736_v47  ;;  %1249 = vmatmul.f32.gmra.mxu0 %v5513_v17  ;;  %1406 = vmatmul.f32.gmra.mxu1 %v5530_v28 }
 0x1de   :  { %v5830_v10 = vadd.f32 %v1119_v62, %v916_v27  ;;  %1786 = vmatmul.f32.gmra.mxu2 %v1785_v14  ;;  %v7733_v62 = vand.u32 4294901760, %v5833_v45  ;;  %v1793_v27 = vand.u32 4294901760, %v1792_v60  ;;  %v5841_v14 = vand.u32 4294901760, %v1656_v19 }
 0x1df   :  { %v1659_v60 = vsel %vm227_vm0, %v1596_v4, 0 }
 0x1e0   :  { %7870 = vst [vmem:[#allocation30_spill] sm:$0xff] %v5830_v10  ;;  %2083 = vmatmul.f32.gmra.mxu3 %v5796_v24  ;;  %v5848_v23 = vsub.f32 %v1656_v19, %v5841_v14 }
 0x1e1   :  { %v506_v47 = vpop.f32.mrf.mxu0  ;;  %v743_v37 = vpop.f32.mrf.mxu1  ;;  %7872 = vst [vmem:[#allocation32_spill] sm:$0xff] %v5841_v14 }
 0x1e2   :  { %v740_v17 = vadd.f32 %v739_v7, %v506_v47  ;;  %v920_v16 = vpop.f32.mrf.mxu2  ;;  %7874 = vst [vmem:[#allocation34_spill] sm:$0xff] %v5848_v23  ;;  %v1800_v7 = vsub.f32 %v5833_v45, %v7733_v62  ;;  %v1598_v47 = vpop.trf.xlu2 }
 0x1e3   :  { %v1125_v8 = vpop.f32.mrf.mxu3 }
 0x1e4   :  { %v921_v10 = vadd.f32 %v920_v16, %v740_v17  ;;  %1253 = vmatmul.f32.gmra.mxu0 %v5530_v28  ;;  %1410 = vmatmul.f32.gmra.mxu1 %v5539_v52 }
 0x1e6   :  { %v5845_v20 = vadd.f32 %v1125_v8, %v921_v10  ;;  %1794 = vmatmul.f32.gmra.mxu2 %v1793_v27  ;;  %v7736_v10 = vand.u32 4294901760, %v5848_v23  ;;  %v1801_v8 = vand.u32 4294901760, %v1800_v7  ;;  %v5856_v27 = vand.u32 4294901760, %v1659_v60 }
 0x1e7   :  { %v1662_v7 = vsel %vm227_vm0, %v1597_v36, 0 }
 0x1e8   :  { %7873 = vst [vmem:[#allocation33_spill] sm:$0xff] %v5845_v20  ;;  %2087 = vmatmul.f32.gmra.mxu3 %v5811_v58  ;;  %v5863_v4 = vsub.f32 %v1659_v60, %v5856_v27 }
 0x1e9   :  { %v514_v16 = vpop.f32.mrf.mxu0  ;;  %v747_v17 = vpop.f32.mrf.mxu1 }
 0x1ea   :  { %v744_v28 = vadd.f32 %v743_v37, %v514_v16  ;;  %v925_v2 = vpop.f32.mrf.mxu2  ;;  %7876 = vst [vmem:[#allocation36_spill] sm:$0xff] %v5863_v4  ;;  %v1808_v37 = vsub.f32 %v5848_v23, %v7736_v10  ;;  %v7739_v45 = vand.u32 4294901760, %v5863_v4 }
 0x1eb   :  { %v1131_v19 = vpop.f32.mrf.mxu3 }
 0x1ec   :  { %v926_v20 = vadd.f32 %v925_v2, %v744_v28  ;;  %1257 = vmatmul.f32.gmra.mxu0 %v5539_v52  ;;  %1414 = vmatmul.f32.gmra.mxu1 %v5544_v59 }
 0x1ee   :  { %v5860_v62 = vadd.f32 %v1131_v19, %v926_v20  ;;  %1802 = vmatmul.f32.gmra.mxu2 %v1801_v8  ;;  %v1809_v20 = vand.u32 4294901760, %v1808_v37  ;;  %v5871_v19 = vand.u32 4294901760, %v1662_v7  ;;  %v1599_v8 = vpop.trf.xlu2  ;;  %v1665_v37 = vsel %vm227_vm0, %v1598_v47, 0 }
 0x1f0   :  { %7875 = vst [vmem:[#allocation35_spill] sm:$0xff] %v5860_v62  ;;  %2091 = vmatmul.f32.gmra.mxu3 %v5826_v0  ;;  %v5878_v36 = vsub.f32 %v1662_v7, %v5871_v19 }
 0x1f1   :  { %v522_v16 = vpop.f32.mrf.mxu0  ;;  %v751_v2 = vpop.f32.mrf.mxu1 }
 0x1f2   :  { %v748_v28 = vadd.f32 %v747_v17, %v522_v16  ;;  %v930_v52 = vpop.f32.mrf.mxu2  ;;  %7877 = vst [vmem:[#allocation37_spill] sm:$0xff] %v5878_v36  ;;  %v1816_v17 = vsub.f32 %v5863_v4, %v7739_v45  ;;  %v7744_v23 = vand.u32 4294901760, %v5878_v36 }
 0x1f3   :  { %v1137_v60 = vpop.f32.mrf.mxu3 }
 0x1f4   :  { %v931_v62 = vadd.f32 %v930_v52, %v748_v28  ;;  %1261 = vmatmul.f32.gmra.mxu0 %v5544_v59  ;;  %1418 = vmatmul.f32.gmra.mxu1 %v5549_v6 }
 0x1f6   :  { %v5875_v10 = vadd.f32 %v1137_v60, %v931_v62  ;;  %1810 = vmatmul.f32.gmra.mxu2 %v1809_v20  ;;  %v1817_v62 = vand.u32 4294901760, %v1816_v17  ;;  %v5886_v60 = vand.u32 4294901760, %v1665_v37  ;;  %v1600_v45 = vpop.trf.xlu2  ;;  %v1668_v17 = vsel %vm227_vm0, %v1599_v8, 0 }
 0x1f8   :  { %2095 = vmatmul.f32.gmra.mxu3 %v5841_v14  ;;  %7878 = vst [vmem:[#allocation38_spill] sm:$0xff] %v5886_v60  ;;  %v5893_v47 = vsub.f32 %v1665_v37, %v5886_v60 }
 0x1f9   :  { %v530_v16 = vpop.f32.mrf.mxu0  ;;  %v755_v28 = vpop.f32.mrf.mxu1 }
 0x1fa   :  { %v752_v52 = vadd.f32 %v751_v2, %v530_v16  ;;  %v935_v59 = vpop.f32.mrf.mxu2  ;;  %7879 = vst [vmem:[#allocation39_spill] sm:$0xff] %v5893_v47  ;;  %v1824_v2 = vsub.f32 %v5878_v36, %v7744_v23  ;;  %v7747_v14 = vand.u32 4294901760, %v5893_v47 }
 0x1fb   :  { %v1143_v20 = vpop.f32.mrf.mxu3 }
 0x1fc   :  { %v936_v7 = vadd.f32 %v935_v59, %v752_v52  ;;  %1265 = vmatmul.f32.gmra.mxu0 %v5549_v6  ;;  %1422 = vmatmul.f32.gmra.mxu1 %v5554_v22 }
 0x1fe   :  { %v5890_v4 = vadd.f32 %v1143_v20, %v936_v7  ;;  %1818 = vmatmul.f32.gmra.mxu2 %v1817_v62  ;;  %v1825_v20 = vand.u32 4294901760, %v1824_v2  ;;  %v5901_v7 = vand.u32 4294901760, %v1668_v17  ;;  %v1671_v2 = vsel %vm227_vm0, %v1600_v45, 0 }
 0x200   :  { %2099 = vmatmul.f32.gmra.mxu3 %v5856_v27  ;;  %v5908_v8 = vsub.f32 %v1668_v17, %v5901_v7 }
 0x201   :  { %v538_v16 = vpop.f32.mrf.mxu0  ;;  %v759_v52 = vpop.f32.mrf.mxu1 }
 0x202   :  { %v756_v6 = vadd.f32 %v755_v28, %v538_v16  ;;  %v940_v59 = vpop.f32.mrf.mxu2  ;;  %7881 = vst [vmem:[#allocation41_spill] sm:$0xff] %v5908_v8  ;;  %v1832_v28 = vsub.f32 %v5893_v47, %v7747_v14  ;;  %v1601_v16 = vpop.trf.xlu2 }
 0x203   :  { %v1149_v62 = vpop.f32.mrf.mxu3 }
 0x204   :  { %v941_v37 = vadd.f32 %v940_v59, %v756_v6  ;;  %1269 = vmatmul.f32.gmra.mxu0 %v5554_v22  ;;  %1426 = vmatmul.f32.gmra.mxu1 %v5567_v46 }
 0x206   :  { %v5905_v23 = vadd.f32 %v1149_v62, %v941_v37  ;;  %1826 = vmatmul.f32.gmra.mxu2 %v1825_v20  ;;  %v7750_v62 = vand.u32 4294901760, %v5908_v8  ;;  %v1833_v37 = vand.u32 4294901760, %v1832_v28  ;;  %v5916_v20 = vand.u32 4294901760, %v1671_v2 }
 0x207   :  { %v1674_v28 = vsel %vm227_vm0, %v1601_v16, 0 }
 0x208   :  { %7880 = vst [vmem:[#allocation40_spill] sm:$0xff] %v5905_v23  ;;  %2103 = vmatmul.f32.gmra.mxu3 %v5871_v19  ;;  %v5923_v45 = vsub.f32 %v1671_v2, %v5916_v20 }
 0x209   :  { %v546_v6 = vpop.f32.mrf.mxu0  ;;  %v763_v59 = vpop.f32.mrf.mxu1  ;;  %7882 = vst [vmem:[#allocation42_spill] sm:$0xff] %v5916_v20 }
 0x20a   :  { %v760_v22 = vadd.f32 %v759_v52, %v546_v6  ;;  %v945_v36 = vpop.f32.mrf.mxu2  ;;  %7884 = vst [vmem:[#allocation44_spill] sm:$0xff] %v5923_v45  ;;  %v1840_v52 = vsub.f32 %v5908_v8, %v7750_v62  ;;  %v1602_v6 = vpop.trf.xlu2 }
 0x20b   :  { %v1155_v17 = vpop.f32.mrf.mxu3 }
 0x20c   :  { %v946_v23 = vadd.f32 %v945_v36, %v760_v22  ;;  %1273 = vmatmul.f32.gmra.mxu0 %v5567_v46  ;;  %1430 = vmatmul.f32.gmra.mxu1 %v5575_v21 }
 0x20e   :  { %v5920_v14 = vadd.f32 %v1155_v17, %v946_v23  ;;  %1834 = vmatmul.f32.gmra.mxu2 %v1833_v37  ;;  %v7755_v23 = vand.u32 4294901760, %v5923_v45  ;;  %v1841_v17 = vand.u32 4294901760, %v1840_v52  ;;  %v5931_v37 = vand.u32 4294901760, %v1674_v28 }
 0x20f   :  { %v1677_v52 = vsel %vm227_vm0, %v1602_v6, 0 }
 0x210   :  { %7883 = vst [vmem:[#allocation43_spill] sm:$0xff] %v5920_v14  ;;  %2107 = vmatmul.f32.gmra.mxu3 %v5886_v60  ;;  %v5938_v16 = vsub.f32 %v1674_v28, %v5931_v37 }
 0x211   :  { %v554_v36 = vpop.f32.mrf.mxu0  ;;  %v767_v22 = vpop.f32.mrf.mxu1 }
 0x212   :  { %v764_v46 = vadd.f32 %v763_v59, %v554_v36  ;;  %v950_v47 = vpop.f32.mrf.mxu2  ;;  %7886 = vst [vmem:[#allocation46_spill] sm:$0xff] %v5938_v16  ;;  %v1848_v59 = vsub.f32 %v5923_v45, %v7755_v23  ;;  %v7758_v8 = vand.u32 4294901760, %v5938_v16 }
 0x213   :  { %v1161_v2 = vpop.f32.mrf.mxu3 }
 0x214   :  { %v951_v14 = vadd.f32 %v950_v47, %v764_v46  ;;  %1277 = vmatmul.f32.gmra.mxu0 %v5575_v21  ;;  %1434 = vmatmul.f32.gmra.mxu1 %v5583_v42 }
 0x216   :  { %v5935_v62 = vadd.f32 %v1161_v2, %v951_v14  ;;  %1842 = vmatmul.f32.gmra.mxu2 %v1841_v17  ;;  %v1849_v14 = vand.u32 4294901760, %v1848_v59  ;;  %v5946_v2 = vand.u32 4294901760, %v1677_v52  ;;  %v1603_v17 = vpop.trf.xlu2 }
 0x217   :  { %v1680_v59 = vsel %vm227_vm0, %v1603_v17, 0 }
 0x218   :  { %7885 = vst [vmem:[#allocation45_spill] sm:$0xff] %v5935_v62  ;;  %2111 = vmatmul.f32.gmra.mxu3 %v5901_v7  ;;  %v1621_v62 = vpop.trf.xlu0  ;;  %v5953_v23 = vsub.f32 %v1677_v52, %v5946_v2 }
 0x219   :  { %v562_v36 = vpop.f32.mrf.mxu0  ;;  %v771_v47 = vpop.f32.mrf.mxu1 }
 0x21a   :  { %v768_v46 = vadd.f32 %v767_v22, %v562_v36  ;;  %v955_v21 = vpop.f32.mrf.mxu2  ;;  %7888 = vst [vmem:[#allocation48_spill] sm:$0xff] %v5953_v23  ;;  %v1856_v22 = vsub.f32 %v5938_v16, %v7758_v8  ;;  %v7763_v45 = vand.u32 4294901760, %v5953_v23 }
 0x21b   :  { %v1167_v28 = vpop.f32.mrf.mxu3 }
 0x21c   :  { %v956_v60 = vadd.f32 %v955_v21, %v768_v46  ;;  %1281 = vmatmul.f32.gmra.mxu0 %v5583_v42  ;;  %1438 = vmatmul.f32.gmra.mxu1 %v5591_v57 }
 0x21e   :  { %v5950_v6 = vadd.f32 %v1167_v28, %v956_v60  ;;  %1850 = vmatmul.f32.gmra.mxu2 %v1849_v14  ;;  %v1857_v60 = vand.u32 4294901760, %v1856_v22  ;;  %v5961_v28 = vand.u32 4294901760, %v1680_v59  ;;  %v1604_v8 = vpop.trf.xlu2 }
 0x21f   :  { %v1683_v22 = vsel %vm227_vm0, %v1604_v8, 0 }
 0x220   :  { %7887 = vst [vmem:[#allocation47_spill] sm:$0xff] %v5950_v6  ;;  %2115 = vmatmul.f32.gmra.mxu3 %v5916_v20  ;;  %v1622_v52 = vpop.trf.xlu0  ;;  %v5968_v16 = vsub.f32 %v1680_v59, %v5961_v28 }
 0x221   :  { %v570_v36 = vpop.f32.mrf.mxu0  ;;  %v775_v46 = vpop.f32.mrf.mxu1 }
 0x222   :  { %v772_v21 = vadd.f32 %v771_v47, %v570_v36  ;;  %v960_v42 = vpop.f32.mrf.mxu2  ;;  %7890 = vst [vmem:[#allocation50_spill] sm:$0xff] %v5968_v16  ;;  %v1864_v47 = vsub.f32 %v5953_v23, %v7763_v45  ;;  %v7766_v20 = vand.u32 4294901760, %v5968_v16 }
 0x223   :  { %v1173_v14 = vpop.f32.mrf.mxu3 }
 0x224   :  { %v961_v6 = vadd.f32 %v960_v42, %v772_v21  ;;  %1285 = vmatmul.f32.gmra.mxu0 %v5591_v57  ;;  %1442 = vmatmul.f32.gmra.mxu1 %v5599_v11 }
 0x226   :  { %v5965_v17 = vadd.f32 %v1173_v14, %v961_v6  ;;  %1858 = vmatmul.f32.gmra.mxu2 %v1857_v60  ;;  %v1865_v6 = vand.u32 4294901760, %v1864_v47  ;;  %v5976_v14 = vand.u32 4294901760, %v1683_v22  ;;  %v1686_v47 = vsel %vm227_vm0, %v1621_v62, 0 }
 0x228   :  { %7889 = vst [vmem:[#allocation49_spill] sm:$0xff] %v5965_v17  ;;  %2119 = vmatmul.f32.gmra.mxu3 %v5931_v37  ;;  %v1623_v59 = vpop.trf.xlu0  ;;  %v5983_v8 = vsub.f32 %v1683_v22, %v5976_v14 }
 0x229   :  { %v578_v36 = vpop.f32.mrf.mxu0  ;;  %v779_v21 = vpop.f32.mrf.mxu1  ;;  %7891 = vst [vmem:[#allocation51_spill] sm:$0xff] %v5976_v14 }
 0x22a   :  { %v776_v57 = vadd.f32 %v775_v46, %v578_v36  ;;  %v965_v42 = vpop.f32.mrf.mxu2  ;;  %7893 = vst [vmem:[#allocation53_spill] sm:$0xff] %v5983_v8  ;;  %v1872_v46 = vsub.f32 %v5968_v16, %v7766_v20  ;;  %v7769_v23 = vand.u32 4294901760, %v5983_v8 }
 0x22b   :  { %v1179_v60 = vpop.f32.mrf.mxu3 }
 0x22c   :  { %v966_v17 = vadd.f32 %v965_v42, %v776_v57  ;;  %1289 = vmatmul.f32.gmra.mxu0 %v5599_v11  ;;  %1446 = vmatmul.f32.gmra.mxu1 %v5607_v43 }
 0x22e   :  { %v5980_v45 = vadd.f32 %v1179_v60, %v966_v17  ;;  %1866 = vmatmul.f32.gmra.mxu2 %v1865_v6  ;;  %v1873_v17 = vand.u32 4294901760, %v1872_v46  ;;  %v5991_v60 = vand.u32 4294901760, %v1686_v47  ;;  %v1689_v46 = vsel %vm227_vm0, %v1622_v52, 0 }
 0x230   :  { %7892 = vst [vmem:[#allocation52_spill] sm:$0xff] %v5980_v45  ;;  %2123 = vmatmul.f32.gmra.mxu3 %v5946_v2  ;;  %v1624_v22 = vpop.trf.xlu0  ;;  %v5998_v62 = vsub.f32 %v1686_v47, %v5991_v60 }
 0x231   :  { %v586_v36 = vpop.f32.mrf.mxu0  ;;  %v783_v57 = vpop.f32.mrf.mxu1 }
 0x232   :  { %v780_v42 = vadd.f32 %v779_v21, %v586_v36  ;;  %v970_v11 = vpop.f32.mrf.mxu2  ;;  %7895 = vst [vmem:[#allocation55_spill] sm:$0xff] %v5998_v62  ;;  %v1880_v21 = vsub.f32 %v5983_v8, %v7769_v23  ;;  %v7772_v16 = vand.u32 4294901760, %v5998_v62 }
 0x233   :  { %v1185_v6 = vpop.f32.mrf.mxu3 }
 0x234   :  { %v971_v45 = vadd.f32 %v970_v11, %v780_v42  ;;  %1293 = vmatmul.f32.gmra.mxu0 %v5607_v43  ;;  %1450 = vmatmul.f32.gmra.mxu1 %v5615_v26 }
 0x236   :  { %v5995_v20 = vadd.f32 %v1185_v6, %v971_v45  ;;  %1874 = vmatmul.f32.gmra.mxu2 %v1873_v17  ;;  %v1881_v45 = vand.u32 4294901760, %v1880_v21  ;;  %v6006_v6 = vand.u32 4294901760, %v1689_v46  ;;  %v1692_v21 = vsel %vm227_vm0, %v1623_v59, 0 }
 0x238   :  { %7894 = vst [vmem:[#allocation54_spill] sm:$0xff] %v5995_v20  ;;  %2127 = vmatmul.f32.gmra.mxu3 %v5961_v28  ;;  %v1625_v47 = vpop.trf.xlu0  ;;  %v6013_v52 = vsub.f32 %v1689_v46, %v6006_v6 }
 0x239   :  { %v594_v36 = vpop.f32.mrf.mxu0  ;;  %v787_v42 = vpop.f32.mrf.mxu1 }
 0x23a   :  { %v784_v11 = vadd.f32 %v783_v57, %v594_v36  ;;  %v975_v43 = vpop.f32.mrf.mxu2  ;;  %v1888_v57 = vsub.f32 %v5998_v62, %v7772_v16  ;;  %v7777_v8 = vand.u32 4294901760, %v6013_v52 }
 0x23b   :  { %v1191_v17 = vpop.f32.mrf.mxu3 }
 0x23c   :  { %v976_v20 = vadd.f32 %v975_v43, %v784_v11  ;;  %1297 = vmatmul.f32.gmra.mxu0 %v5615_v26  ;;  %1454 = vmatmul.f32.gmra.mxu1 %v5624_v53 }
 0x23e   :  { %v6010_v23 = vadd.f32 %v1191_v17, %v976_v20  ;;  %1882 = vmatmul.f32.gmra.mxu2 %v1881_v45  ;;  %v1889_v20 = vand.u32 4294901760, %v1888_v57  ;;  %v6021_v17 = vand.u32 4294901760, %v1692_v21  ;;  %v1695_v57 = vsel %vm227_vm0, %v1624_v22, 0 }
 0x240   :  { %7896 = vst [vmem:[#allocation56_spill] sm:$0xff] %v6010_v23  ;;  %2131 = vmatmul.f32.gmra.mxu3 %v5976_v14  ;;  %v1626_v46 = vpop.trf.xlu0  ;;  %v6028_v59 = vsub.f32 %v1692_v21, %v6021_v17 }
 0x241   :  { %v602_v36 = vpop.f32.mrf.mxu0  ;;  %v1395_v11 = vpop.f32.mrf.mxu1 }
 0x242   :  { %v788_v43 = vadd.f32 %v787_v42, %v602_v36  ;;  %v980_v26 = vpop.f32.mrf.mxu2  ;;  %7898 = vst [vmem:[#allocation58_spill] sm:$0xff] %v6028_v59  ;;  %v1896_v42 = vsub.f32 %v6013_v52, %v7777_v8 }
 0x243   :  { %v1197_v45 = vpop.f32.mrf.mxu3 }
 0x244   :  { %v981_v23 = vadd.f32 %v980_v26, %v788_v43  ;;  %1301 = vmatmul.f32.gmra.mxu0 %v5624_v53  ;;  %1458 = vmatmul.f32.gmra.mxu1 %v5626_v54 }
 0x246   :  { %v6025_v16 = vadd.f32 %v1197_v45, %v981_v23  ;;  %1890 = vmatmul.f32.gmra.mxu2 %v1889_v20  ;;  %v7778_v23 = vand.u32 4294901760, %v6028_v59  ;;  %v1897_v45 = vand.u32 4294901760, %v1896_v42  ;;  %v6037_v20 = vand.u32 4294901760, %v1695_v57 }
 0x247   :  { %v1698_v42 = vsel %vm227_vm0, %v1625_v47, 0 }
 0x248   :  { %7897 = vst [vmem:[#allocation57_spill] sm:$0xff] %v6025_v16  ;;  %2135 = vmatmul.f32.gmra.mxu3 %v5991_v60  ;;  %v1627_v62 = vpop.trf.xlu0  ;;  %v6046_v22 = vsub.f32 %v1695_v57, %v6037_v20 }
 0x249   :  { %v1242_v36 = vpop.f32.mrf.mxu0  ;;  %v1399_v43 = vpop.f32.mrf.mxu1 }
 0x24a   :  { %v1243_v53 = vadd.f32 %v1242_v36, %v5640_v49  ;;  %v1763_v26 = vpop.f32.mrf.mxu2  ;;  %7900 = vst [vmem:[#allocation60_spill] sm:$0xff] %v6046_v22  ;;  %v1904_v49 = vsub.f32 %v6028_v59, %v7778_v23 }
 0x24b   :  { %v2072_v21 = vpop.f32.mrf.mxu3 }
 0x24c   :  { %v6039_v16 = vadd.f32 %v1395_v11, %v1243_v53  ;;  %v6041_v14 = vadd.f32 %v2072_v21, %v1763_v26  ;;  %1305 = vmatmul.f32.gmra.mxu0 %v5626_v54  ;;  %1462 = vmatmul.f32.gmra.mxu1 %v5632_v3  ;;  %v7781_v54 = vand.u32 4294901760, %v6046_v22  ;;  %v1905_v21 = vand.u32 4294901760, %v1904_v49 }
 0x24d   :  { %v1701_v49 = vsel %vm227_vm0, %v1626_v46, 0 }
 0x24e   :  { %7899 = vst [vmem:[#allocation59_spill] sm:$0xff] %v6039_v16  ;;  %1898 = vmatmul.f32.gmra.mxu2 %v1897_v45  ;;  %v6055_v45 = vand.u32 4294901760, %v1698_v42 }
 0x250   :  { %2139 = vmatmul.f32.gmra.mxu3 %v6006_v6  ;;  %v1628_v47 = vpop.trf.xlu0  ;;  %v6064_v23 = vsub.f32 %v1698_v42, %v6055_v45 }
 0x251   :  { %v1246_v11 = vpop.f32.mrf.mxu0  ;;  %v1403_v36 = vpop.f32.mrf.mxu1 }
 0x252   :  { %v1247_v53 = vadd.f32 %v1246_v11, %v5647_v29  ;;  %v1771_v26 = vpop.f32.mrf.mxu2  ;;  %7902 = vst [vmem:[#allocation62_spill] sm:$0xff] %v6064_v23  ;;  %v1912_v29 = vsub.f32 %v6046_v22, %v7781_v54 }
 0x253   :  { %v2076_v57 = vpop.f32.mrf.mxu3 }
 0x254   :  { %v6057_v8 = vadd.f32 %v1399_v43, %v1247_v53  ;;  %v6059_v16 = vadd.f32 %v2076_v57, %v1771_v26  ;;  %1309 = vmatmul.f32.gmra.mxu0 %v5632_v3  ;;  %1466 = vmatmul.f32.gmra.mxu1 %v5637_v44  ;;  %v7784_v26 = vand.u32 4294901760, %v6064_v23  ;;  %v1913_v57 = vand.u32 4294901760, %v1912_v29 }
 0x256   :  { %7901 = vst [vmem:[#allocation61_spill] sm:$0xff] %v6057_v8  ;;  %1906 = vmatmul.f32.gmra.mxu2 %v1905_v21  ;;  %v6073_v21 = vand.u32 4294901760, %v1701_v49 }
 0x258   :  { %2143 = vmatmul.f32.gmra.mxu3 %v6021_v17  ;;  %v6082_v46 = vsub.f32 %v1701_v49, %v6073_v21  ;;  %v1629_v29 = vpop.trf.xlu0 }
 0x259   :  { %v1250_v43 = vpop.f32.mrf.mxu0  ;;  %v1407_v11 = vpop.f32.mrf.mxu1 }
 0x25a   :  { %v1251_v53 = vadd.f32 %v1250_v43, %v5654_v48  ;;  %v1779_v3 = vpop.f32.mrf.mxu2  ;;  %7904 = vst [vmem:[#allocation64_spill] sm:$0xff] %v6082_v46  ;;  %v1920_v48 = vsub.f32 %v6064_v23, %v7784_v26  ;;  %v1704_v43 = vsel %vm227_vm0, %v1627_v62, 0 }
 0x25b   :  { %v2080_v42 = vpop.f32.mrf.mxu3  ;;  %v6091_v54 = vand.u32 4294901760, %v1704_v43 }
 0x25c   :  { %v6075_v8 = vadd.f32 %v1403_v36, %v1251_v53  ;;  %v6077_v59 = vadd.f32 %v2080_v42, %v1779_v3  ;;  %1313 = vmatmul.f32.gmra.mxu0 %v5637_v44  ;;  %1470 = vmatmul.f32.gmra.mxu1 %v5644_v50  ;;  %v7787_v42 = vand.u32 4294901760, %v6082_v46 }
 0x25d   :  { %v6100_v62 = vsub.f32 %v1704_v43, %v6091_v54 }
 0x25e   :  { %7903 = vst [vmem:[#allocation63_spill] sm:$0xff] %v6075_v8  ;;  %1914 = vmatmul.f32.gmra.mxu2 %v1913_v57  ;;  %v1921_v57 = vand.u32 4294901760, %v1920_v48  ;;  %v1707_v48 = vsel %vm227_vm0, %v1628_v47, 0 }
 0x25f   :  { %v6109_v26 = vand.u32 4294901760, %v1707_v48 }
 0x260   :  { %2147 = vmatmul.f32.gmra.mxu3 %v6037_v20 }
 0x261   :  { %v1254_v36 = vpop.f32.mrf.mxu0  ;;  %v1411_v53 = vpop.f32.mrf.mxu1  ;;  %v6118_v47 = vsub.f32 %v1707_v48, %v6109_v26 }
 0x262   :  { %v1255_v3 = vadd.f32 %v1254_v36, %v5661_v56  ;;  %v1787_v44 = vpop.f32.mrf.mxu2  ;;  %v1928_v56 = vsub.f32 %v6082_v46, %v7787_v42 }
 0x263   :  { %v2084_v49 = vpop.f32.mrf.mxu3  ;;  %7907 = vst [vmem:[#allocation67_spill] sm:$0xff] %v6118_v47 }
 0x264   :  { %v6093_v8 = vadd.f32 %v1407_v11, %v1255_v3  ;;  %v6095_v22 = vadd.f32 %v2084_v49, %v1787_v44  ;;  %1317 = vmatmul.f32.gmra.mxu0 %v5644_v50  ;;  %1474 = vmatmul.f32.gmra.mxu1 %v5651_v15  ;;  %v1630_v11 = vpop.trf.xlu0  ;;  %v7790_v49 = vand.u32 4294901760, %v6100_v62 }
 0x266   :  { %7905 = vst [vmem:[#allocation65_spill] sm:$0xff] %v6093_v8  ;;  %1922 = vmatmul.f32.gmra.mxu2 %v1921_v57  ;;  %v1929_v57 = vand.u32 4294901760, %v1928_v56  ;;  %v1710_v56 = vsel %vm227_vm0, %v1629_v29, 0 }
 0x268   :  { %2151 = vmatmul.f32.gmra.mxu3 %v6055_v45 }
 0x269   :  { %v1258_v36 = vpop.f32.mrf.mxu0  ;;  %v1415_v3 = vpop.f32.mrf.mxu1 }
 0x26a   :  { %v1259_v44 = vadd.f32 %v1258_v36, %v5668_v13  ;;  %v1795_v50 = vpop.f32.mrf.mxu2  ;;  %v1936_v13 = vsub.f32 %v6100_v62, %v7790_v49 }
 0x26b   :  { %v2088_v43 = vpop.f32.mrf.mxu3 }
 0x26c   :  { %v6111_v8 = vadd.f32 %v1411_v53, %v1259_v44  ;;  %v6113_v23 = vadd.f32 %v2088_v43, %v1795_v50  ;;  %1321 = vmatmul.f32.gmra.mxu0 %v5651_v15  ;;  %1478 = vmatmul.f32.gmra.mxu1 %v5658_v34  ;;  %v7791_v15 = vand.u32 4294901760, %v6118_v47  ;;  %v1937_v43 = vand.u32 4294901760, %v1936_v13  ;;  %v1631_v48 = vpop.trf.xlu0 }
 0x26d   :  { %v1713_v13 = vsel %vm227_vm0, %v1630_v11, 0 }
 0x26e   :  { %7906 = vst [vmem:[#allocation66_spill] sm:$0xff] %v6111_v8  ;;  %1930 = vmatmul.f32.gmra.mxu2 %v1929_v57  ;;  %v6127_v57 = vand.u32 4294901760, %v1710_v56 }
 0x270   :  { %2155 = vmatmul.f32.gmra.mxu3 %v6073_v21  ;;  %v6136_v29 = vsub.f32 %v1710_v56, %v6127_v57 }
 0x271   :  { %v1262_v53 = vpop.f32.mrf.mxu0  ;;  %v1419_v36 = vpop.f32.mrf.mxu1 }
 0x272   :  { %v1263_v44 = vadd.f32 %v1262_v53, %v5681_v61  ;;  %v1803_v50 = vpop.f32.mrf.mxu2  ;;  %7909 = vst [vmem:[#allocation69_spill] sm:$0xff] %v6136_v29  ;;  %v1944_v61 = vsub.f32 %v6118_v47, %v7791_v15 }
 0x273   :  { %v2092_v42 = vpop.f32.mrf.mxu3 }
 0x274   :  { %v6129_v8 = vadd.f32 %v1415_v3, %v1263_v44  ;;  %v6131_v46 = vadd.f32 %v2092_v42, %v1803_v50  ;;  %1325 = vmatmul.f32.gmra.mxu0 %v5658_v34  ;;  %1482 = vmatmul.f32.gmra.mxu1 %v5665_v9  ;;  %v7794_v34 = vand.u32 4294901760, %v6136_v29  ;;  %v1945_v50 = vand.u32 4294901760, %v1944_v61  ;;  %v1632_v11 = vpop.trf.xlu0 }
 0x275   :  { %v1716_v61 = vsel %vm227_vm0, %v1631_v48, 0 }
 0x276   :  { %7908 = vst [vmem:[#allocation68_spill] sm:$0xff] %v6129_v8  ;;  %1938 = vmatmul.f32.gmra.mxu2 %v1937_v43  ;;  %v6145_v43 = vand.u32 4294901760, %v1713_v13 }
 0x278   :  { %2159 = vmatmul.f32.gmra.mxu3 %v6091_v54  ;;  %v6154_v15 = vsub.f32 %v1713_v13, %v6145_v43 }
 0x279   :  { %v1266_v3 = vpop.f32.mrf.mxu0  ;;  %v1423_v53 = vpop.f32.mrf.mxu1 }
 0x27a   :  { %v1267_v42 = vadd.f32 %v1266_v3, %v5690_v55  ;;  %v1811_v44 = vpop.f32.mrf.mxu2  ;;  %7911 = vst [vmem:[#allocation71_spill] sm:$0xff] %v6154_v15  ;;  %v1952_v55 = vsub.f32 %v6136_v29, %v7794_v34 }
 0x27b   :  { %v2096_v56 = vpop.f32.mrf.mxu3 }
 0x27c   :  { %v6147_v49 = vadd.f32 %v1419_v36, %v1267_v42  ;;  %v6149_v8 = vadd.f32 %v2096_v56, %v1811_v44  ;;  %1329 = vmatmul.f32.gmra.mxu0 %v5665_v9  ;;  %1486 = vmatmul.f32.gmra.mxu1 %v5672_v30  ;;  %v7797_v44 = vand.u32 4294901760, %v6154_v15  ;;  %v1953_v56 = vand.u32 4294901760, %v1952_v55  ;;  %v1633_v55 = vpop.trf.xlu0 }
 0x27e   :  { %7910 = vst [vmem:[#allocation70_spill] sm:$0xff] %v6147_v49  ;;  %1946 = vmatmul.f32.gmra.mxu2 %v1945_v50  ;;  %v6163_v50 = vand.u32 4294901760, %v1716_v61 }
 0x280   :  { %2163 = vmatmul.f32.gmra.mxu3 %v6109_v26  ;;  %v6172_v48 = vsub.f32 %v1716_v61, %v6163_v50 }
 0x281   :  { %v1270_v36 = vpop.f32.mrf.mxu0  ;;  %v1427_v3 = vpop.f32.mrf.mxu1 }
 0x282   :  { %v1271_v42 = vadd.f32 %v1270_v36, %v5701_v18  ;;  %v1819_v9 = vpop.f32.mrf.mxu2  ;;  %7913 = vst [vmem:[#allocation73_spill] sm:$0xff] %v6172_v48  ;;  %v1960_v18 = vsub.f32 %v6154_v15, %v7797_v44  ;;  %v1719_v36 = vsel %vm227_vm0, %v1632_v11, 0 }
 0x283   :  { %v2100_v13 = vpop.f32.mrf.mxu3  ;;  %v6181_v34 = vand.u32 4294901760, %v1719_v36 }
 0x284   :  { %v6165_v49 = vadd.f32 %v1423_v53, %v1271_v42  ;;  %v6167_v47 = vadd.f32 %v2100_v13, %v1819_v9  ;;  %1333 = vmatmul.f32.gmra.mxu0 %v5672_v30  ;;  %1490 = vmatmul.f32.gmra.mxu1 %v5685_v33  ;;  %v7800_v13 = vand.u32 4294901760, %v6172_v48 }
 0x285   :  { %7914 = vst [vmem:[#allocation74_spill] sm:$0xff] %v6181_v34  ;;  %v6190_v11 = vsub.f32 %v1719_v36, %v6181_v34 }
 0x286   :  { %7912 = vst [vmem:[#allocation72_spill] sm:$0xff] %v6165_v49  ;;  %1954 = vmatmul.f32.gmra.mxu2 %v1953_v56  ;;  %v1961_v56 = vand.u32 4294901760, %v1960_v18  ;;  %v1722_v18 = vsel %vm227_vm0, %v1633_v55, 0 }
 0x287   :  { %7916 = vst [vmem:[#allocation76_spill] sm:$0xff] %v6190_v11  ;;  %v6199_v44 = vand.u32 4294901760, %v1722_v18 }
 0x288   :  { %2167 = vmatmul.f32.gmra.mxu3 %v6127_v57 }
 0x289   :  { %v1274_v53 = vpop.f32.mrf.mxu0  ;;  %v1431_v42 = vpop.f32.mrf.mxu1  ;;  %v6208_v55 = vsub.f32 %v1722_v18, %v6199_v44 }
 0x28a   :  { %v1275_v9 = vadd.f32 %v1274_v53, %v5710_v25  ;;  %v1827_v30 = vpop.f32.mrf.mxu2  ;;  %v1968_v25 = vsub.f32 %v6172_v48, %v7800_v13 }
 0x28b   :  { %v2104_v61 = vpop.f32.mrf.mxu3  ;;  %7918 = vst [vmem:[#allocation78_spill] sm:$0xff] %v6208_v55 }
 0x28c   :  { %v6183_v49 = vadd.f32 %v1427_v3, %v1275_v9  ;;  %v6185_v29 = vadd.f32 %v2104_v61, %v1827_v30  ;;  %1337 = vmatmul.f32.gmra.mxu0 %v5685_v33  ;;  %1494 = vmatmul.f32.gmra.mxu1 %v5695_v41  ;;  %v1634_v3 = vpop.trf.xlu0  ;;  %v7803_v61 = vand.u32 4294901760, %v6190_v11 }
 0x28e   :  { %7915 = vst [vmem:[#allocation75_spill] sm:$0xff] %v6183_v49  ;;  %1962 = vmatmul.f32.gmra.mxu2 %v1961_v56  ;;  %v1969_v56 = vand.u32 4294901760, %v1968_v25  ;;  %v1725_v25 = vsel %vm227_vm0, %v1634_v3, 0  ;;  %v7921_v3 = vld [vmem:[#allocation18_spill] sm:$0xff] }
 0x290   :  { %2171 = vmatmul.f32.gmra.mxu3 %v6145_v43 }
 0x291   :  { %v1278_v53 = vpop.f32.mrf.mxu0  ;;  %v1435_v9 = vpop.f32.mrf.mxu1 }
 0x292   :  { %v1279_v30 = vadd.f32 %v1278_v53, %v5721_v39  ;;  %v1835_v33 = vpop.f32.mrf.mxu2  ;;  %v1976_v39 = vsub.f32 %v6190_v11, %v7803_v61 }
 0x293   :  { %v2108_v36 = vpop.f32.mrf.mxu3 }
 0x294   :  { %v6201_v49 = vadd.f32 %v1431_v42, %v1279_v30  ;;  %v6203_v15 = vadd.f32 %v2108_v36, %v1835_v33  ;;  %1341 = vmatmul.f32.gmra.mxu0 %v5695_v41  ;;  %1498 = vmatmul.f32.gmra.mxu1 %v5705_v63  ;;  %v7806_v41 = vand.u32 4294901760, %v6208_v55  ;;  %v1977_v36 = vand.u32 4294901760, %v1976_v39  ;;  %v1635_v18 = vpop.trf.xlu0 }
 0x295   :  { %v1728_v39 = vsel %vm227_vm0, %v1635_v18, 0  ;;  %v7926_v18 = vld [vmem:[#allocation19_spill] sm:$0xff] }
 0x296   :  { %7917 = vst [vmem:[#allocation77_spill] sm:$0xff] %v6201_v49  ;;  %1970 = vmatmul.f32.gmra.mxu2 %v1969_v56  ;;  %v6217_v56 = vand.u32 4294901760, %v1725_v25 }
 0x298   :  { %2175 = vmatmul.f32.gmra.mxu3 %v6163_v50  ;;  %v6226_v61 = vsub.f32 %v1725_v25, %v6217_v56 }
 0x299   :  { %v1282_v42 = vpop.f32.mrf.mxu0  ;;  %v1439_v53 = vpop.f32.mrf.mxu1 }
 0x29a   :  { %v1283_v30 = vadd.f32 %v1282_v42, %v5730_v32  ;;  %v1843_v33 = vpop.f32.mrf.mxu2  ;;  %7922 = vst [vmem:[#allocation18_spill] sm:$0xff] %v6226_v61  ;;  %v1984_v32 = vsub.f32 %v6208_v55, %v7806_v41 }
 0x29b   :  { %v2112_v13 = vpop.f32.mrf.mxu3 }
 0x29c   :  { %v6219_v49 = vadd.f32 %v1435_v9, %v1283_v30  ;;  %v6221_v48 = vadd.f32 %v2112_v13, %v1843_v33  ;;  %1345 = vmatmul.f32.gmra.mxu0 %v5705_v63  ;;  %1502 = vmatmul.f32.gmra.mxu1 %v7921_v3  ;;  %v7923_v13 = vld [vmem:[#allocation21_spill] sm:$0xff]  ;;  %v7811_v63 = vand.u32 4294901760, %v6226_v61  ;;  %v1636_v41 = vpop.trf.xlu0 }
 0x29e   :  { %7919 = vst [vmem:[#allocation79_spill] sm:$0xff] %v6219_v49  ;;  %1978 = vmatmul.f32.gmra.mxu2 %v1977_v36  ;;  %v1985_v49 = vand.u32 4294901760, %v1984_v32  ;;  %v6235_v36 = vand.u32 4294901760, %v1728_v39  ;;  %v1992_v32 = vsub.f32 %v6226_v61, %v7811_v63 }
 0x29f   :  { %7920 = vst [vmem:[#allocation80_spill] sm:$0xff] %v6221_v48 }
 0x2a0   :  { %2179 = vmatmul.f32.gmra.mxu3 %v6181_v34  ;;  %v6244_v55 = vsub.f32 %v1728_v39, %v6235_v36 }
 0x2a1   :  { %v1286_v9 = vpop.f32.mrf.mxu0  ;;  %v1443_v42 = vpop.f32.mrf.mxu1 }
 0x2a2   :  { %v1287_v30 = vadd.f32 %v1286_v9, %v7923_v13  ;;  %v1851_v33 = vpop.f32.mrf.mxu2  ;;  %7927 = vst [vmem:[#allocation19_spill] sm:$0xff] %v6244_v55  ;;  %v1731_v9 = vsel %vm227_vm0, %v1636_v41, 0  ;;  %v7930_v41 = vld [vmem:[#allocation20_spill] sm:$0xff] }
 0x2a3   :  { %v2116_v25 = vpop.f32.mrf.mxu3 }
 0x2a4   :  { %v6237_v11 = vadd.f32 %v1439_v53, %v1287_v30  ;;  %v6239_v48 = vadd.f32 %v2116_v25, %v1851_v33  ;;  %1349 = vmatmul.f32.gmra.mxu0 %v7921_v3  ;;  %1506 = vmatmul.f32.gmra.mxu1 %v7926_v18  ;;  %v7928_v30 = vld [vmem:[#allocation23_spill] sm:$0xff]  ;;  %v7814_v25 = vand.u32 4294901760, %v6244_v55 }
 0x2a6   :  { %7924 = vst [vmem:[#allocation21_spill] sm:$0xff] %v6237_v11  ;;  %1986 = vmatmul.f32.gmra.mxu2 %v1985_v49  ;;  %v1993_v11 = vand.u32 4294901760, %v1992_v32  ;;  %v6253_v49 = vand.u32 4294901760, %v1731_v9 }
 0x2a7   :  { %7925 = vst [vmem:[#allocation81_spill] sm:$0xff] %v6239_v48 }
 0x2a8   :  { %2183 = vmatmul.f32.gmra.mxu3 %v6199_v44  ;;  %v6262_v63 = vsub.f32 %v1731_v9, %v6253_v49  ;;  %v7934_v9 = vld [vmem:[#allocation22_spill] sm:$0xff] }
 0x2a9   :  { %v1290_v53 = vpop.f32.mrf.mxu0  ;;  %v1447_v13 = vpop.f32.mrf.mxu1 }
 0x2aa   :  { %v1291_v33 = vadd.f32 %v1290_v53, %v7928_v30  ;;  %v1859_v3 = vpop.f32.mrf.mxu2  ;;  %7931 = vst [vmem:[#allocation20_spill] sm:$0xff] %v6262_v63  ;;  %v2000_v53 = vsub.f32 %v6244_v55, %v7814_v25 }
 0x2ab   :  { %v2120_v39 = vpop.f32.mrf.mxu3 }
 0x2ac   :  { %v6255_v48 = vadd.f32 %v1443_v42, %v1291_v33  ;;  %v6257_v34 = vadd.f32 %v2120_v39, %v1859_v3  ;;  %1353 = vmatmul.f32.gmra.mxu0 %v7926_v18  ;;  %1510 = vmatmul.f32.gmra.mxu1 %v7930_v41  ;;  %v7932_v42 = vld [vmem:[#allocation25_spill] sm:$0xff]  ;;  %v7817_v39 = vand.u32 4294901760, %v6262_v63  ;;  %v2001_v18 = vand.u32 4294901760, %v2000_v53 }
 0x2ae   :  { %7929 = vst [vmem:[#allocation23_spill] sm:$0xff] %v6255_v48  ;;  %1994 = vmatmul.f32.gmra.mxu2 %v1993_v11  ;;  %v2008_v25 = vsub.f32 %v6262_v63, %v7817_v39 }
 0x2b0   :  { %2187 = vmatmul.f32.gmra.mxu3 %v6217_v56 }
 0x2b1   :  { %v1294_v32 = vpop.f32.mrf.mxu0  ;;  %v1451_v30 = vpop.f32.mrf.mxu1 }
 0x2b2   :  { %v1295_v33 = vadd.f32 %v1294_v32, %v7932_v42  ;;  %v1867_v3 = vpop.f32.mrf.mxu2 }
 0x2b3   :  { %v2124_v48 = vpop.f32.mrf.mxu3 }
 0x2b4   :  { %v6270_v61 = vadd.f32 %v1447_v13, %v1295_v33  ;;  %v6272_v11 = vadd.f32 %v2124_v48, %v1867_v3  ;;  %1357 = vmatmul.f32.gmra.mxu0 %v7930_v41  ;;  %1514 = vmatmul.f32.gmra.mxu1 %v7934_v9  ;;  %v2009_v13 = vand.u32 4294901760, %v2008_v25  ;;  %v7935_v41 = vld [vmem:[#allocation24_spill] sm:$0xff] }
 0x2b6   :  { %7933 = vst [vmem:[#allocation25_spill] sm:$0xff] %v6270_v61  ;;  %2002 = vmatmul.f32.gmra.mxu2 %v2001_v18 }
 0x2b8   :  { %2191 = vmatmul.f32.gmra.mxu3 %v6235_v36 }
 0x2b9   :  { %v1298_v32 = vpop.f32.mrf.mxu0  ;;  %v1455_v42 = vpop.f32.mrf.mxu1 }
 0x2ba   :  { %v1299_v53 = vadd.f32 %v1298_v32, %v5775_v40  ;;  %v1875_v55 = vpop.f32.mrf.mxu2 }
 0x2bb   :  { %v2128_v33 = vpop.f32.mrf.mxu3 }
 0x2bc   :  { %v6281_v48 = vadd.f32 %v1451_v30, %v1299_v53  ;;  %v6283_v3 = vadd.f32 %v2128_v33, %v1875_v55  ;;  %1361 = vmatmul.f32.gmra.mxu0 %v7934_v9  ;;  %1518 = vmatmul.f32.gmra.mxu1 %v7935_v41  ;;  %v7936_v55 = vand.u32 4294901760, %v5765_v1 }
 0x2be   :  { %2010 = vmatmul.f32.gmra.mxu2 %v2009_v13 }
 0x2c0   :  { %2195 = vmatmul.f32.gmra.mxu3 %v6253_v49 }
 0x2c1   :  { %v1302_v18 = vpop.f32.mrf.mxu0  ;;  %v1459_v39 = vpop.f32.mrf.mxu1 }
 0x2c2   :  { %v1303_v63 = vadd.f32 %v1302_v18, %v5785_v38  ;;  %v1883_v61 = vpop.f32.mrf.mxu2 }
 0x2c3   :  { %v2132_v40 = vpop.f32.mrf.mxu3 }
 0x2c4   :  { %v6289_v32 = vadd.f32 %v1455_v42, %v1303_v63  ;;  %v6291_v25 = vadd.f32 %v2132_v40, %v1883_v61  ;;  %1365 = vmatmul.f32.gmra.mxu0 %v7935_v41  ;;  %2419 = vmatmul.f32.vlgmr.msra.gmra.mxu1 %v7936_v55  ;;  %v7937_v61 = vand.u32 4294901760, %v5778_v31  ;;  %v7938_v42 = vld [vmem:[#allocation26_spill] sm:$0xff] }
 0x2c6   :  { %2650 = vmatmul.f32.vlgmr.msra.gmra.mxu2 %v5758_v51 }
 0x2c8   :  { %2803 = vmatmul.f32.vlgmr.msra.gmra.mxu3 %v5758_v51 }
 0x2c9   :  { %v1306_v30 = vpop.f32.mrf.mxu0  ;;  %v1463_v9 = vpop.f32.mrf.mxu1 }
 0x2ca   :  { %v1307_v53 = vadd.f32 %v1306_v30, %v5800_v12  ;;  %v1891_v38 = vpop.f32.mrf.mxu2 }
 0x2cb   :  { %v2136_v13 = vpop.f32.mrf.mxu3 }
 0x2cc   :  { %v6299_v33 = vadd.f32 %v1459_v39, %v1307_v53  ;;  %v6301_v63 = vadd.f32 %v2136_v13, %v1891_v38  ;;  %2233 = vmatmul.f32.vlgmr.msra.gmra.mxu0 %v5765_v1  ;;  %2425 = vmatmul.f32.gmra.mxu1 %v7937_v61  ;;  %v7940_v1 = vld [vmem:[#allocation27_spill] sm:$0xff]  ;;  %v7942_v13 = vld [vmem:[#allocation30_spill] sm:$0xff] }
 0x2cd   :  { %v7941_v30 = vand.u32 4294901760, %v7940_v1 }
 0x2ce   :  { %2654 = vmatmul.f32.gmra.mxu2 %v7938_v42 }
 0x2d0   :  { %2807 = vmatmul.f32.gmra.mxu3 %v7938_v42 }
 0x2d1   :  { %v1310_v51 = vpop.f32.mrf.mxu0  ;;  %v1467_v41 = vpop.f32.mrf.mxu1 }
 0x2d2   :  { %v1311_v18 = vadd.f32 %v1310_v51, %v5815_v5  ;;  %v1899_v12 = vpop.f32.mrf.mxu2 }
 0x2d3   :  { %v2140_v40 = vpop.f32.mrf.mxu3 }
 0x2d4   :  { %v6309_v55 = vadd.f32 %v1463_v9, %v1311_v18  ;;  %v6311_v39 = vadd.f32 %v2140_v40, %v1899_v12  ;;  %2238 = vmatmul.f32.gmra.mxu0 %v5778_v31  ;;  %2431 = vmatmul.f32.gmra.mxu1 %v7941_v30  ;;  %v7944_v31 = vld [vmem:[#allocation28_spill] sm:$0xff]  ;;  %v7946_v40 = vld [vmem:[#allocation33_spill] sm:$0xff] }
 0x2d5   :  { %v7945_v18 = vand.u32 4294901760, %v7944_v31 }
 0x2d6   :  { %7939 = vst [vmem:[#allocation22_spill] sm:$0xff] %v6309_v55  ;;  %2658 = vmatmul.f32.gmra.mxu2 %v5782_v35 }
 0x2d8   :  { %2811 = vmatmul.f32.gmra.mxu3 %v5782_v35 }
 0x2d9   :  { %v1314_v53 = vpop.f32.mrf.mxu0  ;;  %v1471_v38 = vpop.f32.mrf.mxu1 }
 0x2da   :  { %v1315_v61 = vadd.f32 %v1314_v53, %v7942_v13  ;;  %v1907_v5 = vpop.f32.mrf.mxu2 }
 0x2db   :  { %v2144_v42 = vpop.f32.mrf.mxu3 }
 0x2dc   :  { %v6319_v51 = vadd.f32 %v1467_v41, %v1315_v61  ;;  %v6321_v9 = vadd.f32 %v2144_v42, %v1907_v5  ;;  %2243 = vmatmul.f32.gmra.mxu0 %v7940_v1  ;;  %2437 = vmatmul.f32.gmra.mxu1 %v7945_v18  ;;  %v7948_v1 = vld [vmem:[#allocation29_spill] sm:$0xff]  ;;  %v7950_v42 = vld [vmem:[#allocation35_spill] sm:$0xff] }
 0x2dd   :  { %v7949_v61 = vand.u32 4294901760, %v7948_v1 }
 0x2de   :  { %7943 = vst [vmem:[#allocation24_spill] sm:$0xff] %v6319_v51  ;;  %2662 = vmatmul.f32.gmra.mxu2 %v5796_v24 }
 0x2e0   :  { %2815 = vmatmul.f32.gmra.mxu3 %v5796_v24 }
 0x2e1   :  { %v1318_v35 = vpop.f32.mrf.mxu0  ;;  %v1475_v12 = vpop.f32.mrf.mxu1 }
 0x2e2   :  { %v1319_v30 = vadd.f32 %v1318_v35, %v7946_v40  ;;  %v1915_v53 = vpop.f32.mrf.mxu2 }
 0x2e3   :  { %v2148_v13 = vpop.f32.mrf.mxu3 }
 0x2e4   :  { %v6329_v55 = vadd.f32 %v1471_v38, %v1319_v30  ;;  %v6331_v41 = vadd.f32 %v2148_v13, %v1915_v53  ;;  %2248 = vmatmul.f32.gmra.mxu0 %v7944_v31  ;;  %2443 = vmatmul.f32.gmra.mxu1 %v7949_v61  ;;  %v7953_v31 = vld [vmem:[#allocation31_spill] sm:$0xff] }
 0x2e5   :  { %v7954_v30 = vand.u32 4294901760, %v7953_v31 }
 0x2e6   :  { %7947 = vst [vmem:[#allocation26_spill] sm:$0xff] %v6329_v55  ;;  %2666 = vmatmul.f32.gmra.mxu2 %v5811_v58 }
 0x2e8   :  { %2819 = vmatmul.f32.gmra.mxu3 %v5811_v58 }
 0x2e9   :  { %v1322_v24 = vpop.f32.mrf.mxu0  ;;  %v1479_v5 = vpop.f32.mrf.mxu1 }
 0x2ea   :  { %v1323_v18 = vadd.f32 %v1322_v24, %v7950_v42  ;;  %v1923_v35 = vpop.f32.mrf.mxu2 }
 0x2eb   :  { %v2152_v40 = vpop.f32.mrf.mxu3 }
 0x2ec   :  { %v6339_v51 = vadd.f32 %v1475_v12, %v1323_v18  ;;  %v6341_v38 = vadd.f32 %v2152_v40, %v1923_v35  ;;  %2253 = vmatmul.f32.gmra.mxu0 %v7948_v1  ;;  %2449 = vmatmul.f32.gmra.mxu1 %v7954_v30  ;;  %v7957_v1 = vld [vmem:[#allocation34_spill] sm:$0xff]  ;;  %v6356_v35 = vld [vmem:[#allocation7] sm:$0x3]  ;;  %v7960_v30 = vld [vmem:[#allocation16_spill] sm:$0xff] }
 0x2ed   :  { %v7958_v18 = vand.u32 4294901760, %v7957_v1  ;;  %v2932_v40 = vperm.slane %v6356_v35, 0 }
 0x2ee   :  { %7951 = vst [vmem:[#allocation27_spill] sm:$0xff] %v6339_v51  ;;  %2670 = vmatmul.f32.gmra.mxu2 %v5826_v0 }
 0x2ef   :  { %7952 = vst [vmem:[#allocation30_spill] sm:$0xff] %v6341_v38  ;;  %vm2934_vm0 = vcmp.eq.s32.totalorder %v7960_v30, %v2932_v40 }
 0x2f0   :  { %2823 = vmatmul.f32.gmra.mxu3 %v5826_v0  ;;  %v7959_v0 = vld [vmem:[#allocation32_spill] sm:$0xff] }
 0x2f1   :  { %v1326_v58 = vpop.f32.mrf.mxu0  ;;  %v1483_v53 = vpop.f32.mrf.mxu1 }
 0x2f2   :  { %v1327_v13 = vadd.f32 %v1326_v58, %v5875_v10  ;;  %v1931_v61 = vpop.f32.mrf.mxu2  ;;  %v7961_v10 = vmov 0.0  }
 0x2f3   :  { %v2156_v24 = vpop.f32.mrf.mxu3 }
 0x2f4   :  { %v6349_v42 = vadd.f32 %v1479_v5, %v1327_v13  ;;  %v6351_v12 = vadd.f32 %v2156_v24, %v1931_v61  ;;  %2258 = vmatmul.f32.gmra.mxu0 %v7953_v31  ;;  %2455 = vmatmul.f32.gmra.mxu1 %v7958_v18  ;;  %v5047_v5 = vsel %vm2934_vm0, 1.0, %v7961_v10 }
 0x2f5   :  { %2946 = vxpose.xlu1.b32.start [1/2] (short) %v5047_v5, 128 }
 0x2f6   :  { %7955 = vst [vmem:[#allocation28_spill] sm:$0xff] %v6349_v42  ;;  %2674 = vmatmul.f32.gmra.mxu2 %v7959_v0 }
 0x2f7   :  { %7956 = vst [vmem:[#allocation33_spill] sm:$0xff] %v6351_v12  ;;  %v7964_v12 = vld [vmem:[#allocation36_spill] sm:$0xff] }
 0x2f8   :  { %2827 = vmatmul.f32.gmra.mxu3 %v7959_v0  ;;  %v7965_v51 = vand.u32 4294901760, %v7964_v12  ;;  %v7966_v0 = vld [vmem:[#allocation17_spill] sm:$0xff] }
 0x2f9   :  { %v1330_v58 = vpop.f32.mrf.mxu0  ;;  %v1487_v13 = vpop.f32.mrf.mxu1  ;;  %vm2936_vm2 = vcmp.eq.s32.totalorder %v7966_v0, %v2932_v40 }
 0x2fa   :  { %v1331_v31 = vadd.f32 %v1330_v58, %v5890_v4  ;;  %v1939_v61 = vpop.f32.mrf.mxu2  ;;  %v5049_v38 = vsel %vm2936_vm2, 1.0, %v7961_v10 }
 0x2fb   :  { %v2160_v24 = vpop.f32.mrf.mxu3 }
 0x2fc   :  { %v6364_v18 = vadd.f32 %v1483_v53, %v1331_v31  ;;  %v6366_v42 = vadd.f32 %v2160_v24, %v1939_v61  ;;  %2263 = vmatmul.f32.gmra.mxu0 %v7957_v1  ;;  %2461 = vmatmul.f32.gmra.mxu1 %v7965_v51  ;;  %v7967_v53 = vld [vmem:[#allocation40_spill] sm:$0xff]  ;;  %v7970_v51 = vld [vmem:[#allocation37_spill] sm:$0xff] }
 0x2fd   :  { %2947 = vxpose.xlu1.b32.end [2/2] (short) %v5049_v38, 128  ;;  %v7972_v38 = vld [vmem:[#allocation43_spill] sm:$0xff] }
 0x2fe   :  { %7962 = vst [vmem:[#allocation29_spill] sm:$0xff] %v6364_v18  ;;  %2678 = vmatmul.f32.gmra.mxu2 %v5856_v27  ;;  %v7971_v18 = vand.u32 4294901760, %v7970_v51 }
 0x2ff   :  { %7963 = vst [vmem:[#allocation35_spill] sm:$0xff] %v6366_v42 }
 0x300   :  { %2831 = vmatmul.f32.gmra.mxu3 %v5856_v27 }
 0x301   :  { %v1334_v4 = vpop.f32.mrf.mxu0  ;;  %v1491_v5 = vpop.f32.mrf.mxu1 }
 0x302   :  { %v1335_v58 = vadd.f32 %v1334_v4, %v7967_v53  ;;  %v1947_v31 = vpop.f32.mrf.mxu2 }
 0x303   :  { %v2164_v61 = vpop.f32.mrf.mxu3 }
 0x304   :  { %v6376_v24 = vadd.f32 %v1487_v13, %v1335_v58  ;;  %v6378_v1 = vadd.f32 %v2164_v61, %v1947_v31  ;;  %2268 = vmatmul.f32.gmra.mxu0 %v7964_v12  ;;  %2467 = vmatmul.f32.gmra.mxu1 %v7971_v18  ;;  %v7974_v12 = vld [vmem:[#allocation39_spill] sm:$0xff]  ;;  %v7976_v18 = vld [vmem:[#allocation38_spill] sm:$0xff]  ;;  %v7977_v61 = vld [vmem:[#allocation45_spill] sm:$0xff] }
 0x305   :  { %v7975_v58 = vand.u32 4294901760, %v7974_v12 }
 0x306   :  { %7968 = vst [vmem:[#allocation31_spill] sm:$0xff] %v6376_v24  ;;  %2682 = vmatmul.f32.gmra.mxu2 %v5871_v19 }
 0x307   :  { %7969 = vst [vmem:[#allocation34_spill] sm:$0xff] %v6378_v1 }
 0x308   :  { %2835 = vmatmul.f32.gmra.mxu3 %v5871_v19 }
 0x309   :  { %v1338_v27 = vpop.f32.mrf.mxu0  ;;  %v1495_v40 = vpop.f32.mrf.mxu1 }
 0x30a   :  { %v1339_v42 = vadd.f32 %v1338_v27, %v7972_v38  ;;  %v1955_v4 = vpop.f32.mrf.mxu2 }
 0x30b   :  { %v2168_v53 = vpop.f32.mrf.mxu3 }
 0x30c   :  { %v6386_v55 = vadd.f32 %v1491_v5, %v1339_v42  ;;  %v6388_v13 = vadd.f32 %v2168_v53, %v1955_v4  ;;  %2273 = vmatmul.f32.gmra.mxu0 %v7970_v51  ;;  %2473 = vmatmul.f32.gmra.mxu1 %v7975_v58  ;;  %v7980_v5 = vld [vmem:[#allocation41_spill] sm:$0xff]  ;;  %v7982_v58 = vld [vmem:[#allocation47_spill] sm:$0xff] }
 0x30d   :  { %v7981_v51 = vand.u32 4294901760, %v7980_v5 }
 0x30e   :  { %7973 = vst [vmem:[#allocation32_spill] sm:$0xff] %v6386_v55  ;;  %2686 = vmatmul.f32.gmra.mxu2 %v7976_v18 }
 0x310   :  { %2839 = vmatmul.f32.gmra.mxu3 %v7976_v18 }
 0x311   :  { %v1342_v19 = vpop.f32.mrf.mxu0  ;;  %v1499_v31 = vpop.f32.mrf.mxu1 }
 0x312   :  { %v1343_v24 = vadd.f32 %v1342_v19, %v7977_v61  ;;  %v1963_v27 = vpop.f32.mrf.mxu2 }
 0x313   :  { %v2172_v38 = vpop.f32.mrf.mxu3 }
 0x314   :  { %v6396_v1 = vadd.f32 %v1495_v40, %v1343_v24  ;;  %v6398_v42 = vadd.f32 %v2172_v38, %v1963_v27  ;;  %2278 = vmatmul.f32.gmra.mxu0 %v7974_v12  ;;  %2479 = vmatmul.f32.gmra.mxu1 %v7981_v51  ;;  %v7984_v40 = vld [vmem:[#allocation44_spill] sm:$0xff]  ;;  %v7986_v27 = vld [vmem:[#allocation42_spill] sm:$0xff]  ;;  %v7987_v51 = vld [vmem:[#allocation49_spill] sm:$0xff] }
 0x315   :  { %v7985_v12 = vand.u32 4294901760, %v7984_v40 }
 0x316   :  { %7978 = vst [vmem:[#allocation16_spill] sm:$0xff] %v6396_v1  ;;  %2690 = vmatmul.f32.gmra.mxu2 %v5901_v7 }
 0x317   :  { %7979 = vst [vmem:[#allocation36_spill] sm:$0xff] %v6398_v42 }
 0x318   :  { %2843 = vmatmul.f32.gmra.mxu3 %v5901_v7 }
 0x319   :  { %v1346_v4 = vpop.f32.mrf.mxu0  ;;  %v1503_v53 = vpop.f32.mrf.mxu1 }
 0x31a   :  { %v1347_v18 = vadd.f32 %v1346_v4, %v7982_v58  ;;  %v1971_v19 = vpop.f32.mrf.mxu2 }
 0x31b   :  { %v2176_v61 = vpop.f32.mrf.mxu3 }
 0x31c   :  { %v6406_v55 = vadd.f32 %v1499_v31, %v1347_v18  ;;  %v6408_v24 = vadd.f32 %v2176_v61, %v1971_v19  ;;  %2283 = vmatmul.f32.gmra.mxu0 %v7980_v5  ;;  %2485 = vmatmul.f32.gmra.mxu1 %v7985_v12  ;;  %v7989_v5 = vld [vmem:[#allocation46_spill] sm:$0xff]  ;;  %v7991_v12 = vld [vmem:[#allocation52_spill] sm:$0xff] }
 0x31d   :  { %v7990_v18 = vand.u32 4294901760, %v7989_v5 }
 0x31e   :  { %7983 = vst [vmem:[#allocation17_spill] sm:$0xff] %v6406_v55  ;;  %2694 = vmatmul.f32.gmra.mxu2 %v7986_v27 }
 0x320   :  { %2847 = vmatmul.f32.gmra.mxu3 %v7986_v27 }
 0x321   :  { %v1350_v7 = vpop.f32.mrf.mxu0  ;;  %v1507_v38 = vpop.f32.mrf.mxu1 }
 0x322   :  { %v1351_v1 = vadd.f32 %v1350_v7, %v7987_v51  ;;  %v1979_v4 = vpop.f32.mrf.mxu2 }
 0x323   :  { %v2180_v58 = vpop.f32.mrf.mxu3 }
 0x324   :  { %v6416_v42 = vadd.f32 %v1503_v53, %v1351_v1  ;;  %v6418_v31 = vadd.f32 %v2180_v58, %v1979_v4  ;;  %2288 = vmatmul.f32.gmra.mxu0 %v7984_v40  ;;  %2491 = vmatmul.f32.gmra.mxu1 %v7990_v18  ;;  %v7993_v53 = vld [vmem:[#allocation48_spill] sm:$0xff]  ;;  %v7995_v58 = vld [vmem:[#allocation54_spill] sm:$0xff] }
 0x325   :  { %v7994_v40 = vand.u32 4294901760, %v7993_v53 }
 0x326   :  { %7988 = vst [vmem:[#allocation40_spill] sm:$0xff] %v6416_v42  ;;  %2698 = vmatmul.f32.gmra.mxu2 %v5931_v37 }
 0x328   :  { %2851 = vmatmul.f32.gmra.mxu3 %v5931_v37 }
 0x329   :  { %v1354_v19 = vpop.f32.mrf.mxu0  ;;  %v1511_v61 = vpop.f32.mrf.mxu1 }
 0x32a   :  { %v1355_v27 = vadd.f32 %v1354_v19, %v7991_v12  ;;  %v1987_v7 = vpop.f32.mrf.mxu2 }
 0x32b   :  { %v2184_v51 = vpop.f32.mrf.mxu3 }
 0x32c   :  { %v6426_v55 = vadd.f32 %v1507_v38, %v1355_v27  ;;  %v6428_v1 = vadd.f32 %v2184_v51, %v1987_v7  ;;  %2293 = vmatmul.f32.gmra.mxu0 %v7989_v5  ;;  %2497 = vmatmul.f32.gmra.mxu1 %v7994_v40  ;;  %v7998_v5 = vld [vmem:[#allocation50_spill] sm:$0xff]  ;;  %v8000_v51 = vld [vmem:[#allocation56_spill] sm:$0xff] }
 0x32d   :  { %v7999_v27 = vand.u32 4294901760, %v7998_v5 }
 0x32e   :  { %7992 = vst [vmem:[#allocation37_spill] sm:$0xff] %v6426_v55  ;;  %2702 = vmatmul.f32.gmra.mxu2 %v5946_v2 }
 0x330   :  { %2855 = vmatmul.f32.gmra.mxu3 %v5946_v2 }
 0x331   :  { %v1358_v37 = vpop.f32.mrf.mxu0  ;;  %v1515_v4 = vpop.f32.mrf.mxu1 }
 0x332   :  { %v1359_v18 = vadd.f32 %v1358_v37, %v7995_v58  ;;  %v1995_v19 = vpop.f32.mrf.mxu2 }
 0x333   :  { %v2188_v12 = vpop.f32.mrf.mxu3 }
 0x334   :  { %v6436_v42 = vadd.f32 %v1511_v61, %v1359_v18  ;;  %v6438_v38 = vadd.f32 %v2188_v12, %v1995_v19  ;;  %2298 = vmatmul.f32.gmra.mxu0 %v7993_v53  ;;  %2503 = vmatmul.f32.gmra.mxu1 %v7999_v27  ;;  %v8001_v53 = vld [vmem:[#allocation53_spill] sm:$0xff]  ;;  %v8003_v19 = vld [vmem:[#allocation51_spill] sm:$0xff] }
 0x335   :  { %v8002_v18 = vand.u32 4294901760, %v8001_v53  ;;  %v8004_v27 = vld [vmem:[#allocation57_spill] sm:$0xff] }
 0x336   :  { %7996 = vst [vmem:[#allocation43_spill] sm:$0xff] %v6436_v42  ;;  %2706 = vmatmul.f32.gmra.mxu2 %v5961_v28 }
 0x337   :  { %7997 = vst [vmem:[#allocation39_spill] sm:$0xff] %v6438_v38 }
 0x338   :  { %2859 = vmatmul.f32.gmra.mxu3 %v5961_v28 }
 0x339   :  { %v1362_v2 = vpop.f32.mrf.mxu0  ;;  %v1519_v7 = vpop.f32.mrf.mxu1 }
 0x33a   :  { %v1363_v40 = vadd.f32 %v1362_v2, %v8000_v51  ;;  %v2003_v37 = vpop.f32.mrf.mxu2 }
 0x33b   :  { %v2192_v58 = vpop.f32.mrf.mxu3 }
 0x33c   :  { %v6446_v55 = vadd.f32 %v1515_v4, %v1363_v40  ;;  %v6448_v61 = vadd.f32 %v2192_v58, %v2003_v37  ;;  %2303 = vmatmul.f32.gmra.mxu0 %v7998_v5  ;;  %2509 = vmatmul.f32.gmra.mxu1 %v8002_v18  ;;  %v8005_v5 = vld [vmem:[#allocation55_spill] sm:$0xff] }
 0x33d   :  { %v8006_v40 = vand.u32 4294901760, %v8005_v5 }
 0x33e   :  { %2710 = vmatmul.f32.gmra.mxu2 %v8003_v19 }
 0x340   :  { %2863 = vmatmul.f32.gmra.mxu3 %v8003_v19 }
 0x341   :  { %v1366_v28 = vpop.f32.mrf.mxu0  ;;  %v2420_v12 = vpop.f32.mrf.mxu1 }
 0x342   :  { %v1367_v42 = vadd.f32 %v1366_v28, %v8004_v27  ;;  %v2011_v2 = vpop.f32.mrf.mxu2 }
 0x343   :  { %v2196_v51 = vpop.f32.mrf.mxu3 }
 0x344   :  { %v6456_v38 = vadd.f32 %v1519_v7, %v1367_v42  ;;  %v6458_v4 = vadd.f32 %v2196_v51, %v2011_v2  ;;  %2308 = vmatmul.f32.gmra.mxu0 %v8001_v53  ;;  %2515 = vmatmul.f32.gmra.mxu1 %v8006_v40  ;;  %v8007_v42 = vand.u32 4294901760, %v6013_v52  ;;  %v8008_v51 = vld [vmem:[#allocation59_spill] sm:$0xff] }
 0x346   :  { %2714 = vmatmul.f32.gmra.mxu2 %v5991_v60 }
 0x348   :  { %2867 = vmatmul.f32.gmra.mxu3 %v5991_v60 }
 0x349   :  { %v2234_v37 = vpop.f32.mrf.mxu0  ;;  %v2426_v58 = vpop.f32.mrf.mxu1 }
 0x34a   :  { %v2235_v18 = vadd.f32 %v2234_v37, %v6041_v14  ;;  %v2651_v19 = vpop.f32.mrf.mxu2 }
 0x34b   :  { %v2804_v28 = vpop.f32.mrf.mxu3 }
 0x34c   :  { %v2421_v27 = vadd.f32 %v2420_v12, %v2235_v18  ;;  %2313 = vmatmul.f32.gmra.mxu0 %v8005_v5  ;;  %2521 = vmatmul.f32.gmra.mxu1 %v8007_v42  ;;  %v8009_v5 = vld [vmem:[#allocation58_spill] sm:$0xff] }
 0x34d   :  { %v8010_v42 = vand.u32 4294901760, %v8009_v5 }
 0x34e   :  { %v2652_v7 = vadd.f32 %v2651_v19, %v2421_v27  ;;  %2718 = vmatmul.f32.gmra.mxu2 %v6006_v6 }
 0x350   :  { %v2805_v53 = vadd.f32 %v2804_v28, %v2652_v7  ;;  %2871 = vmatmul.f32.gmra.mxu3 %v6006_v6  ;;  %v8011_v7 = vld [vmem:[#allocation61_spill] sm:$0xff] }
 0x351   :  { %v2239_v2 = vpop.f32.mrf.mxu0  ;;  %v2432_v60 = vpop.f32.mrf.mxu1 }
 0x352   :  { %v6472_v40 = vmul.f32 %v2805_v53, %v8008_v51  ;;  %v2240_v14 = vadd.f32 %v2239_v2, %v6059_v16  ;;  %v2655_v37 = vpop.f32.mrf.mxu2 }
 0x353   :  { %v2808_v12 = vpop.f32.mrf.mxu3 }
 0x354   :  { %v2427_v18 = vadd.f32 %v2426_v58, %v2240_v14  ;;  %2318 = vmatmul.f32.gmra.mxu0 %v6013_v52  ;;  %2527 = vmatmul.f32.gmra.mxu1 %v8010_v42  ;;  %v8012_v52 = vld [vmem:[#allocation60_spill] sm:$0xff]  ;;  %v8014_v42 = vld [vmem:[#allocation63_spill] sm:$0xff] }
 0x355   :  { %v8013_v14 = vand.u32 4294901760, %v8012_v52 }
 0x356   :  { %v2656_v19 = vadd.f32 %v2655_v37, %v2427_v18  ;;  %2722 = vmatmul.f32.gmra.mxu2 %v6021_v17 }
 0x358   :  { %v2809_v28 = vadd.f32 %v2808_v12, %v2656_v19  ;;  %2875 = vmatmul.f32.gmra.mxu3 %v6021_v17 }
 0x359   :  { %v2244_v6 = vpop.f32.mrf.mxu0  ;;  %v2438_v27 = vpop.f32.mrf.mxu1 }
 0x35a   :  { %v6481_v53 = vmul.f32 %v2809_v28, %v8011_v7  ;;  %v2245_v16 = vadd.f32 %v2244_v6, %v6077_v59  ;;  %v2659_v2 = vpop.f32.mrf.mxu2 }
 0x35b   :  { %v2812_v58 = vpop.f32.mrf.mxu3 }
 0x35c   :  { %v2433_v51 = vadd.f32 %v2432_v60, %v2245_v16  ;;  %2323 = vmatmul.f32.gmra.mxu0 %v8009_v5  ;;  %2533 = vmatmul.f32.gmra.mxu1 %v8013_v14  ;;  %v8015_v5 = vld [vmem:[#allocation62_spill] sm:$0xff] }
 0x35d   :  { %v8016_v7 = vand.u32 4294901760, %v8015_v5 }
 0x35e   :  { %v2660_v37 = vadd.f32 %v2659_v2, %v2433_v51  ;;  %2726 = vmatmul.f32.gmra.mxu2 %v6037_v20  ;;  %v8017_v51 = vld [vmem:[#allocation65_spill] sm:$0xff] }
 0x360   :  { %v2813_v12 = vadd.f32 %v2812_v58, %v2660_v37  ;;  %2879 = vmatmul.f32.gmra.mxu3 %v6037_v20 }
 0x361   :  { %v2249_v17 = vpop.f32.mrf.mxu0  ;;  %v2444_v18 = vpop.f32.mrf.mxu1 }
 0x362   :  { %v6490_v19 = vmul.f32 %v2813_v12, %v8014_v42  ;;  %v2250_v59 = vadd.f32 %v2249_v17, %v6095_v22  ;;  %v2663_v28 = vpop.f32.mrf.mxu2  ;;  %v8018_v42 = vld [vmem:[#allocation64_spill] sm:$0xff] }
 0x363   :  { %v2816_v60 = vpop.f32.mrf.mxu3 }
 0x364   :  { %v2439_v6 = vadd.f32 %v2438_v27, %v2250_v59  ;;  %2328 = vmatmul.f32.gmra.mxu0 %v8012_v52  ;;  %2539 = vmatmul.f32.gmra.mxu1 %v8016_v7  ;;  %v102_v27 = vld [vmem:[#allocation10 + $0x8] sm:$0xff]  ;;  %v8019_v59 = vand.u32 4294901760, %v8018_v42 }
 0x365   :  { %v6502_v52 = vand.u32 4294901760, %v102_v27  ;;  %v8020_v7 = vld [vmem:[#allocation66_spill] sm:$0xff] }
 0x366   :  { %v2664_v16 = vadd.f32 %v2663_v28, %v2439_v6  ;;  %2730 = vmatmul.f32.gmra.mxu2 %v6055_v45 }
 0x367   :  { %3122 = vmatpush.msrb.mxu0 %v6502_v52  ;;  %3733 = vmatpush.msrb.mxu3 %v6502_v52 }
 0x368   :  { %v2817_v2 = vadd.f32 %v2816_v60, %v2664_v16  ;;  %2883 = vmatmul.f32.gmra.mxu3 %v6055_v45  ;;  %v6509_v45 = vsub.f32 %v102_v27, %v6502_v52  ;;  %v8021_v27 = vand.u32 4294901760, %v6100_v62 }
 0x369   :  { %v2254_v20 = vpop.f32.mrf.mxu0  ;;  %v2450_v58 = vpop.f32.mrf.mxu1 }
 0x36a   :  { %v6499_v14 = vmul.f32 %v2817_v2, %v8017_v51  ;;  %v2255_v22 = vadd.f32 %v2254_v20, %v6113_v23  ;;  %v2667_v37 = vpop.f32.mrf.mxu2  ;;  %v3398_v23 = vand.u32 4294901760, %v6509_v45  ;;  %3553 = vmatpush.msrb.mxu2 %v6509_v45 }
 0x36b   :  { %v2820_v12 = vpop.f32.mrf.mxu3 }
 0x36c   :  { %v2445_v17 = vadd.f32 %v2444_v18, %v2255_v22  ;;  %2333 = vmatmul.f32.gmra.mxu0 %v8015_v5  ;;  %2545 = vmatmul.f32.gmra.mxu1 %v8019_v59  ;;  %v3399_v5 = vsub.f32 %v6509_v45, %v3398_v23  ;;  %v8044_v45 = vld [vmem:[#allocation78_spill] sm:$0xff] }
 0x36e   :  { %v2668_v28 = vadd.f32 %v2667_v37, %v2445_v17  ;;  %2734 = vmatmul.f32.gmra.mxu2 %v6073_v21  ;;  %v3400_v22 = vand.u32 4294901760, %v3399_v5  ;;  %v8023_v5 = vld [vmem:[#allocation67_spill] sm:$0xff] }
 0x370   :  { %v2821_v18 = vadd.f32 %v2820_v12, %v2668_v28  ;;  %2887 = vmatmul.f32.gmra.mxu3 %v6073_v21  ;;  %3401 = vmatpush.msrb.mxu1 %v3400_v22  ;;  %v8022_v28 = vld [vmem:[#allocation68_spill] sm:$0xff] }
 0x371   :  { %v2259_v60 = vpop.f32.mrf.mxu0  ;;  %v2456_v6 = vpop.f32.mrf.mxu1 }
 0x372   :  { %v6520_v16 = vmul.f32 %v2821_v18, %v8020_v7  ;;  %v2260_v2 = vadd.f32 %v2259_v60, %v6131_v46  ;;  %v2671_v20 = vpop.f32.mrf.mxu2  ;;  %v8024_v7 = vand.u32 4294901760, %v8023_v5 }
 0x373   :  { %v2824_v51 = vpop.f32.mrf.mxu3 }
 0x374   :  { %v2451_v37 = vadd.f32 %v2450_v58, %v2260_v2  ;;  %2338 = vmatmul.f32.gmra.mxu0 %v8018_v42  ;;  %2551 = vmatmul.f32.gmra.mxu1 %v8021_v27 }
 0x376   :  { %v2672_v21 = vadd.f32 %v2671_v20, %v2451_v37  ;;  %2738 = vmatmul.f32.gmra.mxu2 %v6091_v54  ;;  %v8025_v37 = vld [vmem:[#allocation70_spill] sm:$0xff] }
 0x378   :  { %v2825_v12 = vadd.f32 %v2824_v51, %v2672_v21  ;;  %2891 = vmatmul.f32.gmra.mxu3 %v6091_v54  ;;  %v2933_v54 = vperm.slane %v6356_v35, 1 }
 0x379   :  { %v2264_v17 = vpop.f32.mrf.mxu0  ;;  %v2462_v59 = vpop.f32.mrf.mxu1 }
 0x37a   :  { %v6529_v46 = vmul.f32 %v2825_v12, %v8022_v28  ;;  %v2265_v18 = vadd.f32 %v2264_v17, %v6149_v8  ;;  %v2675_v58 = vpop.f32.mrf.mxu2  ;;  %vm2935_vm3 = vcmp.eq.s32.totalorder %v7960_v30, %v2933_v54  ;;  %v8026_v17 = vld [vmem:[#allocation69_spill] sm:$0xff]  ;;  %vm2937_vm4 = vcmp.eq.s32.totalorder %v7966_v0, %v2933_v54 }
 0x37b   :  { %v2828_v60 = vpop.f32.mrf.mxu3  ;;  %v5048_v21 = vsel %vm2935_vm3, 1.0, %v7961_v10 }
 0x37c   :  { %v2457_v42 = vadd.f32 %v2456_v6, %v2265_v18  ;;  %2343 = vmatmul.f32.gmra.mxu0 %v6100_v62  ;;  %2557 = vmatmul.f32.gmra.mxu1 %v8024_v7 }
 0x37d   :  { %2978 = vxpose.xlu2.b32.start [1/2] (short) %v5048_v21, 128  ;;  %v8033_v21 = vld [vmem:[#allocation73_spill] sm:$0xff] }
 0x37e   :  { %v2676_v2 = vadd.f32 %v2675_v58, %v2457_v42  ;;  %2742 = vmatmul.f32.gmra.mxu2 %v6109_v26  ;;  %v8028_v58 = vld [vmem:[#allocation72_spill] sm:$0xff] }
 0x380   :  { %v2829_v20 = vadd.f32 %v2828_v60, %v2676_v2  ;;  %2895 = vmatmul.f32.gmra.mxu3 %v6109_v26  ;;  %v8027_v26 = vand.u32 4294901760, %v8026_v17  ;;  %v8029_v2 = vld [vmem:[#allocation71_spill] sm:$0xff] }
 0x381   :  { %v2269_v51 = vpop.f32.mrf.mxu0  ;;  %v2468_v22 = vpop.f32.mrf.mxu1 }
 0x382   :  { %v6539_v8 = vmul.f32 %v2829_v20, %v8025_v37  ;;  %v2270_v6 = vadd.f32 %v2269_v51, %v6167_v47  ;;  %v2679_v27 = vpop.f32.mrf.mxu2  ;;  %v8030_v20 = vand.u32 4294901760, %v8029_v2 }
 0x383   :  { %v2832_v62 = vpop.f32.mrf.mxu3 }
 0x384   :  { %v2463_v12 = vadd.f32 %v2462_v59, %v2270_v6  ;;  %2348 = vmatmul.f32.gmra.mxu0 %v8023_v5  ;;  %2563 = vmatmul.f32.gmra.mxu1 %v8027_v26  ;;  %v5050_v5 = vsel %vm2937_vm4, 1.0, %v7961_v10  ;;  %v8031_v6 = vld [vmem:[#allocation75_spill] sm:$0xff] }
 0x385   :  { %2979 = vxpose.xlu2.b32.end [2/2] (short) %v5050_v5, 128 }
 0x386   :  { %v2680_v35 = vadd.f32 %v2679_v27, %v2463_v12  ;;  %2746 = vmatmul.f32.gmra.mxu2 %v6127_v57  ;;  %v8034_v12 = vand.u32 4294901760, %v8033_v21 }
 0x388   :  { %v2833_v28 = vadd.f32 %v2832_v62, %v2680_v35  ;;  %2899 = vmatmul.f32.gmra.mxu3 %v6127_v57 }
 0x389   :  { %v2274_v47 = vpop.f32.mrf.mxu0  ;;  %v2474_v18 = vpop.f32.mrf.mxu1 }
 0x38a   :  { %v6550_v30 = vmul.f32 %v2833_v28, %v8028_v58  ;;  %v2275_v60 = vadd.f32 %v2274_v47, %v6185_v29  ;;  %v2683_v59 = vpop.f32.mrf.mxu2  ;;  %v101_v28 = vld [vmem:[#allocation10] sm:$0xff] }
 0x38b   :  { %v2836_v42 = vpop.f32.mrf.mxu3  ;;  %v8035_v47 = vld [vmem:[#allocation77_spill] sm:$0xff] }
 0x38c   :  { %v2469_v7 = vadd.f32 %v2468_v22, %v2275_v60  ;;  %2353 = vmatmul.f32.gmra.mxu0 %v8026_v17  ;;  %2569 = vmatmul.f32.gmra.mxu1 %v8030_v20 }
 0x38e   :  { %v2684_v57 = vadd.f32 %v2683_v59, %v2469_v7  ;;  %2750 = vmatmul.f32.gmra.mxu2 %v6145_v43  ;;  %v3123_v59 = vand.u32 4294901760, %v101_v28  ;;  %v8038_v7 = vld [vmem:[#allocation76_spill] sm:$0xff] }
 0x390   :  { %v2837_v51 = vadd.f32 %v2836_v42, %v2684_v57  ;;  %2903 = vmatmul.f32.gmra.mxu3 %v6145_v43  ;;  %v3403_v20 = vsub.f32 %v101_v28, %v3123_v59  ;;  %3124 = vmatpush.msrb.mxu0 %v3123_v59 }
 0x391   :  { %v2279_v29 = vpop.f32.mrf.mxu0  ;;  %v2480_v37 = vpop.f32.mrf.mxu1  ;;  %3735 = vmatpush.msrb.mxu3 %v3123_v59 }
 0x392   :  { %v6561_v0 = vmul.f32 %v2837_v51, %v8031_v6  ;;  %v2280_v54 = vadd.f32 %v2279_v29, %v6203_v15  ;;  %v2687_v22 = vpop.f32.mrf.mxu2  ;;  %v8037_v15 = vld [vmem:[#allocation80_spill] sm:$0xff]  ;;  %v8040_v51 = vld [vmem:[#allocation74_spill] sm:$0xff]  ;;  %v3404_v29 = vand.u32 4294901760, %v3403_v20  ;;  %3946 = vmatpush.msra.mxu0 %v3398_v23  ;;  %3556 = vmatpush.msrb.mxu2 %v3403_v20  ;;  %v8045_v23 = vand.u32 4294901760, %v8044_v45 }
 0x393   :  { %v2840_v27 = vpop.f32.mrf.mxu3 }
 0x394   :  { %8032 = vst [vmem:[#allocation38_spill] sm:$0xff] %v6561_v0  ;;  %v2475_v62 = vadd.f32 %v2474_v18, %v2280_v54  ;;  %2358 = vmatmul.f32.gmra.mxu0 %v8029_v2  ;;  %2575 = vmatmul.f32.gmra.mxu1 %v8034_v12  ;;  %v8039_v2 = vand.u32 4294901760, %v8038_v7 }
 0x395   :  { %3950 = vmatpush.msra.mxu0 %v3404_v29 }
 0x396   :  { %v2688_v17 = vadd.f32 %v2687_v22, %v2475_v62  ;;  %2754 = vmatmul.f32.gmra.mxu2 %v6163_v50 }
 0x398   :  { %v2841_v26 = vadd.f32 %v2840_v27, %v2688_v17  ;;  %2907 = vmatmul.f32.gmra.mxu3 %v6163_v50  ;;  %v8041_v27 = vld [vmem:[#allocation79_spill] sm:$0xff] }
 0x399   :  { %v2284_v43 = vpop.f32.mrf.mxu0  ;;  %v2486_v35 = vpop.f32.mrf.mxu1 }
 0x39a   :  { %v6570_v58 = vmul.f32 %v2841_v26, %v8035_v47  ;;  %v2285_v60 = vadd.f32 %v2284_v43, %v8037_v15  ;;  %v2691_v18 = vpop.f32.mrf.mxu2  ;;  %v2962_v57 = vpop.trf.xlu1 }
 0x39b   :  { %v2844_v42 = vpop.f32.mrf.mxu3 }
 0x39c   :  { %8036 = vst [vmem:[#allocation45_spill] sm:$0xff] %v6570_v58  ;;  %v2481_v5 = vadd.f32 %v2480_v37, %v2285_v60  ;;  %2363 = vmatmul.f32.gmra.mxu0 %v8033_v21  ;;  %2581 = vmatmul.f32.gmra.mxu1 %v8039_v2  ;;  %v3405_v37 = vsub.f32 %v3403_v20, %v3404_v29  ;;  %v8043_v21 = vld [vmem:[#allocation81_spill] sm:$0xff] }
 0x39e   :  { %v2692_v50 = vadd.f32 %v2691_v18, %v2481_v5  ;;  %2758 = vmatmul.f32.gmra.mxu2 %v8040_v51  ;;  %v3406_v26 = vand.u32 4294901760, %v3405_v37  ;;  %v8046_v5 = vld [vmem:[#allocation21_spill] sm:$0xff] }
 0x3a0   :  { %v2845_v6 = vadd.f32 %v2844_v42, %v2692_v50  ;;  %2911 = vmatmul.f32.gmra.mxu3 %v8040_v51  ;;  %3407 = vmatpush.msrb.mxu1 %v3406_v26  ;;  %v8048_v51 = vld [vmem:[#allocation18_spill] sm:$0xff] }
 0x3a1   :  { %v2289_v54 = vpop.f32.mrf.mxu0  ;;  %v2492_v22 = vpop.f32.mrf.mxu1  ;;  %v8049_v29 = vand.u32 4294901760, %v8048_v51 }
 0x3a2   :  { %v6581_v62 = vmul.f32 %v2845_v6, %v8041_v27  ;;  %v2290_v12 = vadd.f32 %v2289_v54, %v8043_v21  ;;  %v2695_v17 = vpop.f32.mrf.mxu2  ;;  %v2963_v47 = vpop.trf.xlu1  ;;  %4095 = vmatpush.msra.mxu1 %v6502_v52  ;;  %v8050_v54 = vld [vmem:[#allocation23_spill] sm:$0xff] }
 0x3a3   :  { %v2848_v43 = vpop.f32.mrf.mxu3 }
 0x3a4   :  { %8042 = vst [vmem:[#allocation41_spill] sm:$0xff] %v6581_v62  ;;  %v2487_v28 = vadd.f32 %v2486_v35, %v2290_v12  ;;  %2368 = vmatmul.f32.gmra.mxu0 %v8038_v7  ;;  %2587 = vmatmul.f32.gmra.mxu1 %v8045_v23 }
 0x3a5   :  { %4097 = vmatpush.msra.mxu1 %v3123_v59 }
 0x3a6   :  { %v2696_v15 = vadd.f32 %v2695_v17, %v2487_v28  ;;  %2762 = vmatmul.f32.gmra.mxu2 %v6199_v44  ;;  %v8052_v17 = vld [vmem:[#allocation19_spill] sm:$0xff] }
 0x3a7   :  { %v8053_v26 = vand.u32 4294901760, %v8052_v17 }
 0x3a8   :  { %v2849_v60 = vadd.f32 %v2848_v43, %v2696_v15  ;;  %2915 = vmatmul.f32.gmra.mxu3 %v6199_v44  ;;  %v8054_v15 = vld [vmem:[#allocation25_spill] sm:$0xff] }
 0x3a9   :  { %v2294_v18 = vpop.f32.mrf.mxu0  ;;  %v2498_v42 = vpop.f32.mrf.mxu1 }
 0x3aa   :  { %v6591_v35 = vmul.f32 %v2849_v60, %v8046_v5  ;;  %v2295_v7 = vadd.f32 %v2294_v18, %v6257_v34  ;;  %v2699_v2 = vpop.f32.mrf.mxu2  ;;  %v2964_v52 = vpop.trf.xlu1 }
 0x3ab   :  { %v2852_v20 = vpop.f32.mrf.mxu3 }
 0x3ac   :  { %8047 = vst [vmem:[#allocation47_spill] sm:$0xff] %v6591_v35  ;;  %v2493_v50 = vadd.f32 %v2492_v22, %v2295_v7  ;;  %2373 = vmatmul.f32.gmra.mxu0 %v8044_v45  ;;  %2593 = vmatmul.f32.gmra.mxu1 %v8049_v29 }
 0x3ae   :  { %v2700_v6 = vadd.f32 %v2699_v2, %v2493_v50  ;;  %2766 = vmatmul.f32.gmra.mxu2 %v6217_v56 }
 0x3b0   :  { %v2853_v44 = vadd.f32 %v2852_v20, %v2700_v6  ;;  %2919 = vmatmul.f32.gmra.mxu3 %v6217_v56  ;;  %v3012_v56 = vsel %vm3010_vm5, %v2962_v57, 0  ;;  %v8056_v20 = vld [vmem:[#allocation20_spill] sm:$0xff] }
 0x3b1   :  { %v2299_v59 = vpop.f32.mrf.mxu0  ;;  %v2504_v37 = vpop.f32.mrf.mxu1  ;;  %v6613_v5 = vand.u32 4294901760, %v3012_v56  ;;  %v8057_v50 = vand.u32 4294901760, %v8056_v20 }
 0x3b2   :  { %v6600_v27 = vmul.f32 %v2853_v44, %v8050_v54  ;;  %v2300_v34 = vadd.f32 %v2299_v59, %v6272_v11  ;;  %v2703_v22 = vpop.f32.mrf.mxu2  ;;  %v2965_v43 = vpop.trf.xlu1 }
 0x3b3   :  { %v2856_v21 = vpop.f32.mrf.mxu3 }
 0x3b4   :  { %8051 = vst [vmem:[#allocation44_spill] sm:$0xff] %v6600_v27  ;;  %v2499_v12 = vadd.f32 %v2498_v42, %v2300_v34  ;;  %2378 = vmatmul.f32.gmra.mxu0 %v8048_v51  ;;  %2599 = vmatmul.f32.gmra.mxu1 %v8053_v26  ;;  %v3015_v51 = vsel %vm3010_vm5, %v2963_v47, 0  ;;  %v3018_v26 = vsel %vm3010_vm5, %v2964_v52, 0 }
 0x3b5   :  { %v6622_v59 = vand.u32 4294901760, %v3015_v51 }
 0x3b6   :  { %v2704_v28 = vadd.f32 %v2703_v22, %v2499_v12  ;;  %2770 = vmatmul.f32.gmra.mxu2 %v6235_v36 }
 0x3b7   :  { %v3134_v47 = vsub.f32 %v3015_v51, %v6622_v59 }
 0x3b8   :  { %v2857_v45 = vadd.f32 %v2856_v21, %v2704_v28  ;;  %2923 = vmatmul.f32.gmra.mxu3 %v6235_v36  ;;  %v3126_v36 = vsub.f32 %v3012_v56, %v6613_v5 }
 0x3b9   :  { %v2304_v23 = vpop.f32.mrf.mxu0  ;;  %v2510_v11 = vpop.f32.mrf.mxu1 }
 0x3ba   :  { %v6610_v60 = vmul.f32 %v2857_v45, %v8054_v15  ;;  %v2305_v18 = vadd.f32 %v2304_v23, %v6283_v3  ;;  %v2707_v42 = vpop.f32.mrf.mxu2  ;;  %v2966_v29 = vpop.trf.xlu1  ;;  %v3127_v54 = vand.u32 4294901760, %v3126_v36 }
 0x3bb   :  { %v2860_v7 = vpop.f32.mrf.mxu3 }
 0x3bc   :  { %8055 = vst [vmem:[#allocation42_spill] sm:$0xff] %v6610_v60  ;;  %v2505_v2 = vadd.f32 %v2504_v37, %v2305_v18  ;;  %2383 = vmatmul.f32.gmra.mxu0 %v8052_v17  ;;  %2605 = vmatmul.f32.gmra.mxu1 %v8057_v50 }
 0x3be   :  { %v2708_v57 = vadd.f32 %v2707_v42, %v2505_v2  ;;  %2774 = vmatmul.f32.gmra.mxu2 %v6253_v49  ;;  %v6636_v42 = vand.u32 4294901760, %v3018_v26 }
 0x3c0   :  { %v2861_v6 = vadd.f32 %v2860_v7, %v2708_v57  ;;  %2927 = vmatmul.f32.gmra.mxu3 %v6253_v49  ;;  %v3128_v49 = vsub.f32 %v3126_v36, %v3127_v54  ;;  %v3142_v50 = vsub.f32 %v3018_v26, %v6636_v42  ;;  %v3021_v57 = vsel %vm3010_vm5, %v2965_v43, 0 }
 0x3c1   :  { %v2309_v3 = vpop.f32.mrf.mxu0  ;;  %v2516_v44 = vpop.f32.mrf.mxu1 }
 0x3c2   :  { %v6625_v37 = vmul.f32 %v2861_v6, %v6281_v48  ;;  %v2310_v34 = vadd.f32 %v2309_v3, %v6291_v25  ;;  %v2711_v22 = vpop.f32.mrf.mxu2  ;;  %v2967_v48 = vpop.trf.xlu1  ;;  %v3135_v25 = vand.u32 4294901760, %v3134_v47  ;;  %v3129_v23 = vand.u32 4294901760, %v3128_v49 }
 0x3c3   :  { %v2864_v21 = vpop.f32.mrf.mxu3  ;;  %v3024_v49 = vsel %vm3010_vm5, %v2966_v29, 0 }
 0x3c4   :  { %8058 = vst [vmem:[#allocation49_spill] sm:$0xff] %v6625_v37  ;;  %v2511_v12 = vadd.f32 %v2510_v11, %v2310_v34  ;;  %2388 = vmatmul.f32.gmra.mxu0 %v8056_v20  ;;  %3409 = vmatmul.f32.vlgmr.msrb.gmra.mxu1 %v6613_v5  ;;  %v3136_v52 = vsub.f32 %v3134_v47, %v3135_v25  ;;  %v3143_v34 = vand.u32 4294901760, %v3142_v50 }
 0x3c6   :  { %v2712_v17 = vadd.f32 %v2711_v22, %v2511_v12  ;;  %3559 = vmatmul.f32.vlgmr.msrb.gmra.mxu2 %v3126_v36 }
 0x3c8   :  { %v2865_v28 = vadd.f32 %v2864_v21, %v2712_v17  ;;  %3739 = vmatmul.f32.vlgmr.msrb.gmra.mxu3 %v3127_v54  ;;  %v6645_v54 = vand.u32 4294901760, %v3021_v57 }
 0x3c9   :  { %v2314_v56 = vpop.f32.mrf.mxu0  ;;  %v2522_v45 = vpop.f32.mrf.mxu1 }
 0x3ca   :  { %v6633_v11 = vmul.f32 %v2865_v28, %v6289_v32  ;;  %v2315_v15 = vadd.f32 %v2314_v56, %v6301_v63  ;;  %v2715_v18 = vpop.f32.mrf.mxu2  ;;  %v3137_v63 = vand.u32 4294901760, %v3136_v52  ;;  %v2968_v22 = vpop.trf.xlu1  ;;  %v6650_v28 = vand.u32 4294901760, %v3024_v49  ;;  %v8061_v56 = vld [vmem:[#allocation22_spill] sm:$0xff] }
 0x3cb   :  { %v2868_v7 = vpop.f32.mrf.mxu3 }
 0x3cc   :  { %8059 = vst [vmem:[#allocation46_spill] sm:$0xff] %v6633_v11  ;;  %v2517_v2 = vadd.f32 %v2516_v44, %v2315_v15  ;;  %3130 = vmatmul.f32.vlgmr.msrb.gmra.mxu0 %v3129_v23  ;;  %3413 = vmatmul.f32.gmra.mxu1 %v6622_v59  ;;  %v3158_v52 = vsub.f32 %v3024_v49, %v6650_v28 }
 0x3ce   :  { %v2716_v20 = vadd.f32 %v2715_v18, %v2517_v2  ;;  %3564 = vmatmul.f32.gmra.mxu2 %v3134_v47  ;;  %v3150_v47 = vsub.f32 %v3021_v57, %v6645_v54  ;;  %v3027_v57 = vsel %vm3010_vm5, %v2967_v48, 0 }
 0x3d0   :  { %v2869_v36 = vadd.f32 %v2868_v7, %v2716_v20  ;;  %3745 = vmatmul.f32.gmra.mxu3 %v3135_v25  ;;  %v3151_v18 = vand.u32 4294901760, %v3150_v47 }
 0x3d1   :  { %v2319_v32 = vpop.f32.mrf.mxu0  ;;  %v2528_v51 = vpop.f32.mrf.mxu1 }
 0x3d2   :  { %v6642_v6 = vmul.f32 %v2869_v36, %v6299_v33  ;;  %v2320_v3 = vadd.f32 %v2319_v32, %v6311_v39  ;;  %v2719_v44 = vpop.f32.mrf.mxu2  ;;  %v3144_v33 = vsub.f32 %v3142_v50, %v3143_v34  ;;  %v2969_v29 = vpop.trf.xlu1 }
 0x3d3   :  { %v2872_v21 = vpop.f32.mrf.mxu3 }
 0x3d4   :  { %8060 = vst [vmem:[#allocation52_spill] sm:$0xff] %v6642_v6  ;;  %v2523_v12 = vadd.f32 %v2522_v45, %v2320_v3  ;;  %3138 = vmatmul.f32.gmra.mxu0 %v3137_v63  ;;  %3417 = vmatmul.f32.gmra.mxu1 %v6636_v42  ;;  %v3145_v15 = vand.u32 4294901760, %v3144_v33  ;;  %v3159_v63 = vand.u32 4294901760, %v3158_v52  ;;  %v8063_v3 = vld [vmem:[#allocation24_spill] sm:$0xff] }
 0x3d6   :  { %v2720_v43 = vadd.f32 %v2719_v44, %v2523_v12  ;;  %3569 = vmatmul.f32.gmra.mxu2 %v3142_v50  ;;  %v3152_v50 = vsub.f32 %v3150_v47, %v3151_v18  ;;  %v3160_v48 = vsub.f32 %v3158_v52, %v3159_v63 }
 0x3d8   :  { %v2873_v17 = vadd.f32 %v2872_v21, %v2720_v43  ;;  %3751 = vmatmul.f32.gmra.mxu3 %v3143_v34  ;;  %v6663_v21 = vand.u32 4294901760, %v3027_v57  ;;  %v3153_v12 = vand.u32 4294901760, %v3152_v50 }
 0x3d9   :  { %v2324_v39 = vpop.f32.mrf.mxu0  ;;  %v2534_v26 = vpop.f32.mrf.mxu1 }
 0x3da   :  { %v6653_v25 = vmul.f32 %v2873_v17, %v8061_v56  ;;  %v2325_v45 = vadd.f32 %v2324_v39, %v6321_v9  ;;  %v2723_v23 = vpop.f32.mrf.mxu2  ;;  %v3166_v33 = vsub.f32 %v3027_v57, %v6663_v21  ;;  %v2970_v17 = vpop.trf.xlu1  ;;  %v3030_v39 = vsel %vm3010_vm5, %v2968_v22, 0 }
 0x3db   :  { %v2876_v7 = vpop.f32.mrf.mxu3 }
 0x3dc   :  { %8062 = vst [vmem:[#allocation48_spill] sm:$0xff] %v6653_v25  ;;  %v2529_v2 = vadd.f32 %v2528_v51, %v2325_v45  ;;  %3146 = vmatmul.f32.gmra.mxu0 %v3145_v15  ;;  %3421 = vmatmul.f32.gmra.mxu1 %v6645_v54  ;;  %v8065_v15 = vld [vmem:[#allocation26_spill] sm:$0xff]  ;;  %v3167_v50 = vand.u32 4294901760, %v3166_v33 }
 0x3de   :  { %v2724_v20 = vadd.f32 %v2723_v23, %v2529_v2  ;;  %3574 = vmatmul.f32.gmra.mxu2 %v3150_v47  ;;  %v3161_v23 = vand.u32 4294901760, %v3160_v48 }
 0x3e0   :  { %v2877_v36 = vadd.f32 %v2876_v7, %v2724_v20  ;;  %3757 = vmatmul.f32.gmra.mxu3 %v3151_v18  ;;  %v6672_v20 = vand.u32 4294901760, %v3030_v39 }
 0x3e1   :  { %v2329_v32 = vpop.f32.mrf.mxu0  ;;  %v2540_v9 = vpop.f32.mrf.mxu1 }
 0x3e2   :  { %v6660_v44 = vmul.f32 %v2877_v36, %v8063_v3  ;;  %v2330_v51 = vadd.f32 %v2329_v32, %v6331_v41  ;;  %v2727_v34 = vpop.f32.mrf.mxu2  ;;  %v3033_v32 = vsel %vm3010_vm5, %v2969_v29, 0 }
 0x3e3   :  { %v2880_v43 = vpop.f32.mrf.mxu3 }
 0x3e4   :  { %8064 = vst [vmem:[#allocation54_spill] sm:$0xff] %v6660_v44  ;;  %v2535_v49 = vadd.f32 %v2534_v26, %v2330_v51  ;;  %3154 = vmatmul.f32.gmra.mxu0 %v3153_v12  ;;  %3425 = vmatmul.f32.gmra.mxu1 %v6650_v28  ;;  %v8067_v26 = vld [vmem:[#allocation30_spill] sm:$0xff]  ;;  %v2971_v51 = vpop.trf.xlu1 }
 0x3e6   :  { %v2728_v47 = vadd.f32 %v2727_v34, %v2535_v49  ;;  %3579 = vmatmul.f32.gmra.mxu2 %v3158_v52  ;;  %v3174_v52 = vsub.f32 %v3030_v39, %v6672_v20  ;;  %v8068_v49 = vld [vmem:[#allocation27_spill] sm:$0xff] }
 0x3e8   :  { %v2881_v56 = vadd.f32 %v2880_v43, %v2728_v47  ;;  %3763 = vmatmul.f32.gmra.mxu3 %v3159_v63  ;;  %v3168_v63 = vsub.f32 %v3166_v33, %v3167_v50  ;;  %v6677_v43 = vand.u32 4294901760, %v3033_v32 }
 0x3e9   :  { %v2334_v41 = vpop.f32.mrf.mxu0  ;;  %v2546_v45 = vpop.f32.mrf.mxu1 }
 0x3ea   :  { %v6669_v18 = vmul.f32 %v2881_v56, %v8065_v15  ;;  %v2335_v7 = vadd.f32 %v2334_v41, %v8067_v26  ;;  %v2731_v2 = vpop.f32.mrf.mxu2  ;;  %v3169_v41 = vand.u32 4294901760, %v3168_v63  ;;  %v3182_v29 = vsub.f32 %v3033_v32, %v6677_v43 }
 0x3eb   :  { %v2884_v36 = vpop.f32.mrf.mxu3 }
 0x3ec   :  { %8066 = vst [vmem:[#allocation50_spill] sm:$0xff] %v6669_v18  ;;  %v2541_v57 = vadd.f32 %v2540_v9, %v2335_v7  ;;  %3162 = vmatmul.f32.gmra.mxu0 %v3161_v23  ;;  %3429 = vmatmul.f32.gmra.mxu1 %v6663_v21  ;;  %v8070_v9 = vld [vmem:[#allocation33_spill] sm:$0xff]  ;;  %v3175_v23 = vand.u32 4294901760, %v3174_v52  ;;  %v3036_v7 = vsel %vm3010_vm5, %v2970_v17, 0  ;;  %v2972_v32 = vpop.trf.xlu1 }
 0x3ee   :  { %v2732_v22 = vadd.f32 %v2731_v2, %v2541_v57  ;;  %3584 = vmatmul.f32.gmra.mxu2 %v3166_v33  ;;  %v3176_v26 = vsub.f32 %v3174_v52, %v3175_v23  ;;  %v3183_v57 = vand.u32 4294901760, %v3182_v29 }
 0x3f0   :  { %v2885_v3 = vadd.f32 %v2884_v36, %v2732_v22  ;;  %3769 = vmatmul.f32.gmra.mxu3 %v3167_v50  ;;  %v8071_v22 = vld [vmem:[#allocation28_spill] sm:$0xff]  ;;  %v3184_v17 = vsub.f32 %v3182_v29, %v3183_v57 }
 0x3f1   :  { %v2339_v34 = vpop.f32.mrf.mxu0  ;;  %v2552_v12 = vpop.f32.mrf.mxu1 }
 0x3f2   :  { %v6680_v48 = vmul.f32 %v2885_v3, %v8068_v49  ;;  %v2340_v47 = vadd.f32 %v2339_v34, %v8070_v9  ;;  %v2735_v56 = vpop.f32.mrf.mxu2  ;;  %v8073_v3 = vld [vmem:[#allocation35_spill] sm:$0xff]  ;;  %v6690_v49 = vand.u32 4294901760, %v3036_v7  ;;  %v3177_v9 = vand.u32 4294901760, %v3176_v26 }
 0x3f3   :  { %v2888_v39 = vpop.f32.mrf.mxu3 }
 0x3f4   :  { %8069 = vst [vmem:[#allocation56_spill] sm:$0xff] %v6680_v48  ;;  %v2547_v15 = vadd.f32 %v2546_v45, %v2340_v47  ;;  %3170 = vmatmul.f32.gmra.mxu0 %v3169_v41  ;;  %3433 = vmatmul.f32.gmra.mxu1 %v6672_v20  ;;  %v3190_v41 = vsub.f32 %v3036_v7, %v6690_v49 }
 0x3f6   :  { %v2736_v33 = vadd.f32 %v2735_v56, %v2547_v15  ;;  %3589 = vmatmul.f32.gmra.mxu2 %v3174_v52 }
 0x3f8   :  { %v2889_v2 = vadd.f32 %v2888_v39, %v2736_v33  ;;  %3775 = vmatmul.f32.gmra.mxu3 %v3175_v23  ;;  %v3039_v23 = vsel %vm3010_vm5, %v2971_v51, 0  ;;  %v2973_v51 = vpop.trf.xlu1 }
 0x3f9   :  { %v2344_v50 = vpop.f32.mrf.mxu0  ;;  %v2558_v36 = vpop.f32.mrf.mxu1 }
 0x3fa   :  { %v6687_v63 = vmul.f32 %v2889_v2, %v8071_v22  ;;  %v2345_v45 = vadd.f32 %v2344_v50, %v8073_v3  ;;  %v2739_v34 = vpop.f32.mrf.mxu2  ;;  %v3185_v2 = vand.u32 4294901760, %v3184_v17  ;;  %v8074_v50 = vld [vmem:[#allocation29_spill] sm:$0xff]  ;;  %v8076_v22 = vld [vmem:[#allocation34_spill] sm:$0xff] }
 0x3fb   :  { %v2892_v47 = vpop.f32.mrf.mxu3 }
 0x3fc   :  { %8072 = vst [vmem:[#allocation53_spill] sm:$0xff] %v6687_v63  ;;  %v2553_v56 = vadd.f32 %v2552_v12, %v2345_v45  ;;  %3178 = vmatmul.f32.gmra.mxu0 %v3177_v9  ;;  %3437 = vmatmul.f32.gmra.mxu1 %v6677_v43  ;;  %v6699_v45 = vand.u32 4294901760, %v3039_v23  ;;  %v3191_v9 = vand.u32 4294901760, %v3190_v41 }
 0x3fe   :  { %v2740_v52 = vadd.f32 %v2739_v34, %v2553_v56  ;;  %3594 = vmatmul.f32.gmra.mxu2 %v3182_v29  ;;  %v3198_v7 = vsub.f32 %v3039_v23, %v6699_v45 }
 0x400   :  { %v2893_v39 = vadd.f32 %v2892_v47, %v2740_v52  ;;  %3781 = vmatmul.f32.gmra.mxu3 %v3183_v57  ;;  %v3042_v57 = vsel %vm3010_vm5, %v2972_v32, 0  ;;  %v3192_v47 = vsub.f32 %v3190_v41, %v3191_v9 }
 0x401   :  { %v2349_v15 = vpop.f32.mrf.mxu0  ;;  %v2564_v33 = vpop.f32.mrf.mxu1 }
 0x402   :  { %v6696_v26 = vmul.f32 %v2893_v39, %v8074_v50  ;;  %v2350_v12 = vadd.f32 %v2349_v15, %v8076_v22  ;;  %v2743_v3 = vpop.f32.mrf.mxu2  ;;  %v6704_v15 = vand.u32 4294901760, %v3042_v57  ;;  %v8077_v50 = vld [vmem:[#allocation31_spill] sm:$0xff] }
 0x403   :  { %v2896_v34 = vpop.f32.mrf.mxu3 }
 0x404   :  { %8075 = vst [vmem:[#allocation51_spill] sm:$0xff] %v6696_v26  ;;  %v2559_v56 = vadd.f32 %v2558_v36, %v2350_v12  ;;  %3186 = vmatmul.f32.gmra.mxu0 %v3185_v2  ;;  %3441 = vmatmul.f32.gmra.mxu1 %v6690_v49  ;;  %v3193_v12 = vand.u32 4294901760, %v3192_v47  ;;  %v3206_v32 = vsub.f32 %v3042_v57, %v6704_v15  ;;  %v8079_v47 = vld [vmem:[#allocation32_spill] sm:$0xff] }
 0x406   :  { %v2744_v29 = vadd.f32 %v2743_v3, %v2559_v56  ;;  %3599 = vmatmul.f32.gmra.mxu2 %v3190_v41  ;;  %v3199_v3 = vand.u32 4294901760, %v3198_v7 }
 0x408   :  { %v2897_v17 = vadd.f32 %v2896_v34, %v2744_v29  ;;  %3787 = vmatmul.f32.gmra.mxu3 %v3191_v9  ;;  %v3200_v9 = vsub.f32 %v3198_v7, %v3199_v3  ;;  %v2974_v34 = vpop.trf.xlu1  ;;  %v3045_v29 = vsel %vm3010_vm5, %v2973_v51, 0 }
 0x409   :  { %v2354_v52 = vpop.f32.mrf.mxu0  ;;  %v2570_v39 = vpop.f32.mrf.mxu1 }
 0x40a   :  { %v6707_v22 = vmul.f32 %v2897_v17, %v8077_v50  ;;  %v2355_v36 = vadd.f32 %v2354_v52, %v6388_v13  ;;  %v2747_v2 = vpop.f32.mrf.mxu2  ;;  %v3207_v52 = vand.u32 4294901760, %v3206_v32  ;;  %v3201_v57 = vand.u32 4294901760, %v3200_v9 }
 0x40b   :  { %v2900_v56 = vpop.f32.mrf.mxu3 }
 0x40c   :  { %8078 = vst [vmem:[#allocation57_spill] sm:$0xff] %v6707_v22  ;;  %v2565_v23 = vadd.f32 %v2564_v33, %v2355_v36  ;;  %3194 = vmatmul.f32.gmra.mxu0 %v3193_v12  ;;  %3445 = vmatmul.f32.gmra.mxu1 %v6699_v45  ;;  %v8081_v33 = vld [vmem:[#allocation36_spill] sm:$0xff]  ;;  %v6717_v22 = vand.u32 4294901760, %v3045_v29  ;;  %v3208_v51 = vsub.f32 %v3206_v32, %v3207_v52 }
 0x40e   :  { %v2748_v41 = vadd.f32 %v2747_v2, %v2565_v23  ;;  %3604 = vmatmul.f32.gmra.mxu2 %v3198_v7 }
 0x410   :  { %v2901_v17 = vadd.f32 %v2900_v56, %v2748_v41  ;;  %3793 = vmatmul.f32.gmra.mxu3 %v3199_v3  ;;  %v3214_v3 = vsub.f32 %v3045_v29, %v6717_v22  ;;  %v3048_v56 = vsel %vm3010_vm5, %v2974_v34, 0 }
 0x411   :  { %v2359_v50 = vpop.f32.mrf.mxu0  ;;  %v2576_v13 = vpop.f32.mrf.mxu1 }
 0x412   :  { %v6714_v10 = vmul.f32 %v2901_v17, %v8079_v47  ;;  %v2360_v36 = vadd.f32 %v2359_v50, %v8081_v33  ;;  %v2751_v12 = vpop.f32.mrf.mxu2  ;;  %v2975_v17 = vpop.trf.xlu1  ;;  %v3209_v33 = vand.u32 4294901760, %v3208_v51 }
 0x413   :  { %v2904_v2 = vpop.f32.mrf.mxu3 }
 0x414   :  { %8080 = vst [vmem:[#allocation55_spill] sm:$0xff] %v6714_v10  ;;  %v2571_v23 = vadd.f32 %v2570_v39, %v2360_v36  ;;  %3202 = vmatmul.f32.gmra.mxu0 %v3201_v57  ;;  %3449 = vmatmul.f32.gmra.mxu1 %v6704_v15  ;;  %v8082_v10 = vld [vmem:[#allocation16_spill] sm:$0xff]  ;;  %v6726_v57 = vand.u32 4294901760, %v3048_v56 }
 0x416   :  { %v2752_v7 = vadd.f32 %v2751_v12, %v2571_v23  ;;  %3609 = vmatmul.f32.gmra.mxu2 %v3206_v32  ;;  %v3215_v12 = vand.u32 4294901760, %v3214_v3  ;;  %v3222_v34 = vsub.f32 %v3048_v56, %v6726_v57 }
 0x418   :  { %v2905_v41 = vadd.f32 %v2904_v2, %v2752_v7  ;;  %3799 = vmatmul.f32.gmra.mxu3 %v3207_v52  ;;  %v3051_v52 = vsel %vm3010_vm5, %v2975_v17, 0  ;;  %v3216_v2 = vsub.f32 %v3214_v3, %v3215_v12 }
 0x419   :  { %v2364_v50 = vpop.f32.mrf.mxu0  ;;  %v2582_v47 = vpop.f32.mrf.mxu1 }
 0x41a   :  { %v6723_v9 = vmul.f32 %v2905_v41, %v8082_v10  ;;  %v2365_v39 = vadd.f32 %v2364_v50, %v6408_v24  ;;  %v2755_v36 = vpop.f32.mrf.mxu2  ;;  %v2994_v10 = vpop.trf.xlu2  ;;  %v6731_v41 = vand.u32 4294901760, %v3051_v52  ;;  %v8084_v50 = vld [vmem:[#allocation17_spill] sm:$0xff] }
 0x41b   :  { %v2908_v23 = vpop.f32.mrf.mxu3  ;;  %v2976_v56 = vpop.trf.xlu1 }
 0x41c   :  { %8083 = vst [vmem:[#allocation59_spill] sm:$0xff] %v6723_v9  ;;  %v2577_v29 = vadd.f32 %v2576_v13, %v2365_v39  ;;  %3210 = vmatmul.f32.gmra.mxu0 %v3209_v33  ;;  %3453 = vmatmul.f32.gmra.mxu1 %v6717_v22  ;;  %v3217_v39 = vand.u32 4294901760, %v3216_v2 }
 0x41e   :  { %v2756_v32 = vadd.f32 %v2755_v36, %v2577_v29  ;;  %3614 = vmatmul.f32.gmra.mxu2 %v3214_v3  ;;  %v3223_v36 = vand.u32 4294901760, %v3222_v34  ;;  %v3230_v3 = vsub.f32 %v3051_v52, %v6731_v41 }
 0x420   :  { %v2909_v51 = vadd.f32 %v2908_v23, %v2756_v32  ;;  %3805 = vmatmul.f32.gmra.mxu3 %v3215_v12  ;;  %v3224_v12 = vsub.f32 %v3222_v34, %v3223_v36  ;;  %v3054_v32 = vsel %vm3010_vm5, %v2976_v56, 0  ;;  %v3231_v2 = vand.u32 4294901760, %v3230_v3 }
 0x421   :  { %v2369_v24 = vpop.f32.mrf.mxu0  ;;  %v2588_v7 = vpop.f32.mrf.mxu1 }
 0x422   :  { %v6734_v9 = vmul.f32 %v2909_v51, %v8084_v50  ;;  %v2370_v13 = vadd.f32 %v2369_v24, %v6418_v31  ;;  %v2759_v33 = vpop.f32.mrf.mxu2  ;;  %v2995_v23 = vpop.trf.xlu2  ;;  %v8086_v50 = vld [vmem:[#allocation40_spill] sm:$0xff]  ;;  %v3225_v52 = vand.u32 4294901760, %v3224_v12  ;;  %v3232_v56 = vsub.f32 %v3230_v3, %v3231_v2  ;;  %v8088_v12 = vld [vmem:[#allocation37_spill] sm:$0xff] }
 0x423   :  { %v2912_v29 = vpop.f32.mrf.mxu3 }
 0x424   :  { %8085 = vst [vmem:[#allocation58_spill] sm:$0xff] %v6734_v9  ;;  %v2583_v26 = vadd.f32 %v2582_v47, %v2370_v13  ;;  %3218 = vmatmul.f32.gmra.mxu0 %v3217_v39  ;;  %3457 = vmatmul.f32.gmra.mxu1 %v6726_v57  ;;  %v6744_v39 = vand.u32 4294901760, %v3054_v32 }
 0x426   :  { %v2760_v17 = vadd.f32 %v2759_v33, %v2583_v26  ;;  %3619 = vmatmul.f32.gmra.mxu2 %v3222_v34  ;;  %v2977_v34 = vpop.trf.xlu1 }
 0x428   :  { %v2913_v51 = vadd.f32 %v2912_v29, %v2760_v17  ;;  %3811 = vmatmul.f32.gmra.mxu3 %v3223_v36  ;;  %v3238_v29 = vsub.f32 %v3054_v32, %v6744_v39 }
 0x429   :  { %v2374_v31 = vpop.f32.mrf.mxu0  ;;  %v2594_v24 = vpop.f32.mrf.mxu1 }
 0x42a   :  { %v6741_v9 = vmul.f32 %v2913_v51, %v8086_v50  ;;  %v2375_v47 = vadd.f32 %v2374_v31, %v6428_v1  ;;  %v2763_v13 = vpop.f32.mrf.mxu2  ;;  %v2996_v17 = vpop.trf.xlu2  ;;  %v3057_v51 = vsel %vm3010_vm5, %v2977_v34, 0 }
 0x42b   :  { %v2916_v26 = vpop.f32.mrf.mxu3  ;;  %v6753_v48 = vand.u32 4294901760, %v3057_v51 }
 0x42c   :  { %8087 = vst [vmem:[#allocation61_spill] sm:$0xff] %v6741_v9  ;;  %v2589_v33 = vadd.f32 %v2588_v7, %v2375_v47  ;;  %3226 = vmatmul.f32.gmra.mxu0 %v3225_v52  ;;  %3461 = vmatmul.f32.gmra.mxu1 %v6731_v41  ;;  %v3233_v9 = vand.u32 4294901760, %v3232_v56  ;;  %v8090_v7 = vld [vmem:[#allocation39_spill] sm:$0xff] }
 0x42e   :  { %v2764_v36 = vadd.f32 %v2763_v13, %v2589_v33  ;;  %3624 = vmatmul.f32.gmra.mxu2 %v3230_v3  ;;  %v3239_v13 = vand.u32 4294901760, %v3238_v29 }
 0x430   :  { %v2917_v50 = vadd.f32 %v2916_v26, %v2764_v36  ;;  %3817 = vmatmul.f32.gmra.mxu3 %v3231_v2  ;;  %v3246_v2 = vsub.f32 %v3057_v51, %v6753_v48  ;;  %v3060_v26 = vsel %vm3010_vm5, %v2994_v10, 0  ;;  %v3240_v34 = vsub.f32 %v3238_v29, %v3239_v13 }
 0x431   :  { %v2379_v1 = vpop.f32.mrf.mxu0  ;;  %v2600_v31 = vpop.f32.mrf.mxu1 }
 0x432   :  { %v6750_v63 = vmul.f32 %v2917_v50, %v8088_v12  ;;  %v2380_v47 = vadd.f32 %v2379_v1, %v8090_v7  ;;  %v2767_v52 = vpop.f32.mrf.mxu2  ;;  %v2997_v56 = vpop.trf.xlu2  ;;  %v6758_v12 = vand.u32 4294901760, %v3060_v26  ;;  %v8091_v7 = vld [vmem:[#allocation43_spill] sm:$0xff] }
 0x433   :  { %v2920_v33 = vpop.f32.mrf.mxu3 }
 0x434   :  { %8089 = vst [vmem:[#allocation60_spill] sm:$0xff] %v6750_v63  ;;  %v2595_v32 = vadd.f32 %v2594_v24, %v2380_v47  ;;  %3234 = vmatmul.f32.gmra.mxu0 %v3233_v9  ;;  %3465 = vmatmul.f32.gmra.mxu1 %v6744_v39  ;;  %v3241_v47 = vand.u32 4294901760, %v3240_v34  ;;  %v3254_v10 = vsub.f32 %v3060_v26, %v6758_v12 }
 0x436   :  { %v2768_v3 = vadd.f32 %v2767_v52, %v2595_v32  ;;  %3629 = vmatmul.f32.gmra.mxu2 %v3238_v29  ;;  %v3247_v52 = vand.u32 4294901760, %v3246_v2 }
 0x438   :  { %v2921_v36 = vadd.f32 %v2920_v33, %v2768_v3  ;;  %3823 = vmatmul.f32.gmra.mxu3 %v3239_v13  ;;  %v3248_v13 = vsub.f32 %v3246_v2, %v3247_v52  ;;  %v3063_v3 = vsel %vm3010_vm5, %v2995_v23, 0 }
 0x439   :  { %v2384_v50 = vpop.f32.mrf.mxu0  ;;  %v2606_v1 = vpop.f32.mrf.mxu1 }
 0x43a   :  { %v6761_v63 = vmul.f32 %v2921_v36, %v8091_v7  ;;  %v2385_v9 = vadd.f32 %v2384_v50, %v6448_v61  ;;  %v2771_v24 = vpop.f32.mrf.mxu2  ;;  %v2998_v33 = vpop.trf.xlu2  ;;  %v3255_v50 = vand.u32 4294901760, %v3254_v10  ;;  %v3249_v26 = vand.u32 4294901760, %v3248_v13 }
 0x43b   :  { %v2924_v51 = vpop.f32.mrf.mxu3 }
 0x43c   :  { %8092 = vst [vmem:[#allocation63_spill] sm:$0xff] %v6761_v63  ;;  %v2601_v32 = vadd.f32 %v2600_v31, %v2385_v9  ;;  %3242 = vmatmul.f32.gmra.mxu0 %v3241_v47  ;;  %3469 = vmatmul.f32.gmra.mxu1 %v6753_v48  ;;  %v6771_v47 = vand.u32 4294901760, %v3063_v3  ;;  %v3256_v23 = vsub.f32 %v3254_v10, %v3255_v50 }
 0x43e   :  { %v2772_v29 = vadd.f32 %v2771_v24, %v2601_v32  ;;  %3634 = vmatmul.f32.gmra.mxu2 %v3246_v2 }
 0x440   :  { %v2925_v36 = vadd.f32 %v2924_v51, %v2772_v29  ;;  %3829 = vmatmul.f32.gmra.mxu3 %v3247_v52  ;;  %v3262_v52 = vsub.f32 %v3063_v3, %v6771_v47  ;;  %v3066_v51 = vsel %vm3010_vm5, %v2996_v17, 0 }
 0x441   :  { %v2389_v7 = vpop.f32.mrf.mxu0  ;;  %v3410_v61 = vpop.f32.mrf.mxu1 }
 0x442   :  { %v6768_v34 = vmul.f32 %v2925_v36, %v6446_v55  ;;  %v2390_v31 = vadd.f32 %v2389_v7, %v6458_v4  ;;  %v2775_v9 = vpop.f32.mrf.mxu2  ;;  %v2999_v29 = vpop.trf.xlu2  ;;  %v3257_v7 = vand.u32 4294901760, %v3256_v23 }
 0x443   :  { %v2928_v24 = vpop.f32.mrf.mxu3 }
 0x444   :  { %8093 = vst [vmem:[#allocation62_spill] sm:$0xff] %v6768_v34  ;;  %v2607_v32 = vadd.f32 %v2606_v1, %v2390_v31  ;;  %3250 = vmatmul.f32.gmra.mxu0 %v3249_v26  ;;  %3473 = vmatmul.f32.gmra.mxu1 %v6758_v12  ;;  %v6779_v26 = vand.u32 4294901760, %v3066_v51  ;;  %v3263_v34 = vand.u32 4294901760, %v3262_v52 }
 0x446   :  { %v2776_v2 = vadd.f32 %v2775_v9, %v2607_v32  ;;  %3639 = vmatmul.f32.gmra.mxu2 %v3254_v10  ;;  %v3270_v10 = vsub.f32 %v3066_v51, %v6779_v26  ;;  %v3264_v3 = vsub.f32 %v3262_v52, %v3263_v34 }
 0x448   :  { %v2929_v55 = vadd.f32 %v2928_v24, %v2776_v2  ;;  %3835 = vmatmul.f32.gmra.mxu3 %v3255_v50  ;;  %v3069_v50 = vsel %vm3010_vm5, %v2997_v56, 0 }
 0x449   :  { %v3131_v4 = vpop.f32.mrf.mxu0  ;;  %v3414_v36 = vpop.f32.mrf.mxu1  ;;  %v6786_v2 = vand.u32 4294901760, %v3069_v50 }
 0x44a   :  { %v6777_v13 = vmul.f32 %v2929_v55, %v6456_v38  ;;  %v3411_v1 = vadd.f32 %v3410_v61, %v3131_v4  ;;  %v3560_v31 = vpop.f32.mrf.mxu2  ;;  %v3265_v55 = vand.u32 4294901760, %v3264_v3  ;;  %v3271_v4 = vand.u32 4294901760, %v3270_v10 }
 0x44b   :  { %v3740_v9 = vpop.f32.mrf.mxu3 }
 0x44c   :  { %8094 = vst [vmem:[#allocation65_spill] sm:$0xff] %v6777_v13  ;;  %v3561_v32 = vadd.f32 %v3560_v31, %v3411_v1  ;;  %3258 = vmatmul.f32.gmra.mxu0 %v3257_v7  ;;  %3477 = vmatmul.f32.gmra.mxu1 %v6771_v47  ;;  %v3000_v7 = vpop.trf.xlu2  ;;  %v3272_v56 = vsub.f32 %v3270_v10, %v3271_v4 }
 0x44e   :  { %v6782_v17 = vadd.f32 %v3740_v9, %v3561_v32  ;;  %3644 = vmatmul.f32.gmra.mxu2 %v3262_v52  ;;  %v3278_v52 = vsub.f32 %v3069_v50, %v6786_v2  ;;  %v3273_v13 = vand.u32 4294901760, %v3272_v56 }
 0x450   :  { %3841 = vmatmul.f32.gmra.mxu3 %v3263_v34  ;;  %v3072_v34 = vsel %vm3010_vm5, %v2998_v33, 0 }
 0x451   :  { %v3139_v38 = vpop.f32.mrf.mxu0  ;;  %v3418_v61 = vpop.f32.mrf.mxu1 }
 0x452   :  { %v3415_v24 = vadd.f32 %v3414_v36, %v3139_v38  ;;  %v3565_v23 = vpop.f32.mrf.mxu2  ;;  %v6793_v38 = vand.u32 4294901760, %v3072_v34 }
 0x453   :  { %v3746_v1 = vpop.f32.mrf.mxu3 }
 0x454   :  { %v3566_v31 = vadd.f32 %v3565_v23, %v3415_v24  ;;  %3266 = vmatmul.f32.gmra.mxu0 %v3265_v55  ;;  %3481 = vmatmul.f32.gmra.mxu1 %v6779_v26  ;;  %v3279_v24 = vand.u32 4294901760, %v3278_v52 }
 0x456   :  { %v6789_v51 = vadd.f32 %v3746_v1, %v3566_v31  ;;  %3649 = vmatmul.f32.gmra.mxu2 %v3270_v10  ;;  %v3001_v1 = vpop.trf.xlu2  ;;  %v3286_v10 = vsub.f32 %v3072_v34, %v6793_v38  ;;  %v3280_v33 = vsub.f32 %v3278_v52, %v3279_v24 }
 0x458   :  { %3847 = vmatmul.f32.gmra.mxu3 %v3271_v4  ;;  %v3075_v4 = vsel %vm3010_vm5, %v2999_v29, 0 }
 0x459   :  { %v3147_v36 = vpop.f32.mrf.mxu0  ;;  %v3422_v9 = vpop.f32.mrf.mxu1  ;;  %v6800_v63 = vand.u32 4294901760, %v3075_v4 }
 0x45a   :  { %v3419_v32 = vadd.f32 %v3418_v61, %v3147_v36  ;;  %v3570_v3 = vpop.f32.mrf.mxu2 }
 0x45b   :  { %v3752_v23 = vpop.f32.mrf.mxu3 }
 0x45c   :  { %v3571_v55 = vadd.f32 %v3570_v3, %v3419_v32  ;;  %3274 = vmatmul.f32.gmra.mxu0 %v3273_v13  ;;  %3485 = vmatmul.f32.gmra.mxu1 %v6786_v2  ;;  %v3281_v32 = vand.u32 4294901760, %v3280_v33  ;;  %v3287_v13 = vand.u32 4294901760, %v3286_v10 }
 0x45e   :  { %v6796_v50 = vadd.f32 %v3752_v23, %v3571_v55  ;;  %3654 = vmatmul.f32.gmra.mxu2 %v3278_v52  ;;  %v3294_v52 = vsub.f32 %v3075_v4, %v6800_v63  ;;  %v3288_v29 = vsub.f32 %v3286_v10, %v3287_v13  ;;  %v3002_v34 = vpop.trf.xlu2  ;;  %v3081_v4 = vsel %vm3010_vm5, %v3001_v1, 0 }
 0x45f   :  { %v6814_v6 = vand.u32 4294901760, %v3081_v4 }
 0x460   :  { %3853 = vmatmul.f32.gmra.mxu3 %v3279_v24  ;;  %v3078_v24 = vsel %vm3010_vm5, %v3000_v7, 0 }
 0x461   :  { %v3155_v61 = vpop.f32.mrf.mxu0  ;;  %v3426_v31 = vpop.f32.mrf.mxu1  ;;  %v6807_v44 = vand.u32 4294901760, %v3078_v24 }
 0x462   :  { %v3423_v36 = vadd.f32 %v3422_v9, %v3155_v61  ;;  %v3575_v56 = vpop.f32.mrf.mxu2 }
 0x463   :  { %v3758_v3 = vpop.f32.mrf.mxu3 }
 0x464   :  { %v3576_v18 = vadd.f32 %v3575_v56, %v3423_v36  ;;  %3282 = vmatmul.f32.gmra.mxu0 %v3281_v32  ;;  %3489 = vmatmul.f32.gmra.mxu1 %v6793_v38  ;;  %v3289_v36 = vand.u32 4294901760, %v3288_v29  ;;  %v3295_v56 = vand.u32 4294901760, %v3294_v52 }
 0x466   :  { %v6803_v23 = vadd.f32 %v3758_v3, %v3576_v18  ;;  %3659 = vmatmul.f32.gmra.mxu2 %v3286_v10  ;;  %v3302_v10 = vsub.f32 %v3078_v24, %v6807_v44  ;;  %v3296_v7 = vsub.f32 %v3294_v52, %v3295_v56  ;;  %v3084_v24 = vsel %vm3010_vm5, %v3002_v34, 0 }
 0x468   :  { %3859 = vmatmul.f32.gmra.mxu3 %v3287_v13 }
 0x469   :  { %v3163_v9 = vpop.f32.mrf.mxu0  ;;  %v3430_v55 = vpop.f32.mrf.mxu1 }
 0x46a   :  { %v3427_v61 = vadd.f32 %v3426_v31, %v3163_v9  ;;  %v3580_v33 = vpop.f32.mrf.mxu2  ;;  %v3003_v31 = vpop.trf.xlu2 }
 0x46b   :  { %v3764_v32 = vpop.f32.mrf.mxu3 }
 0x46c   :  { %v3581_v25 = vadd.f32 %v3580_v33, %v3427_v61  ;;  %3290 = vmatmul.f32.gmra.mxu0 %v3289_v36  ;;  %3493 = vmatmul.f32.gmra.mxu1 %v6800_v63  ;;  %v3297_v61 = vand.u32 4294901760, %v3296_v7  ;;  %v3303_v33 = vand.u32 4294901760, %v3302_v10  ;;  %v6821_v7 = vand.u32 4294901760, %v3084_v24 }
 0x46e   :  { %v6810_v18 = vadd.f32 %v3764_v32, %v3581_v25  ;;  %3664 = vmatmul.f32.gmra.mxu2 %v3294_v52  ;;  %v3310_v52 = vsub.f32 %v3081_v4, %v6814_v6  ;;  %v3304_v1 = vsub.f32 %v3302_v10, %v3303_v33  ;;  %v3087_v4 = vsel %vm3010_vm5, %v3003_v31, 0 }
 0x470   :  { %3865 = vmatmul.f32.gmra.mxu3 %v3295_v56  ;;  %v3305_v37 = vand.u32 4294901760, %v3304_v1 }
 0x471   :  { %v3171_v13 = vpop.f32.mrf.mxu0  ;;  %v3434_v3 = vpop.f32.mrf.mxu1 }
 0x472   :  { %v3431_v9 = vadd.f32 %v3430_v55, %v3171_v13  ;;  %v3585_v29 = vpop.f32.mrf.mxu2 }
 0x473   :  { %v3770_v36 = vpop.f32.mrf.mxu3 }
 0x474   :  { %v3586_v11 = vadd.f32 %v3585_v29, %v3431_v9  ;;  %3298 = vmatmul.f32.gmra.mxu0 %v3297_v61  ;;  %3497 = vmatmul.f32.gmra.mxu1 %v6807_v44  ;;  %v3311_v9 = vand.u32 4294901760, %v3310_v52  ;;  %v3004_v29 = vpop.trf.xlu2 }
 0x476   :  { %v6817_v25 = vadd.f32 %v3770_v36, %v3586_v11  ;;  %3669 = vmatmul.f32.gmra.mxu2 %v3302_v10  ;;  %v3318_v10 = vsub.f32 %v3084_v24, %v6821_v7  ;;  %v3312_v34 = vsub.f32 %v3310_v52, %v3311_v9 }
 0x478   :  { %3871 = vmatmul.f32.gmra.mxu3 %v3303_v33 }
 0x479   :  { %v3179_v55 = vpop.f32.mrf.mxu0  ;;  %v3438_v56 = vpop.f32.mrf.mxu1 }
 0x47a   :  { %v3435_v32 = vadd.f32 %v3434_v3, %v3179_v55  ;;  %v3590_v13 = vpop.f32.mrf.mxu2  ;;  %v6830_v55 = vand.u32 4294901760, %v3087_v4 }
 0x47b   :  { %v3776_v61 = vpop.f32.mrf.mxu3 }
 0x47c   :  { %v3591_v60 = vadd.f32 %v3590_v13, %v3435_v32  ;;  %3306 = vmatmul.f32.gmra.mxu0 %v3305_v37  ;;  %3501 = vmatmul.f32.gmra.mxu1 %v6814_v6  ;;  %8095 = vst [vmem:[#allocation64_spill] sm:$0xff] %v6830_v55  ;;  %v3313_v32 = vand.u32 4294901760, %v3312_v34  ;;  %v3319_v37 = vand.u32 4294901760, %v3318_v10  ;;  %v3326_v31 = vsub.f32 %v3087_v4, %v6830_v55 }
 0x47e   :  { %v6824_v11 = vadd.f32 %v3776_v61, %v3591_v60  ;;  %3674 = vmatmul.f32.gmra.mxu2 %v3310_v52  ;;  %v3005_v60 = vpop.trf.xlu2  ;;  %v3320_v52 = vsub.f32 %v3318_v10, %v3319_v37 }
 0x47f   :  { %v3093_v4 = vsel %vm3010_vm5, %v3005_v60, 0 }
 0x480   :  { %3877 = vmatmul.f32.gmra.mxu3 %v3311_v9  ;;  %v3090_v9 = vsel %vm3010_vm5, %v3004_v29, 0 }
 0x481   :  { %v3187_v3 = vpop.f32.mrf.mxu0  ;;  %v6828_v33 = vpop.f32.mrf.mxu1 }
 0x482   :  { %v3439_v36 = vadd.f32 %v3438_v56, %v3187_v3  ;;  %v3595_v1 = vpop.f32.mrf.mxu2  ;;  %v6843_v3 = vand.u32 4294901760, %v3090_v9 }
 0x483   :  { %v3782_v13 = vpop.f32.mrf.mxu3 }
 0x484   :  { %v3596_v27 = vadd.f32 %v3595_v1, %v3439_v36  ;;  %3314 = vmatmul.f32.gmra.mxu0 %v3313_v32  ;;  %3505 = vmatmul.f32.gmra.mxu1 %v6821_v7  ;;  %8096 = vst [vmem:[#allocation66_spill] sm:$0xff] %v6843_v3  ;;  %v3321_v36 = vand.u32 4294901760, %v3320_v52  ;;  %v3327_v1 = vand.u32 4294901760, %v3326_v31  ;;  %v6856_v52 = vand.u32 4294901760, %v3093_v4 }
 0x486   :  { %v6833_v24 = vadd.f32 %v3782_v13, %v3596_v27  ;;  %3679 = vmatmul.f32.gmra.mxu2 %v3318_v10  ;;  %v3334_v27 = vsub.f32 %v3090_v9, %v6843_v3  ;;  %v3328_v29 = vsub.f32 %v3326_v31, %v3327_v1  ;;  %v3006_v10 = vpop.trf.xlu2  ;;  %8099 = vst [vmem:[#allocation70_spill] sm:$0xff] %v6856_v52 }
 0x487   :  { %v3096_v9 = vsel %vm3010_vm5, %v3006_v10, 0 }
 0x488   :  { %3883 = vmatmul.f32.gmra.mxu3 %v3319_v37  ;;  %v3329_v62 = vand.u32 4294901760, %v3328_v29  ;;  %v6869_v29 = vand.u32 4294901760, %v3096_v9 }
 0x489   :  { %v6837_v56 = vpop.f32.mrf.mxu0  ;;  %v6839_v61 = vpop.f32.mrf.mxu1 }
 0x48a   :  { %v6841_v34 = vpop.f32.mrf.mxu2  ;;  %8104 = vst [vmem:[#allocation73_spill] sm:$0xff] %v6869_v29 }
 0x48b   :  { %v6845_v32 = vpop.f32.mrf.mxu3 }
 0x48c   :  { %3322 = vmatmul.f32.gmra.mxu0 %v3321_v36  ;;  %3509 = vmatmul.f32.gmra.mxu1 %v6830_v55  ;;  %v3335_v36 = vand.u32 4294901760, %v3334_v27 }
 0x48e   :  { %3684 = vmatmul.f32.gmra.mxu2 %v3326_v31  ;;  %v3342_v31 = vsub.f32 %v3093_v4, %v6856_v52  ;;  %v3336_v60 = vsub.f32 %v3334_v27, %v3335_v36 }
 0x490   :  { %3889 = vmatmul.f32.gmra.mxu3 %v3327_v1  ;;  %v3007_v1 = vpop.trf.xlu2 }
 0x491   :  { %v6850_v37 = vpop.f32.mrf.mxu0  ;;  %v6852_v13 = vpop.f32.mrf.mxu1  ;;  %v3099_v4 = vsel %vm3010_vm5, %v3007_v1, 0 }
 0x492   :  { %8097 = vst [vmem:[#allocation68_spill] sm:$0xff] %v6852_v13  ;;  %v6854_v35 = vpop.f32.mrf.mxu2 }
 0x493   :  { %8098 = vst [vmem:[#allocation67_spill] sm:$0xff] %v6854_v35  ;;  %v6858_v58 = vpop.f32.mrf.mxu3 }
 0x494   :  { %8100 = vst [vmem:[#allocation69_spill] sm:$0xff] %v6858_v58  ;;  %3330 = vmatmul.f32.gmra.mxu0 %v3329_v62  ;;  %3513 = vmatmul.f32.gmra.mxu1 %v6843_v3  ;;  %v3337_v58 = vand.u32 4294901760, %v3336_v60  ;;  %v3343_v62 = vand.u32 4294901760, %v3342_v31  ;;  %v6882_v60 = vand.u32 4294901760, %v3099_v4 }
 0x496   :  { %3689 = vmatmul.f32.gmra.mxu2 %v3334_v27  ;;  %v3350_v27 = vsub.f32 %v3096_v9, %v6869_v29  ;;  %v3344_v10 = vsub.f32 %v3342_v31, %v3343_v62  ;;  %8108 = vst [vmem:[#allocation74_spill] sm:$0xff] %v6882_v60 }
 0x498   :  { %3895 = vmatmul.f32.gmra.mxu3 %v3335_v36 }
 0x499   :  { %v6863_v13 = vpop.f32.mrf.mxu0  ;;  %v6865_v0 = vpop.f32.mrf.mxu1 }
 0x49a   :  { %8101 = vst [vmem:[#allocation72_spill] sm:$0xff] %v6863_v13  ;;  %v6867_v55 = vpop.f32.mrf.mxu2 }
 0x49b   :  { %8102 = vst [vmem:[#allocation71_spill] sm:$0xff] %v6865_v0  ;;  %v6871_v35 = vpop.f32.mrf.mxu3 }
 0x49c   :  { %8103 = vst [vmem:[#allocation75_spill] sm:$0xff] %v6867_v55  ;;  %3338 = vmatmul.f32.gmra.mxu0 %v3337_v58  ;;  %3517 = vmatmul.f32.gmra.mxu1 %v6856_v52  ;;  %v3345_v55 = vand.u32 4294901760, %v3344_v10  ;;  %v3008_v58 = vpop.trf.xlu2 }
 0x49d   :  { %8105 = vst [vmem:[#allocation77_spill] sm:$0xff] %v6871_v35  ;;  %v3351_v35 = vand.u32 4294901760, %v3350_v27  ;;  %v3102_v1 = vsel %vm3010_vm5, %v3008_v58, 0 }
 0x49e   :  { %3694 = vmatmul.f32.gmra.mxu2 %v3342_v31  ;;  %v3358_v31 = vsub.f32 %v3099_v4, %v6882_v60  ;;  %v6895_v10 = vand.u32 4294901760, %v3102_v1 }
 0x49f   :  { %v3352_v9 = vsub.f32 %v3350_v27, %v3351_v35 }
 0x4a0   :  { %3901 = vmatmul.f32.gmra.mxu3 %v3343_v62  ;;  %8113 = vst [vmem:[#allocation18_spill] sm:$0xff] %v6895_v10 }
 0x4a1   :  { %v6876_v36 = vpop.f32.mrf.mxu0  ;;  %v6878_v0 = vpop.f32.mrf.mxu1 }
 0x4a2   :  { %8106 = vst [vmem:[#allocation80_spill] sm:$0xff] %v6878_v0  ;;  %v6880_v3 = vpop.f32.mrf.mxu2 }
 0x4a3   :  { %8107 = vst [vmem:[#allocation76_spill] sm:$0xff] %v6880_v3  ;;  %v6884_v13 = vpop.f32.mrf.mxu3  ;;  %v3353_v3 = vand.u32 4294901760, %v3352_v9 }
 0x4a4   :  { %8109 = vst [vmem:[#allocation79_spill] sm:$0xff] %v6884_v13  ;;  %3346 = vmatmul.f32.gmra.mxu0 %v3345_v55  ;;  %3521 = vmatmul.f32.gmra.mxu1 %v6869_v29  ;;  %v3359_v13 = vand.u32 4294901760, %v3358_v31  ;;  %v3009_v4 = vpop.trf.xlu2 }
 0x4a5   :  { %v3105_v58 = vsel %vm3010_vm5, %v3009_v4, 0 }
 0x4a6   :  { %3699 = vmatmul.f32.gmra.mxu2 %v3350_v27  ;;  %v3366_v27 = vsub.f32 %v3102_v1, %v6895_v10  ;;  %v6908_v9 = vand.u32 4294901760, %v3105_v58 }
 0x4a8   :  { %3907 = vmatmul.f32.gmra.mxu3 %v3351_v35  ;;  %v3360_v35 = vsub.f32 %v3358_v31, %v3359_v13  ;;  %8118 = vst [vmem:[#allocation22_spill] sm:$0xff] %v6908_v9 }
 0x4a9   :  { %v6889_v62 = vpop.f32.mrf.mxu0  ;;  %v6891_v0 = vpop.f32.mrf.mxu1 }
 0x4aa   :  { %8110 = vst [vmem:[#allocation81_spill] sm:$0xff] %v6889_v62  ;;  %v6893_v52 = vpop.f32.mrf.mxu2 }
 0x4ab   :  { %8111 = vst [vmem:[#allocation78_spill] sm:$0xff] %v6891_v0  ;;  %v6897_v55 = vpop.f32.mrf.mxu3 }
 0x4ac   :  { %8112 = vst [vmem:[#allocation21_spill] sm:$0xff] %v6893_v52  ;;  %3354 = vmatmul.f32.gmra.mxu0 %v3353_v3  ;;  %3525 = vmatmul.f32.gmra.mxu1 %v6882_v60  ;;  %v3367_v3 = vand.u32 4294901760, %v3366_v27 }
 0x4ad   :  { %8114 = vst [vmem:[#allocation23_spill] sm:$0xff] %v6897_v55  ;;  %v3361_v55 = vand.u32 4294901760, %v3360_v35 }
 0x4ae   :  { %3704 = vmatmul.f32.gmra.mxu2 %v3358_v31  ;;  %v3374_v31 = vsub.f32 %v3105_v58, %v6908_v9  ;;  %v3368_v1 = vsub.f32 %v3366_v27, %v3367_v3 }
 0x4b0   :  { %3913 = vmatmul.f32.gmra.mxu3 %v3359_v13  ;;  %v3369_v60 = vand.u32 4294901760, %v3368_v1 }
 0x4b1   :  { %v6902_v0 = vpop.f32.mrf.mxu0  ;;  %v6904_v29 = vpop.f32.mrf.mxu1 }
 0x4b2   :  { %8115 = vst [vmem:[#allocation19_spill] sm:$0xff] %v6902_v0  ;;  %v6906_v52 = vpop.f32.mrf.mxu2 }
 0x4b3   :  { %8116 = vst [vmem:[#allocation25_spill] sm:$0xff] %v6904_v29  ;;  %v6910_v62 = vpop.f32.mrf.mxu3 }
 0x4b4   :  { %8117 = vst [vmem:[#allocation20_spill] sm:$0xff] %v6906_v52  ;;  %3362 = vmatmul.f32.gmra.mxu0 %v3361_v55  ;;  %3529 = vmatmul.f32.gmra.mxu1 %v6895_v10  ;;  %v3375_v52 = vand.u32 4294901760, %v3374_v31 }
 0x4b5   :  { %8119 = vst [vmem:[#allocation24_spill] sm:$0xff] %v6910_v62 }
 0x4b6   :  { %3709 = vmatmul.f32.gmra.mxu2 %v3366_v27  ;;  %v3376_v55 = vsub.f32 %v3374_v31, %v3375_v52 }
 0x4b8   :  { %3919 = vmatmul.f32.gmra.mxu3 %v3367_v3  ;;  %v3377_v10 = vand.u32 4294901760, %v3376_v55 }
 0x4b9   :  { %v6914_v13 = vpop.f32.mrf.mxu0  ;;  %v6916_v4 = vpop.f32.mrf.mxu1 }
 0x4ba   :  { %8120 = vst [vmem:[#allocation26_spill] sm:$0xff] %v6914_v13  ;;  %v6918_v29 = vpop.f32.mrf.mxu2 }
 0x4bb   :  { %8121 = vst [vmem:[#allocation30_spill] sm:$0xff] %v6916_v4  ;;  %v6920_v35 = vpop.f32.mrf.mxu3 }
 0x4bc   :  { %8122 = vst [vmem:[#allocation27_spill] sm:$0xff] %v6918_v29  ;;  %3370 = vmatmul.f32.gmra.mxu0 %v3369_v60  ;;  %3533 = vmatmul.f32.gmra.mxu1 %v6908_v9 }
 0x4bd   :  { %8123 = vst [vmem:[#allocation33_spill] sm:$0xff] %v6920_v35 }
 0x4be   :  { %3714 = vmatmul.f32.gmra.mxu2 %v3374_v31 }
 0x4c0   :  { %3925 = vmatmul.f32.gmra.mxu3 %v3375_v52 }
 0x4c1   :  { %v6923_v58 = vpop.f32.mrf.mxu0  ;;  %v3474_v27 = vpop.f32.mrf.mxu1 }
 0x4c2   :  { %8124 = vst [vmem:[#allocation28_spill] sm:$0xff] %v6923_v58  ;;  %v6925_v3 = vpop.f32.mrf.mxu2 }
 0x4c3   :  { %8125 = vst [vmem:[#allocation35_spill] sm:$0xff] %v6925_v3  ;;  %v6927_v13 = vpop.f32.mrf.mxu3 }
 0x4c4   :  { %8126 = vst [vmem:[#allocation29_spill] sm:$0xff] %v6927_v13  ;;  %3378 = vmatmul.f32.gmra.mxu0 %v3377_v10  ;;  %4099 = vmatmul.f32.vlgmr.msra.gmra.mxu1 %v6613_v5 }
 0x4c9   :  { %v3259_v1 = vpop.f32.mrf.mxu0  ;;  %v3478_v4 = vpop.f32.mrf.mxu1 }
 0x4ca   :  { %v3475_v35 = vadd.f32 %v3474_v27, %v3259_v1  ;;  %v3640_v60 = vpop.f32.mrf.mxu2 }
 0x4cb   :  { %v3836_v29 = vpop.f32.mrf.mxu3 }
 0x4cc   :  { %v3641_v9 = vadd.f32 %v3640_v60, %v3475_v35  ;;  %3952 = vmatmul.f32.vlgmr.msra.gmra.mxu0 %v6613_v5  ;;  %4103 = vmatmul.f32.gmra.mxu1 %v6622_v59 }
 0x4ce   :  { %v6932_v52 = vadd.f32 %v3836_v29, %v3641_v9 }
 0x4d1   :  { %v3267_v31 = vpop.f32.mrf.mxu0  ;;  %v3482_v3 = vpop.f32.mrf.mxu1 }
 0x4d2   :  { %v3479_v55 = vadd.f32 %v3478_v4, %v3267_v31  ;;  %v3645_v58 = vpop.f32.mrf.mxu2 }
 0x4d3   :  { %v3842_v13 = vpop.f32.mrf.mxu3 }
 0x4d4   :  { %v3646_v10 = vadd.f32 %v3645_v58, %v3479_v55  ;;  %3956 = vmatmul.f32.gmra.mxu0 %v6622_v59  ;;  %4107 = vmatmul.f32.gmra.mxu1 %v6636_v42 }
 0x4d6   :  { %v6936_v27 = vadd.f32 %v3842_v13, %v3646_v10 }
 0x4d9   :  { %v3275_v1 = vpop.f32.mrf.mxu0  ;;  %v3486_v35 = vpop.f32.mrf.mxu1 }
 0x4da   :  { %v3483_v60 = vadd.f32 %v3482_v3, %v3275_v1  ;;  %v3650_v5 = vpop.f32.mrf.mxu2 }
 0x4db   :  { %v3848_v62 = vpop.f32.mrf.mxu3 }
 0x4dc   :  { %v3651_v0 = vadd.f32 %v3650_v5, %v3483_v60  ;;  %3960 = vmatmul.f32.gmra.mxu0 %v6636_v42  ;;  %4111 = vmatmul.f32.gmra.mxu1 %v6645_v54 }
 0x4de   :  { %v6940_v29 = vadd.f32 %v3848_v62, %v3651_v0 }
 0x4e1   :  { %v3283_v9 = vpop.f32.mrf.mxu0  ;;  %v3490_v4 = vpop.f32.mrf.mxu1 }
 0x4e2   :  { %v3487_v58 = vadd.f32 %v3486_v35, %v3283_v9  ;;  %v3655_v59 = vpop.f32.mrf.mxu2 }
 0x4e3   :  { %v3854_v31 = vpop.f32.mrf.mxu3 }
 0x4e4   :  { %v3656_v55 = vadd.f32 %v3655_v59, %v3487_v58  ;;  %3964 = vmatmul.f32.gmra.mxu0 %v6645_v54  ;;  %4115 = vmatmul.f32.gmra.mxu1 %v6650_v28 }
 0x4e6   :  { %v6944_v13 = vadd.f32 %v3854_v31, %v3656_v55 }
 0x4e9   :  { %v3291_v3 = vpop.f32.mrf.mxu0  ;;  %v3494_v10 = vpop.f32.mrf.mxu1 }
 0x4ea   :  { %v3491_v1 = vadd.f32 %v3490_v4, %v3291_v3  ;;  %v3660_v42 = vpop.f32.mrf.mxu2 }
 0x4eb   :  { %v3860_v60 = vpop.f32.mrf.mxu3 }
 0x4ec   :  { %v3661_v5 = vadd.f32 %v3660_v42, %v3491_v1  ;;  %3968 = vmatmul.f32.gmra.mxu0 %v6650_v28  ;;  %4119 = vmatmul.f32.gmra.mxu1 %v6663_v21 }
 0x4ee   :  { %v6948_v0 = vadd.f32 %v3860_v60, %v3661_v5 }
 0x4f1   :  { %v3299_v62 = vpop.f32.mrf.mxu0  ;;  %v3498_v35 = vpop.f32.mrf.mxu1 }
 0x4f2   :  { %v3495_v9 = vadd.f32 %v3494_v10, %v3299_v62  ;;  %v3665_v54 = vpop.f32.mrf.mxu2 }
 0x4f3   :  { %v3866_v58 = vpop.f32.mrf.mxu3 }
 0x4f4   :  { %v3666_v59 = vadd.f32 %v3665_v54, %v3495_v9  ;;  %3972 = vmatmul.f32.gmra.mxu0 %v6663_v21  ;;  %4123 = vmatmul.f32.gmra.mxu1 %v6672_v20 }
 0x4f6   :  { %v6952_v4 = vadd.f32 %v3866_v58, %v3666_v59 }
 0x4f9   :  { %v3307_v31 = vpop.f32.mrf.mxu0  ;;  %v3502_v55 = vpop.f32.mrf.mxu1 }
 0x4fa   :  { %v3499_v3 = vadd.f32 %v3498_v35, %v3307_v31  ;;  %v3670_v28 = vpop.f32.mrf.mxu2 }
 0x4fb   :  { %v3872_v1 = vpop.f32.mrf.mxu3 }
 0x4fc   :  { %v3671_v42 = vadd.f32 %v3670_v28, %v3499_v3  ;;  %3976 = vmatmul.f32.gmra.mxu0 %v6672_v20  ;;  %4127 = vmatmul.f32.gmra.mxu1 %v6677_v43 }
 0x4fe   :  { %v6956_v10 = vadd.f32 %v3872_v1, %v3671_v42 }
 0x501   :  { %v3315_v60 = vpop.f32.mrf.mxu0  ;;  %v3506_v5 = vpop.f32.mrf.mxu1 }
 0x502   :  { %v3503_v62 = vadd.f32 %v3502_v55, %v3315_v60  ;;  %v3675_v21 = vpop.f32.mrf.mxu2 }
 0x503   :  { %v3878_v9 = vpop.f32.mrf.mxu3 }
 0x504   :  { %v3676_v54 = vadd.f32 %v3675_v21, %v3503_v62  ;;  %3980 = vmatmul.f32.gmra.mxu0 %v6677_v43  ;;  %4131 = vmatmul.f32.gmra.mxu1 %v6690_v49 }
 0x506   :  { %v6960_v35 = vadd.f32 %v3878_v9, %v3676_v54 }
 0x509   :  { %v3323_v58 = vpop.f32.mrf.mxu0  ;;  %v3510_v59 = vpop.f32.mrf.mxu1 }
 0x50a   :  { %v3507_v31 = vadd.f32 %v3506_v5, %v3323_v58  ;;  %v3680_v20 = vpop.f32.mrf.mxu2 }
 0x50b   :  { %v3884_v3 = vpop.f32.mrf.mxu3 }
 0x50c   :  { %v3681_v28 = vadd.f32 %v3680_v20, %v3507_v31  ;;  %3984 = vmatmul.f32.gmra.mxu0 %v6690_v49  ;;  %4135 = vmatmul.f32.gmra.mxu1 %v6699_v45 }
 0x50e   :  { %v6964_v55 = vadd.f32 %v3884_v3, %v3681_v28 }
 0x511   :  { %v3331_v1 = vpop.f32.mrf.mxu0  ;;  %v6966_v42 = vpop.f32.mrf.mxu1 }
 0x512   :  { %v3511_v43 = vadd.f32 %v3510_v59, %v3331_v1  ;;  %v3685_v60 = vpop.f32.mrf.mxu2 }
 0x513   :  { %v3890_v5 = vpop.f32.mrf.mxu3 }
 0x514   :  { %v3686_v62 = vadd.f32 %v3685_v60, %v3511_v43  ;;  %3988 = vmatmul.f32.gmra.mxu0 %v6699_v45  ;;  %4139 = vmatmul.f32.gmra.mxu1 %v6704_v15 }
 0x516   :  { %v6970_v21 = vadd.f32 %v3890_v5, %v3686_v62 }
 0x519   :  { %v6972_v9 = vpop.f32.mrf.mxu0  ;;  %v6974_v49 = vpop.f32.mrf.mxu1 }
 0x51c   :  { %3992 = vmatmul.f32.gmra.mxu0 %v6704_v15  ;;  %4143 = vmatmul.f32.gmra.mxu1 %v6717_v22 }
 0x521   :  { %v6978_v54 = vpop.f32.mrf.mxu0  ;;  %v6980_v58 = vpop.f32.mrf.mxu1 }
 0x524   :  { %3996 = vmatmul.f32.gmra.mxu0 %v6717_v22  ;;  %4147 = vmatmul.f32.gmra.mxu1 %v6726_v57 }
 0x529   :  { %v6984_v45 = vpop.f32.mrf.mxu0  ;;  %v6986_v59 = vpop.f32.mrf.mxu1 }
 0x52c   :  { %4000 = vmatmul.f32.gmra.mxu0 %v6726_v57  ;;  %4151 = vmatmul.f32.gmra.mxu1 %v6731_v41 }
 0x531   :  { %v6990_v31 = vpop.f32.mrf.mxu0  ;;  %v6992_v15 = vpop.f32.mrf.mxu1 }
 0x534   :  { %4004 = vmatmul.f32.gmra.mxu0 %v6731_v41  ;;  %4155 = vmatmul.f32.gmra.mxu1 %v6744_v39 }
 0x539   :  { %v6996_v20 = vpop.f32.mrf.mxu0  ;;  %v6998_v22 = vpop.f32.mrf.mxu1 }
 0x53a   :  { %8127 = vst [vmem:[#allocation34_spill] sm:$0xff] %v6998_v22 }
 0x53c   :  { %4008 = vmatmul.f32.gmra.mxu0 %v6744_v39  ;;  %4159 = vmatmul.f32.gmra.mxu1 %v6753_v48 }
 0x541   :  { %v7002_v3 = vpop.f32.mrf.mxu0  ;;  %v4100_v57 = vpop.f32.mrf.mxu1 }
 0x544   :  { %4012 = vmatmul.f32.gmra.mxu0 %v6753_v48  ;;  %4163 = vmatmul.f32.gmra.mxu1 %v6758_v12 }
 0x549   :  { %v3953_v28 = vpop.f32.mrf.mxu0  ;;  %v4104_v1 = vpop.f32.mrf.mxu1 }
 0x54a   :  { %v3954_v41 = vadd.f32 %v3953_v28, %v6782_v17 }
 0x54c   :  { %v4101_v43 = vadd.f32 %v4100_v57, %v3954_v41  ;;  %4016 = vmatmul.f32.gmra.mxu0 %v6758_v12  ;;  %4167 = vmatmul.f32.gmra.mxu1 %v6771_v47 }
 0x54e   :  { %v7010_v39 = vmul.f32 %v6472_v40, %v4101_v43 }
 0x551   :  { %v3957_v60 = vpop.f32.mrf.mxu0  ;;  %v4108_v62 = vpop.f32.mrf.mxu1 }
 0x552   :  { %v3958_v5 = vadd.f32 %v3957_v60, %v6789_v51 }
 0x554   :  { %v4105_v22 = vadd.f32 %v4104_v1, %v3958_v5  ;;  %4020 = vmatmul.f32.gmra.mxu0 %v6771_v47  ;;  %4171 = vmatmul.f32.gmra.mxu1 %v6779_v26 }
 0x556   :  { %v7016_v48 = vmul.f32 %v6481_v53, %v4105_v22 }
 0x559   :  { %v3961_v17 = vpop.f32.mrf.mxu0  ;;  %v4112_v57 = vpop.f32.mrf.mxu1 }
 0x55a   :  { %v3962_v12 = vadd.f32 %v3961_v17, %v6796_v50 }
 0x55c   :  { %v4109_v28 = vadd.f32 %v4108_v62, %v3962_v12  ;;  %4024 = vmatmul.f32.gmra.mxu0 %v6779_v26  ;;  %4175 = vmatmul.f32.gmra.mxu1 %v6786_v2 }
 0x55e   :  { %v7022_v40 = vmul.f32 %v6490_v19, %v4109_v28 }
 0x561   :  { %v3965_v51 = vpop.f32.mrf.mxu0  ;;  %v4116_v1 = vpop.f32.mrf.mxu1 }
 0x562   :  { %v3966_v47 = vadd.f32 %v3965_v51, %v6803_v23 }
 0x564   :  { %v4113_v41 = vadd.f32 %v4112_v57, %v3966_v47  ;;  %4028 = vmatmul.f32.gmra.mxu0 %v6786_v2  ;;  %4179 = vmatmul.f32.gmra.mxu1 %v6793_v38 }
 0x566   :  { %v7028_v53 = vmul.f32 %v6499_v14, %v4113_v41 }
 0x569   :  { %v3969_v50 = vpop.f32.mrf.mxu0  ;;  %v4120_v22 = vpop.f32.mrf.mxu1 }
 0x56a   :  { %v3970_v26 = vadd.f32 %v3969_v50, %v6810_v18 }
 0x56c   :  { %v4117_v43 = vadd.f32 %v4116_v1, %v3970_v26  ;;  %4032 = vmatmul.f32.gmra.mxu0 %v6793_v38  ;;  %4183 = vmatmul.f32.gmra.mxu1 %v6800_v63  ;;  %v8128_v1 = vld [vmem:[#allocation67_spill] sm:$0xff] }
 0x56e   :  { %v7034_v19 = vmul.f32 %v6520_v16, %v4117_v43 }
 0x571   :  { %v3973_v23 = vpop.f32.mrf.mxu0  ;;  %v4124_v60 = vpop.f32.mrf.mxu1 }
 0x572   :  { %v3974_v2 = vadd.f32 %v3973_v23, %v6817_v25  ;;  %v8134_v23 = vld [vmem:[#allocation75_spill] sm:$0xff] }
 0x574   :  { %v4121_v62 = vadd.f32 %v4120_v22, %v3974_v2  ;;  %4036 = vmatmul.f32.gmra.mxu0 %v6800_v63  ;;  %4187 = vmatmul.f32.gmra.mxu1 %v6807_v44  ;;  %v3443_v63 = vadd.f32 %v6828_v33, %v6837_v56  ;;  %v8132_v22 = vld [vmem:[#allocation72_spill] sm:$0xff] }
 0x576   :  { %v7040_v14 = vmul.f32 %v6529_v46, %v4121_v62  ;;  %v3601_v12 = vadd.f32 %v6841_v34, %v3443_v63  ;;  %v8129_v34 = vld [vmem:[#allocation64_spill] sm:$0xff]  ;;  %v8135_v62 = vld [vmem:[#allocation66_spill] sm:$0xff] }
 0x579   :  { %v3977_v18 = vpop.f32.mrf.mxu0  ;;  %v4128_v5 = vpop.f32.mrf.mxu1 }
 0x57a   :  { %v3978_v38 = vadd.f32 %v3977_v18, %v6824_v11  ;;  %v3447_v11 = vadd.f32 %v6839_v61, %v6850_v37 }
 0x57c   :  { %v4125_v17 = vadd.f32 %v4124_v60, %v3978_v38  ;;  %4040 = vmatmul.f32.gmra.mxu0 %v6807_v44  ;;  %4191 = vmatmul.f32.gmra.mxu1 %v6814_v6 }
 0x57e   :  { %v7046_v16 = vmul.f32 %v6539_v8, %v4125_v17  ;;  %v3789_v8 = vadd.f32 %v6845_v32, %v3601_v12  ;;  %v8133_v32 = vld [vmem:[#allocation68_spill] sm:$0xff]  ;;  %v8138_v17 = vld [vmem:[#allocation71_spill] sm:$0xff] }
 0x57f   :  { %v3451_v26 = vadd.f32 %v8133_v32, %v8132_v22  ;;  %v3455_v63 = vadd.f32 %v8138_v17, %v6876_v36  ;;  %v8139_v12 = vld [vmem:[#allocation76_spill] sm:$0xff] }
 0x580   :  { %v8151_v17 = vld [vmem:[#allocation20_spill] sm:$0xff] }
 0x581   :  { %v3981_v25 = vpop.f32.mrf.mxu0  ;;  %v4132_v57 = vpop.f32.mrf.mxu1  ;;  %v3611_v60 = vadd.f32 %v8134_v23, %v3451_v26  ;;  %v8146_v26 = vld [vmem:[#allocation73_spill] sm:$0xff] }
 0x582   :  { %v3982_v46 = vadd.f32 %v3981_v25, %v6833_v24  ;;  %v3606_v24 = vadd.f32 %v8128_v1, %v3447_v11  ;;  %v8140_v11 = vld [vmem:[#allocation70_spill] sm:$0xff] }
 0x584   :  { %v4129_v28 = vadd.f32 %v4128_v5, %v3982_v46  ;;  %4044 = vmatmul.f32.gmra.mxu0 %v6814_v6  ;;  %4195 = vmatmul.f32.gmra.mxu1 %v6821_v7  ;;  %v8130_v6 = vld [vmem:[#allocation38_spill] sm:$0xff]  ;;  %v8137_v5 = vld [vmem:[#allocation77_spill] sm:$0xff] }
 0x585   :  { %v3801_v38 = vadd.f32 %v8137_v5, %v3611_v60  ;;  %v8149_v60 = vld [vmem:[#allocation19_spill] sm:$0xff] }
 0x586   :  { %v7055_v44 = vmul.f32 %v6550_v30, %v4129_v28  ;;  %v8131_v30 = vld [vmem:[#allocation69_spill] sm:$0xff]  ;;  %v3616_v28 = vadd.f32 %v8139_v12, %v3455_v63 }
 0x587   :  { %v3795_v50 = vadd.f32 %v8131_v30, %v3606_v24  ;;  %v8143_v24 = vld [vmem:[#allocation81_spill] sm:$0xff] }
 0x589   :  { %v3985_v33 = vpop.f32.mrf.mxu0  ;;  %v4136_v56 = vpop.f32.mrf.mxu1 }
 0x58a   :  { %v3986_v51 = vadd.f32 %v3985_v33, %v3789_v8  ;;  %v8141_v33 = vld [vmem:[#allocation41_spill] sm:$0xff] }
 0x58c   :  { %v4133_v47 = vadd.f32 %v4132_v57, %v3986_v51  ;;  %4048 = vmatmul.f32.gmra.mxu0 %v6821_v7  ;;  %4199 = vmatmul.f32.gmra.mxu1 %v8129_v34  ;;  %v8136_v7 = vld [vmem:[#allocation45_spill] sm:$0xff]  ;;  %v8142_v51 = vld [vmem:[#allocation79_spill] sm:$0xff] }
 0x58d   :  { %v3807_v1 = vadd.f32 %v8142_v51, %v3616_v28  ;;  %v8154_v28 = vld [vmem:[#allocation24_spill] sm:$0xff] }
 0x58e   :  { %v7064_v41 = vmul.f32 %v8130_v6, %v4133_v47  ;;  %v8144_v47 = vld [vmem:[#allocation80_spill] sm:$0xff] }
 0x591   :  { %v3989_v43 = vpop.f32.mrf.mxu0  ;;  %v4140_v61 = vpop.f32.mrf.mxu1 }
 0x592   :  { %v3990_v37 = vadd.f32 %v3989_v43, %v3795_v50  ;;  %v8145_v50 = vld [vmem:[#allocation21_spill] sm:$0xff]  ;;  %v8147_v43 = vld [vmem:[#allocation47_spill] sm:$0xff] }
 0x594   :  { %v4137_v2 = vadd.f32 %v4136_v56, %v3990_v37  ;;  %4052 = vmatmul.f32.gmra.mxu0 %v8129_v34  ;;  %4203 = vmatmul.f32.gmra.mxu1 %v8135_v62  ;;  %v3459_v34 = vadd.f32 %v8144_v47, %v8143_v24  ;;  %v8148_v37 = vld [vmem:[#allocation23_spill] sm:$0xff] }
 0x596   :  { %v7073_v18 = vmul.f32 %v8136_v7, %v4137_v2  ;;  %v3621_v22 = vadd.f32 %v8145_v50, %v3459_v34  ;;  %v8150_v2 = vld [vmem:[#allocation78_spill] sm:$0xff]  ;;  %v8157_v34 = vld [vmem:[#allocation27_spill] sm:$0xff] }
 0x597   :  { %v8159_v50 = vld [vmem:[#allocation42_spill] sm:$0xff] }
 0x598   :  { %v3813_v23 = vadd.f32 %v8148_v37, %v3621_v22  ;;  %v8162_v37 = vld [vmem:[#allocation30_spill] sm:$0xff] }
 0x599   :  { %v3993_v25 = vpop.f32.mrf.mxu0  ;;  %v4144_v57 = vpop.f32.mrf.mxu1 }
 0x59a   :  { %v3994_v46 = vadd.f32 %v3993_v25, %v3801_v38 }
 0x59c   :  { %v4141_v8 = vadd.f32 %v4140_v61, %v3994_v46  ;;  %4056 = vmatmul.f32.gmra.mxu0 %v8135_v62  ;;  %4207 = vmatmul.f32.gmra.mxu1 %v8140_v11  ;;  %v3463_v62 = vadd.f32 %v8150_v2, %v8149_v60  ;;  %v8153_v46 = vld [vmem:[#allocation44_spill] sm:$0xff] }
 0x59e   :  { %v7082_v56 = vmul.f32 %v8141_v33, %v4141_v8  ;;  %v3626_v63 = vadd.f32 %v8151_v17, %v3463_v62  ;;  %v8156_v33 = vld [vmem:[#allocation25_spill] sm:$0xff] }
 0x5a0   :  { %v3819_v8 = vadd.f32 %v8154_v28, %v3626_v63  ;;  %v8165_v63 = vld [vmem:[#allocation49_spill] sm:$0xff] }
 0x5a1   :  { %v3997_v6 = vpop.f32.mrf.mxu0  ;;  %v4148_v36 = vpop.f32.mrf.mxu1 }
 0x5a2   :  { %v3998_v30 = vadd.f32 %v3997_v6, %v3807_v1 }
 0x5a4   :  { %v4145_v32 = vadd.f32 %v4144_v57, %v3998_v30  ;;  %4060 = vmatmul.f32.gmra.mxu0 %v8140_v11  ;;  %4211 = vmatmul.f32.gmra.mxu1 %v8146_v26  ;;  %v8152_v57 = vld [vmem:[#allocation74_spill] sm:$0xff] }
 0x5a5   :  { %v8155_v11 = vld [vmem:[#allocation26_spill] sm:$0xff] }
 0x5a6   :  { %v7091_v61 = vmul.f32 %v8147_v43, %v4145_v32  ;;  %v3467_v51 = vadd.f32 %v8156_v33, %v8155_v11  ;;  %v8160_v32 = vld [vmem:[#allocation33_spill] sm:$0xff]  ;;  %v8161_v43 = vld [vmem:[#allocation28_spill] sm:$0xff] }
 0x5a8   :  { %v3631_v6 = vadd.f32 %v8157_v34, %v3467_v51 }
 0x5a9   :  { %v4001_v7 = vpop.f32.mrf.mxu0  ;;  %v4152_v5 = vpop.f32.mrf.mxu1 }
 0x5aa   :  { %v4002_v38 = vadd.f32 %v4001_v7, %v3813_v23  ;;  %v3471_v23 = vadd.f32 %v8162_v37, %v8161_v43  ;;  %v8163_v7 = vld [vmem:[#allocation35_spill] sm:$0xff] }
 0x5ac   :  { %v4149_v25 = vadd.f32 %v4148_v36, %v4002_v38  ;;  %4064 = vmatmul.f32.gmra.mxu0 %v8146_v26  ;;  %4215 = vmatmul.f32.gmra.mxu1 %v8152_v57  ;;  %v8158_v36 = vld [vmem:[#allocation18_spill] sm:$0xff]  ;;  %v3825_v26 = vadd.f32 %v8160_v32, %v3631_v6  ;;  %v3636_v38 = vadd.f32 %v8163_v7, %v3471_v23  ;;  %v7146_v7 = vand.u32 4294901760, %v7091_v61 }
 0x5ae   :  { %v4271_v12 = vmul.f32 %v8153_v46, %v4149_v25 }
 0x5b1   :  { %v4005_v1 = vpop.f32.mrf.mxu0  ;;  %v4156_v24 = vpop.f32.mrf.mxu1 }
 0x5b2   :  { %v4006_v47 = vadd.f32 %v4005_v1, %v3819_v8  ;;  %v8167_v1 = vld [vmem:[#allocation46_spill] sm:$0xff] }
 0x5b4   :  { %v4153_v30 = vadd.f32 %v4152_v5, %v4006_v47  ;;  %4068 = vmatmul.f32.gmra.mxu0 %v8152_v57  ;;  %4219 = vmatmul.f32.gmra.mxu1 %v8158_v36  ;;  %v8164_v5 = vld [vmem:[#allocation22_spill] sm:$0xff]  ;;  %v8166_v57 = vld [vmem:[#allocation29_spill] sm:$0xff] }
 0x5b5   :  { %v3831_v46 = vadd.f32 %v8166_v57, %v3636_v38 }
 0x5b6   :  { %v4272_v22 = vmul.f32 %v8159_v50, %v4153_v30 }
 0x5b8   :  { %v7119_v34 = vand.u32 4294901760, %v4272_v22 }
 0x5b9   :  { %v4009_v60 = vpop.f32.mrf.mxu0  ;;  %v4160_v2 = vpop.f32.mrf.mxu1 }
 0x5ba   :  { %v4010_v62 = vadd.f32 %v4009_v60, %v3825_v26  ;;  %v7131_v26 = vand.u32 4294901760, %v4271_v12  ;;  %v7134_v43 = vsub.f32 %v4272_v22, %v7119_v34 }
 0x5bc   :  { %v4157_v17 = vadd.f32 %v4156_v24, %v4010_v62  ;;  %4072 = vmatmul.f32.gmra.mxu0 %v8158_v36  ;;  %4223 = vmatmul.f32.gmra.mxu1 %v8164_v5  ;;  %v7149_v22 = vsub.f32 %v4271_v12, %v7131_v26  ;;  %v7162_v12 = vsub.f32 %v7091_v61, %v7146_v7 }
 0x5be   :  { %v4273_v25 = vmul.f32 %v8165_v63, %v4157_v17 }
 0x5c0   :  { %v7115_v33 = vand.u32 4294901760, %v4273_v25 }
 0x5c1   :  { %v4013_v28 = vpop.f32.mrf.mxu0  ;;  %v4164_v8 = vpop.f32.mrf.mxu1 }
 0x5c2   :  { %v4014_v11 = vadd.f32 %v4013_v28, %v3831_v46  ;;  %v7122_v24 = vsub.f32 %v4273_v25, %v7115_v33  ;;  %v7158_v46 = vand.u32 4294901760, %v7082_v56 }
 0x5c4   :  { %v4161_v51 = vadd.f32 %v4160_v2, %v4014_v11  ;;  %4076 = vmatmul.f32.gmra.mxu0 %v8164_v5  ;;  %v7843_v60 = vand.u32 4294901760, %v7122_v24  ;;  %v8168_v2 = vld [vmem:[#allocation52_spill] sm:$0xff]  ;;  %v7840_v5 = vand.u32 4294901760, %v7134_v43  ;;  %v7177_v61 = vsub.f32 %v7082_v56, %v7158_v46 }
 0x5c5   :  { %v7190_v56 = vand.u32 4294901760, %v7064_v41 }
 0x5c6   :  { %v4274_v47 = vmul.f32 %v8167_v1, %v4161_v51  ;;  %v4336_v17 = vsub.f32 %v7122_v24, %v7843_v60  ;;  %v4342_v11 = vsub.f32 %v7134_v43, %v7840_v5  ;;  %v7839_v51 = vand.u32 4294901760, %v7149_v22  ;;  %v8170_v1 = vld [vmem:[#allocation48_spill] sm:$0xff] }
 0x5c7   :  { %v8176_v5 = vld [vmem:[#allocation56_spill] sm:$0xff] }
 0x5c8   :  { %v7124_v6 = vand.u32 4294901760, %v4274_v47 }
 0x5c9   :  { %v4017_v30 = vpop.f32.mrf.mxu0  ;;  %v4168_v36 = vpop.f32.mrf.mxu1 }
 0x5ca   :  { %v7127_v50 = vsub.f32 %v4274_v47, %v7124_v6  ;;  %v4018_v32 = vadd.f32 %v4017_v30, %v6932_v52  ;;  %4292 = vmatpush.xpose.msra.mxu2 %v7124_v6  ;;  %v7173_v47 = vand.u32 4294901760, %v7073_v18  ;;  %v4343_v30 = vand.u32 4294901760, %v4342_v11 }
 0x5cc   :  { %v4165_v37 = vadd.f32 %v4164_v8, %v4018_v32  ;;  %v7844_v23 = vand.u32 4294901760, %v7127_v50  ;;  %v4337_v8 = vand.u32 4294901760, %v4336_v17  ;;  %v7836_v32 = vand.u32 4294901760, %v7162_v12 }
 0x5ce   :  { %v7139_v62 = vmul.f32 %v8168_v2, %v4165_v37  ;;  %4294 = vmatpush.xpose.msra.mxu2 %v7115_v33  ;;  %v4330_v52 = vsub.f32 %v7127_v50, %v7844_v23  ;;  %v8178_v23 = vld [vmem:[#allocation53_spill] sm:$0xff] }
 0x5d0   :  { %8169 = vst [vmem:[#allocation31_spill] sm:$0xff] %v7139_v62  ;;  %v4331_v38 = vand.u32 4294901760, %v4330_v52 }
 0x5d1   :  { %v4021_v63 = vpop.f32.mrf.mxu0  ;;  %v4172_v25 = vpop.f32.mrf.mxu1 }
 0x5d2   :  { %v4022_v57 = vadd.f32 %v4021_v63, %v6936_v27  ;;  %4296 = vmatpush.xpose.msra.mxu2 %v7119_v34  ;;  %4332 = vmatpush.xpose.msra.mxu3 %v4331_v38  ;;  %v7187_v38 = vsub.f32 %v7073_v18, %v7173_v47  ;;  %v7201_v18 = vand.u32 4294901760, %v7055_v44 }
 0x5d4   :  { %v4169_v28 = vadd.f32 %v4168_v36, %v4022_v57  ;;  %v4348_v36 = vsub.f32 %v7149_v22, %v7839_v51  ;;  %v4354_v57 = vsub.f32 %v7162_v12, %v7836_v32  ;;  %v8174_v32 = vld [vmem:[#allocation50_spill] sm:$0xff] }
 0x5d6   :  { %v7169_v27 = vmul.f32 %v8170_v1, %v4169_v28  ;;  %4298 = vmatpush.xpose.msra.mxu2 %v7131_v26  ;;  %4338 = vmatpush.xpose.msra.mxu3 %v4337_v8  ;;  %v4349_v63 = vand.u32 4294901760, %v4348_v36  ;;  %v7835_v28 = vand.u32 4294901760, %v7177_v61  ;;  %v8172_v8 = vld [vmem:[#allocation54_spill] sm:$0xff]  ;;  %v4355_v11 = vand.u32 4294901760, %v4354_v57 }
 0x5d7   :  { %v7838_v1 = vand.u32 4294901760, %v7187_v38 }
 0x5d8   :  { %8171 = vst [vmem:[#allocation32_spill] sm:$0xff] %v7169_v27  ;;  %v8179_v27 = vld [vmem:[#allocation51_spill] sm:$0xff] }
 0x5d9   :  { %v4025_v37 = vpop.f32.mrf.mxu0  ;;  %v4176_v2 = vpop.f32.mrf.mxu1 }
 0x5da   :  { %v4026_v52 = vadd.f32 %v4025_v37, %v6940_v29  ;;  %4300 = vmatpush.xpose.msra.mxu2 %v7146_v7  ;;  %4344 = vmatpush.xpose.msra.mxu3 %v4343_v30  ;;  %v7209_v30 = vsub.f32 %v7064_v41, %v7190_v56  ;;  %v4366_v41 = vsub.f32 %v7187_v38, %v7838_v1 }
 0x5dc   :  { %v4173_v17 = vadd.f32 %v4172_v25, %v4026_v52  ;;  %v4360_v25 = vsub.f32 %v7177_v61, %v7835_v28  ;;  %v7837_v28 = vand.u32 4294901760, %v7209_v30 }
 0x5de   :  { %v7197_v29 = vmul.f32 %v8172_v8, %v4173_v17  ;;  %4302 = vmatpush.xpose.msra.mxu2 %v7158_v46  ;;  %4350 = vmatpush.xpose.msra.mxu3 %v4349_v63  ;;  %v7214_v17 = vand.u32 4294901760, %v7046_v16  ;;  %v7218_v63 = vsub.f32 %v7055_v44, %v7201_v18  ;;  %v4361_v8 = vand.u32 4294901760, %v4360_v25 }
 0x5df   :  { %v4372_v44 = vsub.f32 %v7209_v30, %v7837_v28 }
 0x5e0   :  { %8173 = vst [vmem:[#allocation36_spill] sm:$0xff] %v7197_v29  ;;  %v7237_v25 = vsub.f32 %v7046_v16, %v7214_v17 }
 0x5e1   :  { %v4029_v36 = vpop.f32.mrf.mxu0  ;;  %v4180_v37 = vpop.f32.mrf.mxu1  ;;  %v4373_v1 = vand.u32 4294901760, %v4372_v44 }
 0x5e2   :  { %v4030_v52 = vadd.f32 %v4029_v36, %v6944_v13  ;;  %4304 = vmatpush.xpose.msra.mxu2 %v7173_v47  ;;  %4356 = vmatpush.xpose.msra.mxu3 %v4355_v11  ;;  %v7229_v11 = vand.u32 4294901760, %v7040_v14  ;;  %v4367_v36 = vand.u32 4294901760, %v4366_v41  ;;  %v7841_v51 = vand.u32 4294901760, %v7237_v25 }
 0x5e4   :  { %v4177_v57 = vadd.f32 %v4176_v2, %v4030_v52  ;;  %v7842_v2 = vand.u32 4294901760, %v7218_v63  ;;  %v7246_v41 = vsub.f32 %v7040_v14, %v7229_v11  ;;  %v4384_v14 = vsub.f32 %v7237_v25, %v7841_v51 }
 0x5e6   :  { %v7225_v13 = vmul.f32 %v8174_v32, %v4177_v57  ;;  %4306 = vmatpush.xpose.msra.mxu2 %v7190_v56  ;;  %4362 = vmatpush.xpose.msra.mxu3 %v4361_v8  ;;  %v7242_v8 = vand.u32 4294901760, %v7034_v19  ;;  %v4378_v16 = vsub.f32 %v7218_v63, %v7842_v2  ;;  %v4385_v2 = vand.u32 4294901760, %v4384_v14 }
 0x5e8   :  { %8175 = vst [vmem:[#allocation16_spill] sm:$0xff] %v7225_v13  ;;  %v7265_v44 = vsub.f32 %v7034_v19, %v7242_v8 }
 0x5e9   :  { %v4033_v52 = vpop.f32.mrf.mxu0  ;;  %v4184_v32 = vpop.f32.mrf.mxu1 }
 0x5ea   :  { %v4034_v57 = vadd.f32 %v4033_v52, %v6948_v0  ;;  %4308 = vmatpush.xpose.msra.mxu2 %v7201_v18  ;;  %4368 = vmatpush.xpose.msra.mxu3 %v4367_v36  ;;  %v7257_v36 = vand.u32 4294901760, %v7028_v53  ;;  %v4379_v52 = vand.u32 4294901760, %v4378_v16  ;;  %v7845_v60 = vand.u32 4294901760, %v7265_v44 }
 0x5ec   :  { %v4181_v28 = vadd.f32 %v4180_v37, %v4034_v57  ;;  %v7846_v37 = vand.u32 4294901760, %v7246_v41  ;;  %v7274_v16 = vsub.f32 %v7028_v53, %v7257_v36  ;;  %v4396_v53 = vsub.f32 %v7265_v44, %v7845_v60 }
 0x5ee   :  { %v7253_v0 = vmul.f32 %v8176_v5, %v4181_v28  ;;  %4310 = vmatpush.xpose.msra.mxu2 %v7214_v17  ;;  %4374 = vmatpush.xpose.msra.mxu3 %v4373_v1  ;;  %v7270_v1 = vand.u32 4294901760, %v7022_v40  ;;  %v4390_v19 = vsub.f32 %v7246_v41, %v7846_v37  ;;  %v4397_v37 = vand.u32 4294901760, %v4396_v53 }
 0x5f0   :  { %8177 = vst [vmem:[#allocation17_spill] sm:$0xff] %v7253_v0  ;;  %v7293_v14 = vsub.f32 %v7022_v40, %v7270_v1 }
 0x5f1   :  { %v4037_v57 = vpop.f32.mrf.mxu0  ;;  %v4188_v5 = vpop.f32.mrf.mxu1 }
 0x5f2   :  { %v4038_v28 = vadd.f32 %v4037_v57, %v6952_v4  ;;  %4312 = vmatpush.xpose.msra.mxu2 %v7229_v11  ;;  %4380 = vmatpush.xpose.msra.mxu3 %v4379_v52  ;;  %v7285_v52 = vand.u32 4294901760, %v7016_v48  ;;  %v4391_v57 = vand.u32 4294901760, %v4390_v19  ;;  %v7850_v62 = vand.u32 4294901760, %v7293_v14 }
 0x5f4   :  { %v4185_v51 = vadd.f32 %v4184_v32, %v4038_v28  ;;  %v7849_v32 = vand.u32 4294901760, %v7274_v16  ;;  %v7302_v19 = vsub.f32 %v7016_v48, %v7285_v52  ;;  %v4408_v48 = vsub.f32 %v7293_v14, %v7850_v62  ;;  %v8180_v62 = vld [vmem:[#allocation57_spill] sm:$0xff] }
 0x5f6   :  { %v7281_v4 = vmul.f32 %v8178_v23, %v4185_v51  ;;  %4314 = vmatpush.xpose.msra.mxu2 %v7242_v8  ;;  %4386 = vmatpush.xpose.msra.mxu3 %v4385_v2  ;;  %v7298_v2 = vand.u32 4294901760, %v7010_v39  ;;  %v4402_v40 = vsub.f32 %v7274_v16, %v7849_v32 }
 0x5f8   :  { %v7318_v53 = vsub.f32 %v7010_v39, %v7298_v2 }
 0x5f9   :  { %v4041_v28 = vpop.f32.mrf.mxu0  ;;  %v4192_v23 = vpop.f32.mrf.mxu1 }
 0x5fa   :  { %v4042_v51 = vadd.f32 %v4041_v28, %v6956_v10  ;;  %4316 = vmatpush.xpose.msra.mxu2 %v7257_v36  ;;  %4392 = vmatpush.xpose.msra.mxu3 %v4391_v57  ;;  %v4403_v57 = vand.u32 4294901760, %v4402_v40  ;;  %v7854_v40 = vand.u32 4294901760, %v7318_v53 }
 0x5fc   :  { %v4189_v60 = vadd.f32 %v4188_v5, %v4042_v51  ;;  %v7852_v5 = vand.u32 4294901760, %v7302_v19 }
 0x5fe   :  { %v7309_v10 = vmul.f32 %v8179_v27, %v4189_v60  ;;  %4318 = vmatpush.xpose.msra.mxu2 %v7270_v1  ;;  %4398 = vmatpush.xpose.msra.mxu3 %v4397_v37  ;;  %v4409_v27 = vand.u32 4294901760, %v4408_v48  ;;  %v4414_v37 = vsub.f32 %v7302_v19, %v7852_v5  ;;  %v8181_v48 = vmov 0.0   ;;  %v8182_v5 = vld [vmem:[#allocation55_spill] sm:$0xff] }
 0x600   :  { %v4415_v39 = vand.u32 4294901760, %v4414_v37  ;;  %v3515_v37 = vadd.f32 %v6966_v42, %v6972_v9  ;;  %v3519_v9 = vadd.f32 %v6974_v49, %v6978_v54  ;;  %v3523_v49 = vadd.f32 %v6980_v58, %v6984_v45 }
 0x601   :  { %v4045_v28 = vpop.f32.mrf.mxu0  ;;  %v4196_v51 = vpop.f32.mrf.mxu1  ;;  %v3527_v58 = vadd.f32 %v6986_v59, %v6990_v31  ;;  %v5231_v45 = vmov 1.0   ;;  %v3531_v31 = vadd.f32 %v6992_v15, %v6996_v20 }
 0x602   :  { %v4046_v32 = vadd.f32 %v4045_v28, %v6960_v35  ;;  %4320 = vmatpush.xpose.msra.mxu2 %v7285_v52  ;;  %4404 = vmatpush.xpose.msra.mxu3 %v4403_v57  ;;  %v3690_v35 = vpop.f32.mrf.mxu2 }
 0x604   :  { %v4193_v60 = vadd.f32 %v4192_v23, %v4046_v32  ;;  %v4420_v32 = vsub.f32 %v7318_v53, %v7854_v40 }
 0x606   :  { %v7327_v29 = vmul.f32 %v8180_v62, %v4193_v60  ;;  %4322 = vmatpush.xpose.msra.mxu2 %v7298_v2  ;;  %4410 = vmatpush.xpose.msra.mxu3 %v4409_v27  ;;  %v4421_v60 = vand.u32 4294901760, %v4420_v32  ;;  %v3896_v27 = vpop.f32.mrf.mxu3  ;;  %v8183_v32 = vld [vmem:[#allocation59_spill] sm:$0xff] }
 0x609   :  { %v4049_v23 = vpop.f32.mrf.mxu0  ;;  %v4200_v57 = vpop.f32.mrf.mxu1  ;;  %4323 = vmatmul.f32.vlgmr.msra.gmra.mxu2 %v8181_v48 }
 0x60a   :  { %4429 = vmatpush.xpose.msrb.mxu2 %v7127_v50  ;;  %v4050_v28 = vadd.f32 %v4049_v23, %v6964_v55  ;;  %4416 = vmatpush.xpose.msra.mxu3 %v4415_v39  ;;  %v3695_v39 = vpop.f32.mrf.mxu2 }
 0x60c   :  { %v4197_v62 = vadd.f32 %v4196_v51, %v4050_v28  ;;  %v3691_v51 = vadd.f32 %v3690_v35, %v3515_v37  ;;  %v3696_v35 = vadd.f32 %v3695_v39, %v3519_v9  ;;  %v8184_v37 = vld [vmem:[#allocation58_spill] sm:$0xff] }
 0x60e   :  { %4432 = vmatpush.xpose.msrb.mxu2 %v7122_v24  ;;  %v7338_v13 = vmul.f32 %v8182_v5, %v4197_v62  ;;  %4422 = vmatpush.xpose.msra.mxu3 %v4421_v60  ;;  %v3902_v28 = vpop.f32.mrf.mxu3  ;;  %v3897_v42 = vadd.f32 %v3896_v27, %v3691_v51 }
 0x60f   :  { %v3903_v27 = vadd.f32 %v3902_v28, %v3696_v35 }
 0x611   :  { %v4053_v40 = vpop.f32.mrf.mxu0  ;;  %v4204_v0 = vpop.f32.mrf.mxu1  ;;  %4423 = vmatmul.f32.vlgmr.msra.gmra.mxu3 %v5231_v45 }
 0x612   :  { %4435 = vmatpush.xpose.msrb.mxu2 %v7134_v43  ;;  %4480 = vmatpush.xpose.msrb.mxu3 %v7124_v6  ;;  %v4054_v55 = vadd.f32 %v4053_v40, %v6970_v21  ;;  %v3700_v60 = vpop.f32.mrf.mxu2 }
 0x614   :  { %v4201_v5 = vadd.f32 %v4200_v57, %v4054_v55 }
 0x616   :  { %4438 = vmatpush.xpose.msrb.mxu2 %v7149_v22  ;;  %4482 = vmatpush.xpose.msrb.mxu3 %v7115_v33  ;;  %v7348_v23 = vmul.f32 %v8183_v32, %v4201_v5  ;;  %v3908_v54 = vpop.f32.mrf.mxu3 }
 0x619   :  { %v4057_v21 = vpop.f32.mrf.mxu0  ;;  %v4208_v62 = vpop.f32.mrf.mxu1 }
 0x61a   :  { %4441 = vmatpush.xpose.msrb.mxu2 %v7162_v12  ;;  %4484 = vmatpush.xpose.msrb.mxu3 %v7119_v34  ;;  %v4058_v40 = vadd.f32 %v4057_v21, %v3897_v42  ;;  %v8185_v42 = vld [vmem:[#allocation61_spill] sm:$0xff]  ;;  %v3705_v21 = vpop.f32.mrf.mxu2 }
 0x61c   :  { %v4205_v57 = vadd.f32 %v4204_v0, %v4058_v40  ;;  %v3701_v0 = vadd.f32 %v3700_v60, %v3523_v49 }
 0x61e   :  { %4444 = vmatpush.xpose.msrb.mxu2 %v7177_v61  ;;  %4486 = vmatpush.xpose.msrb.mxu3 %v7131_v26  ;;  %v7357_v55 = vmul.f32 %v8184_v37, %v4205_v57  ;;  %v3909_v28 = vadd.f32 %v3908_v54, %v3701_v0  ;;  %v3914_v57 = vpop.f32.mrf.mxu3  ;;  %v8186_v37 = vld [vmem:[#allocation60_spill] sm:$0xff] }
 0x621   :  { %v4061_v51 = vpop.f32.mrf.mxu0  ;;  %v4212_v32 = vpop.f32.mrf.mxu1 }
 0x622   :  { %4447 = vmatpush.xpose.msrb.mxu2 %v7187_v38  ;;  %4488 = vmatpush.xpose.msrb.mxu3 %v7146_v7  ;;  %v4062_v5 = vadd.f32 %v4061_v51, %v3903_v27  ;;  %v3710_v54 = vpop.f32.mrf.mxu2 }
 0x623   :  { %v3711_v0 = vadd.f32 %v3710_v54, %v3531_v31 }
 0x624   :  { %v4209_v39 = vadd.f32 %v4208_v62, %v4062_v5  ;;  %v3706_v62 = vadd.f32 %v3705_v21, %v3527_v58  ;;  %v8188_v58 = vld [vmem:[#allocation34_spill] sm:$0xff] }
 0x625   :  { %v3535_v15 = vadd.f32 %v8188_v58, %v7002_v3 }
 0x626   :  { %4450 = vmatpush.xpose.msrb.mxu2 %v7209_v30  ;;  %4490 = vmatpush.xpose.msrb.mxu3 %v7158_v46  ;;  %v7366_v9 = vmul.f32 %v8185_v42, %v4209_v39  ;;  %v3915_v59 = vadd.f32 %v3914_v57, %v3706_v62  ;;  %v8187_v42 = vld [vmem:[#allocation63_spill] sm:$0xff] }
 0x629   :  { %v4065_v40 = vpop.f32.mrf.mxu0  ;;  %v4216_v49 = vpop.f32.mrf.mxu1 }
 0x62a   :  { %4453 = vmatpush.xpose.msrb.mxu2 %v7218_v63  ;;  %4492 = vmatpush.xpose.msrb.mxu3 %v7173_v47  ;;  %v4066_v35 = vadd.f32 %v4065_v40, %v3909_v28  ;;  %v3715_v57 = vpop.f32.mrf.mxu2 }
 0x62b   :  { %v3716_v62 = vadd.f32 %v3715_v57, %v3535_v15  ;;  %v8196_v57 = vand.u32 4294901760, %v7177_v61 }
 0x62c   :  { %v4213_v60 = vadd.f32 %v4212_v32, %v4066_v35  ;;  %v3920_v32 = vpop.f32.mrf.mxu3 }
 0x62d   :  { %v3921_v28 = vadd.f32 %v3920_v32, %v3711_v0  ;;  %v8190_v0 = vand.u32 4294901760, %v7127_v50  ;;  %v8193_v50 = vand.u32 4294901760, %v7134_v43 }
 0x62e   :  { %4456 = vmatpush.xpose.msrb.mxu2 %v7237_v25  ;;  %4494 = vmatpush.xpose.msrb.mxu3 %v7190_v56  ;;  %v7376_v27 = vmul.f32 %v8186_v37, %v4213_v60  ;;  %v8189_v37 = vld [vmem:[#allocation62_spill] sm:$0xff] }
 0x631   :  { %v4069_v51 = vpop.f32.mrf.mxu0  ;;  %v4220_v20 = vpop.f32.mrf.mxu1 }
 0x632   :  { %4459 = vmatpush.xpose.msrb.mxu2 %v7246_v41  ;;  %4496 = vmatpush.xpose.msrb.mxu3 %v7201_v18  ;;  %v4070_v5 = vadd.f32 %v4069_v51, %v3915_v59 }
 0x634   :  { %v4217_v39 = vadd.f32 %v4216_v49, %v4070_v5  ;;  %v3926_v59 = vpop.f32.mrf.mxu3 }
 0x635   :  { %v3927_v31 = vadd.f32 %v3926_v59, %v3716_v62  ;;  %v8204_v62 = vand.u32 4294901760, %v7274_v16  ;;  %v8210_v59 = vand.u32 4294901760, %v7318_v53 }
 0x636   :  { %4462 = vmatpush.xpose.msrb.mxu2 %v7265_v44  ;;  %4498 = vmatpush.xpose.msrb.mxu3 %v7214_v17  ;;  %v4288_v21 = vmul.f32 %v8187_v42, %v4217_v39  ;;  %v8191_v39 = vld [vmem:[#allocation65_spill] sm:$0xff] }
 0x639   :  { %v4073_v40 = vpop.f32.mrf.mxu0  ;;  %v4224_v51 = vpop.f32.mrf.mxu1 }
 0x63a   :  { %4465 = vmatpush.xpose.msrb.mxu2 %v7274_v16  ;;  %4500 = vmatpush.xpose.msrb.mxu3 %v7229_v11  ;;  %v4074_v35 = vadd.f32 %v4073_v40, %v3921_v28  ;;  %v8192_v28 = vand.u32 4294901760, %v7122_v24  ;;  %v7418_v24 = vand.u32 4294901760, %v4288_v21  ;;  %v8194_v40 = vand.u32 4294901760, %v7149_v22 }
 0x63c   :  { %v4221_v60 = vadd.f32 %v4220_v20, %v4074_v35  ;;  %v7432_v43 = vsub.f32 %v4288_v21, %v7418_v24  ;;  %v8195_v35 = vand.u32 4294901760, %v7162_v12  ;;  %v8197_v21 = vand.u32 4294901760, %v7187_v38 }
 0x63e   :  { %4468 = vmatpush.xpose.msrb.mxu2 %v7293_v14  ;;  %4502 = vmatpush.xpose.msrb.mxu3 %v7242_v8  ;;  %v4289_v49 = vmul.f32 %v8189_v37, %v4221_v60  ;;  %v8206_v60 = vand.u32 4294901760, %v7293_v14  ;;  %v8208_v37 = vand.u32 4294901760, %v7302_v19 }
 0x640   :  { %v7409_v15 = vand.u32 4294901760, %v4289_v49 }
 0x641   :  { %v4077_v54 = vpop.f32.mrf.mxu0 }
 0x642   :  { %4471 = vmatpush.xpose.msrb.mxu2 %v7302_v19  ;;  %4504 = vmatpush.xpose.msrb.mxu3 %v7257_v36  ;;  %v4078_v3 = vadd.f32 %v4077_v54, %v3927_v31  ;;  %v7421_v20 = vsub.f32 %v4289_v49, %v7409_v15 }
 0x644   :  { %v4225_v5 = vadd.f32 %v4224_v51, %v4078_v3 }
 0x646   :  { %4474 = vmatpush.xpose.msrb.mxu2 %v7318_v53  ;;  %4506 = vmatpush.xpose.msrb.mxu3 %v7270_v1  ;;  %v4290_v32 = vmul.f32 %v8191_v39, %v4225_v5  ;;  %v4663_v53 = vand.u32 4294901760, %v7421_v20  ;;  %v4669_v5 = vand.u32 4294901760, %v7432_v43 }
 0x648   :  { %v7401_v42 = vand.u32 4294901760, %v4290_v32 }
 0x649   :  { %4475 = vmatmul.f32.vlgmr.msrb.gmra.mxu2 %v8181_v48 }
 0x64a   :  { %4518 = vmatpush.xpose.msra.mxu2 %v8190_v0  ;;  %4508 = vmatpush.xpose.msrb.mxu3 %v7285_v52  ;;  %v7406_v58 = vsub.f32 %v4290_v32, %v7401_v42 }
 0x64b   :  { %4808 = vmatpush.xpose.msrb.mxu1 %v7401_v42 }
 0x64c   :  { %4757 = vmatpush.xpose.msrb.mxu0 %v7406_v58  ;;  %v4657_v19 = vand.u32 4294901760, %v7406_v58 }
 0x64e   :  { %4522 = vmatpush.xpose.msra.mxu2 %v8192_v28  ;;  %4510 = vmatpush.xpose.msrb.mxu3 %v7298_v2 }
 0x64f   :  { %4810 = vmatpush.xpose.msrb.mxu1 %v7409_v15 }
 0x650   :  { %4760 = vmatpush.xpose.msrb.mxu0 %v7421_v20 }
 0x651   :  { %4511 = vmatmul.f32.vlgmr.msrb.gmra.mxu3 %v8181_v48 }
 0x652   :  { %4526 = vmatpush.xpose.msra.mxu2 %v8193_v50  ;;  %4584 = vmatpush.xpose.msra.mxu3 %v7124_v6  ;;  %v7429_v6 = vand.u32 4294901760, %v7376_v27 }
 0x653   :  { %4812 = vmatpush.xpose.msrb.mxu1 %v7418_v24 }
 0x654   :  { %4763 = vmatpush.xpose.msrb.mxu0 %v7432_v43  ;;  %v7444_v22 = vsub.f32 %v7376_v27, %v7429_v6  ;;  %v8198_v27 = vand.u32 4294901760, %v7209_v30 }
 0x656   :  { %4530 = vmatpush.xpose.msra.mxu2 %v8194_v40  ;;  %4586 = vmatpush.xpose.msra.mxu3 %v7115_v33  ;;  %v7440_v33 = vand.u32 4294901760, %v7366_v9  ;;  %v4675_v39 = vand.u32 4294901760, %v7444_v22 }
 0x657   :  { %4814 = vmatpush.xpose.msrb.mxu1 %v7429_v6 }
 0x658   :  { %4766 = vmatpush.xpose.msrb.mxu0 %v7444_v22  ;;  %v7456_v12 = vsub.f32 %v7366_v9, %v7440_v33  ;;  %v8199_v9 = vand.u32 4294901760, %v7218_v63  ;;  %v4676_v28 = vsub.f32 %v7444_v22, %v4675_v39 }
 0x65a   :  { %4534 = vmatpush.xpose.msra.mxu2 %v8195_v35  ;;  %4588 = vmatpush.xpose.msra.mxu3 %v7119_v34  ;;  %v7452_v34 = vand.u32 4294901760, %v7357_v55  ;;  %v4681_v50 = vand.u32 4294901760, %v7456_v12  ;;  %v4677_v40 = vand.u32 4294901760, %v4676_v28 }
 0x65b   :  { %4816 = vmatpush.xpose.msrb.mxu1 %v7440_v33 }
 0x65c   :  { %4769 = vmatpush.xpose.msrb.mxu0 %v7456_v12  ;;  %v7468_v61 = vsub.f32 %v7357_v55, %v7452_v34  ;;  %v8200_v55 = vand.u32 4294901760, %v7237_v25  ;;  %v8202_v25 = vand.u32 4294901760, %v7265_v44  ;;  %v4682_v35 = vsub.f32 %v7456_v12, %v4681_v50 }
 0x65e   :  { %4538 = vmatpush.xpose.msra.mxu2 %v8196_v57  ;;  %4590 = vmatpush.xpose.msra.mxu3 %v7131_v26  ;;  %v7464_v26 = vand.u32 4294901760, %v7348_v23  ;;  %v4687_v57 = vand.u32 4294901760, %v7468_v61 }
 0x65f   :  { %4818 = vmatpush.xpose.msrb.mxu1 %v7452_v34 }
 0x660   :  { %4772 = vmatpush.xpose.msrb.mxu0 %v7468_v61  ;;  %v7480_v38 = vsub.f32 %v7348_v23, %v7464_v26  ;;  %v8201_v23 = vand.u32 4294901760, %v7246_v41 }
 0x662   :  { %4542 = vmatpush.xpose.msra.mxu2 %v8197_v21  ;;  %4592 = vmatpush.xpose.msra.mxu3 %v7146_v7  ;;  %v7476_v7 = vand.u32 4294901760, %v7338_v13  ;;  %v4683_v21 = vand.u32 4294901760, %v4682_v35 }
 0x663   :  { %4820 = vmatpush.xpose.msrb.mxu1 %v7464_v26 }
 0x664   :  { %4775 = vmatpush.xpose.msrb.mxu0 %v7480_v38  ;;  %v7492_v30 = vsub.f32 %v7338_v13, %v7476_v7 }
 0x666   :  { %4546 = vmatpush.xpose.msra.mxu2 %v8198_v27  ;;  %4594 = vmatpush.xpose.msra.mxu3 %v7158_v46  ;;  %v7488_v46 = vand.u32 4294901760, %v7327_v29  ;;  %v4688_v27 = vsub.f32 %v7468_v61, %v4687_v57 }
 0x667   :  { %4822 = vmatpush.xpose.msrb.mxu1 %v7476_v7 }
 0x668   :  { %4778 = vmatpush.xpose.msrb.mxu0 %v7492_v30  ;;  %v7504_v63 = vsub.f32 %v7327_v29, %v7488_v46  ;;  %v8203_v29 = vld [vmem:[#allocation17_spill] sm:$0xff] }
 0x66a   :  { %4550 = vmatpush.xpose.msra.mxu2 %v8199_v9  ;;  %4596 = vmatpush.xpose.msra.mxu3 %v7173_v47  ;;  %v7500_v47 = vand.u32 4294901760, %v7309_v10  ;;  %v4693_v9 = vand.u32 4294901760, %v7480_v38 }
 0x66b   :  { %4824 = vmatpush.xpose.msrb.mxu1 %v7488_v46 }
 0x66c   :  { %4781 = vmatpush.xpose.msrb.mxu0 %v7504_v63  ;;  %v7516_v13 = vsub.f32 %v7309_v10, %v7500_v47 }
 0x66e   :  { %4554 = vmatpush.xpose.msra.mxu2 %v8200_v55  ;;  %4598 = vmatpush.xpose.msra.mxu3 %v7190_v56  ;;  %v7512_v56 = vand.u32 4294901760, %v7281_v4  ;;  %v4689_v55 = vand.u32 4294901760, %v4688_v27 }
 0x66f   :  { %4826 = vmatpush.xpose.msrb.mxu1 %v7500_v47 }
 0x670   :  { %4784 = vmatpush.xpose.msrb.mxu0 %v7516_v13  ;;  %v7528_v41 = vsub.f32 %v7281_v4, %v7512_v56 }
 0x672   :  { %4558 = vmatpush.xpose.msra.mxu2 %v8201_v23  ;;  %4600 = vmatpush.xpose.msra.mxu3 %v7201_v18  ;;  %v7524_v18 = vand.u32 4294901760, %v8203_v29  ;;  %v4694_v23 = vsub.f32 %v7480_v38, %v4693_v9 }
 0x673   :  { %4828 = vmatpush.xpose.msrb.mxu1 %v7512_v56 }
 0x674   :  { %4787 = vmatpush.xpose.msrb.mxu0 %v7528_v41  ;;  %v7540_v10 = vsub.f32 %v8203_v29, %v7524_v18  ;;  %v4695_v29 = vand.u32 4294901760, %v4694_v23 }
 0x676   :  { %4562 = vmatpush.xpose.msra.mxu2 %v8202_v25  ;;  %4602 = vmatpush.xpose.msra.mxu3 %v7214_v17  ;;  %v8205_v17 = vld [vmem:[#allocation16_spill] sm:$0xff]  ;;  %v4699_v25 = vand.u32 4294901760, %v7492_v30 }
 0x677   :  { %4830 = vmatpush.xpose.msrb.mxu1 %v7524_v18  ;;  %v7536_v44 = vand.u32 4294901760, %v8205_v17 }
 0x678   :  { %4790 = vmatpush.xpose.msrb.mxu0 %v7540_v10 }
 0x679   :  { %v7552_v4 = vsub.f32 %v8205_v17, %v7536_v44  ;;  %v4705_v17 = vand.u32 4294901760, %v7504_v63 }
 0x67a   :  { %4566 = vmatpush.xpose.msra.mxu2 %v8204_v62  ;;  %4604 = vmatpush.xpose.msra.mxu3 %v7229_v11  ;;  %v8207_v11 = vld [vmem:[#allocation36_spill] sm:$0xff]  ;;  %v4700_v62 = vsub.f32 %v7492_v30, %v4699_v25 }
 0x67b   :  { %4832 = vmatpush.xpose.msrb.mxu1 %v7536_v44  ;;  %v7548_v16 = vand.u32 4294901760, %v8207_v11 }
 0x67c   :  { %4793 = vmatpush.xpose.msrb.mxu0 %v7552_v4 }
 0x67d   :  { %v7564_v49 = vsub.f32 %v8207_v11, %v7548_v16  ;;  %v4706_v11 = vsub.f32 %v7504_v63, %v4705_v17 }
 0x67e   :  { %4570 = vmatpush.xpose.msra.mxu2 %v8206_v60  ;;  %4606 = vmatpush.xpose.msra.mxu3 %v7242_v8  ;;  %v8209_v8 = vld [vmem:[#allocation32_spill] sm:$0xff]  ;;  %v4701_v60 = vand.u32 4294901760, %v4700_v62 }
 0x67f   :  { %4834 = vmatpush.xpose.msrb.mxu1 %v7548_v16  ;;  %v7560_v14 = vand.u32 4294901760, %v8209_v8 }
 0x680   :  { %4796 = vmatpush.xpose.msrb.mxu0 %v7564_v49 }
 0x681   :  { %v7578_v54 = vsub.f32 %v8209_v8, %v7560_v14  ;;  %v4707_v8 = vand.u32 4294901760, %v4706_v11 }
 0x682   :  { %4574 = vmatpush.xpose.msra.mxu2 %v8208_v37  ;;  %4608 = vmatpush.xpose.msra.mxu3 %v7257_v36  ;;  %v8211_v36 = vld [vmem:[#allocation31_spill] sm:$0xff]  ;;  %v4711_v37 = vand.u32 4294901760, %v7516_v13 }
 0x683   :  { %4836 = vmatpush.xpose.msrb.mxu1 %v7560_v14  ;;  %v7574_v31 = vand.u32 4294901760, %v8211_v36 }
 0x684   :  { %4799 = vmatpush.xpose.msrb.mxu0 %v7578_v54 }
 0x685   :  { %v7591_v3 = vsub.f32 %v8211_v36, %v7574_v31  ;;  %v4717_v36 = vand.u32 4294901760, %v7528_v41 }
 0x686   :  { %4578 = vmatpush.xpose.msra.mxu2 %v8210_v59  ;;  %4610 = vmatpush.xpose.msra.mxu3 %v7270_v1  ;;  %v4658_v1 = vsub.f32 %v7406_v58, %v4657_v19  ;;  %v4712_v59 = vsub.f32 %v7516_v13, %v4711_v37 }
 0x687   :  { %4838 = vmatpush.xpose.msrb.mxu1 %v7574_v31 }
 0x688   :  { %v4659_v51 = vand.u32 4294901760, %v4658_v1  ;;  %4802 = vmatpush.xpose.msrb.mxu0 %v7591_v3  ;;  %v4713_v30 = vand.u32 4294901760, %v4712_v59  ;;  %v4718_v1 = vsub.f32 %v7528_v41, %v4717_v36 }
 0x689   :  { %4579 = vmatmul.f32.vlgmr.msra.gmra.mxu2 %v5231_v45 }
 0x68a   :  { %4620 = vmatpush.xpose.msrb.mxu2 %v7401_v42  ;;  %4612 = vmatpush.xpose.msra.mxu3 %v7285_v52  ;;  %v4664_v52 = vsub.f32 %v7421_v20, %v4663_v53  ;;  %v4719_v63 = vand.u32 4294901760, %v4718_v1 }
 0x68b   :  { %4839 = vmatmul.f32.vlgmr.msrb.gmra.mxu1 %v8181_v48  ;;  %4803 = vmatmul.f32.vlgmr.msrb.gmra.mxu0 %v8181_v48 }
 0x68c   :  { %v4665_v0 = vand.u32 4294901760, %v4664_v52 }
 0x68e   :  { %4622 = vmatpush.xpose.msrb.mxu2 %v7409_v15  ;;  %4614 = vmatpush.xpose.msra.mxu3 %v7298_v2  ;;  %v4670_v2 = vsub.f32 %v7432_v43, %v4669_v5 }
 0x690   :  { %v4671_v32 = vand.u32 4294901760, %v4670_v2 }
 0x691   :  { %4615 = vmatmul.f32.vlgmr.msra.gmra.mxu3 %v5231_v45 }
 0x692   :  { %4624 = vmatpush.xpose.msrb.mxu2 %v7418_v24  ;;  %4660 = vmatpush.xpose.msrb.mxu3 %v4659_v51  ;;  %v4723_v51 = vand.u32 4294901760, %v7540_v10 }
 0x694   :  { %v4724_v52 = vsub.f32 %v7540_v10, %v4723_v51 }
 0x696   :  { %4626 = vmatpush.xpose.msrb.mxu2 %v7429_v6  ;;  %4666 = vmatpush.xpose.msrb.mxu3 %v4665_v0  ;;  %v4729_v0 = vand.u32 4294901760, %v7552_v4  ;;  %v4725_v13 = vand.u32 4294901760, %v4724_v52 }
 0x698   :  { %v4730_v2 = vsub.f32 %v7552_v4, %v4729_v0 }
 0x69a   :  { %4628 = vmatpush.xpose.msrb.mxu2 %v7440_v33  ;;  %4672 = vmatpush.xpose.msrb.mxu3 %v4671_v32  ;;  %v4735_v32 = vand.u32 4294901760, %v7564_v49  ;;  %v4731_v41 = vand.u32 4294901760, %v4730_v2 }
 0x69c   :  { %v4736_v28 = vsub.f32 %v7564_v49, %v4735_v32 }
 0x69e   :  { %4630 = vmatpush.xpose.msrb.mxu2 %v7452_v34  ;;  %4678 = vmatpush.xpose.msrb.mxu3 %v4677_v40  ;;  %v4741_v40 = vand.u32 4294901760, %v7578_v54  ;;  %v4737_v10 = vand.u32 4294901760, %v4736_v28 }
 0x6a0   :  { %v4742_v35 = vsub.f32 %v7578_v54, %v4741_v40 }
 0x6a2   :  { %4632 = vmatpush.xpose.msrb.mxu2 %v7464_v26  ;;  %4684 = vmatpush.xpose.msrb.mxu3 %v4683_v21  ;;  %v4747_v21 = vand.u32 4294901760, %v7591_v3  ;;  %v4743_v4 = vand.u32 4294901760, %v4742_v35 }
 0x6a4   :  { %v4748_v27 = vsub.f32 %v7591_v3, %v4747_v21 }
 0x6a6   :  { %4634 = vmatpush.xpose.msrb.mxu2 %v7476_v7  ;;  %4690 = vmatpush.xpose.msrb.mxu3 %v4689_v55  ;;  %v4749_v49 = vand.u32 4294901760, %v4748_v27 }
 0x6aa   :  { %4636 = vmatpush.xpose.msrb.mxu2 %v7488_v46  ;;  %4696 = vmatpush.xpose.msrb.mxu3 %v4695_v29 }
 0x6ae   :  { %4638 = vmatpush.xpose.msrb.mxu2 %v7500_v47  ;;  %4702 = vmatpush.xpose.msrb.mxu3 %v4701_v60 }
 0x6b2   :  { %4640 = vmatpush.xpose.msrb.mxu2 %v7512_v56  ;;  %4708 = vmatpush.xpose.msrb.mxu3 %v4707_v8 }
 0x6b6   :  { %4642 = vmatpush.xpose.msrb.mxu2 %v7524_v18  ;;  %4714 = vmatpush.xpose.msrb.mxu3 %v4713_v30 }
 0x6ba   :  { %4644 = vmatpush.xpose.msrb.mxu2 %v7536_v44  ;;  %4720 = vmatpush.xpose.msrb.mxu3 %v4719_v63  ;;  %v8214_v63 = vlaneseq }
 0x6bc   :  { %vm4993_vm15 = vcmp.lt.s32.totalorder %v8214_v63, 256 }
 0x6be   :  { %4646 = vmatpush.xpose.msrb.mxu2 %v7548_v16  ;;  %4726 = vmatpush.xpose.msrb.mxu3 %v4725_v13 }
 0x6c2   :  { %4648 = vmatpush.xpose.msrb.mxu2 %v7560_v14  ;;  %4732 = vmatpush.xpose.msrb.mxu3 %v4731_v41 }
 0x6c6   :  { %4650 = vmatpush.xpose.msrb.mxu2 %v7574_v31  ;;  %4738 = vmatpush.xpose.msrb.mxu3 %v4737_v10 }
 0x6c9   :  { %4651 = vmatmul.f32.vlgmr.msrb.gmra.mxu2 %v8181_v48  ;;  %v4424_v48 = vpop.f32.mrf.mxu3 }
 0x6ca   :  { %4846 = vmatpush.xpose.msra.mxu2 %v4657_v19  ;;  %4744 = vmatpush.xpose.msrb.mxu3 %v4743_v4 }
 0x6ce   :  { %4850 = vmatpush.xpose.msra.mxu2 %v4663_v53  ;;  %4750 = vmatpush.xpose.msrb.mxu3 %v4749_v49 }
 0x6d1   :  { %4751 = vmatmul.f32.vlgmr.msrb.gmra.mxu3 %v5231_v45 }
 0x6d2   :  { %4854 = vmatpush.xpose.msra.mxu2 %v4669_v5  ;;  %4912 = vmatpush.xpose.msra.mxu3 %v7401_v42  ;;  %v4324_v42 = vpop.f32.mrf.mxu2 }
 0x6d4   :  { %v4512_v58 = vpop.f32.mrf.mxu3 }
 0x6d6   :  { %4858 = vmatpush.xpose.msra.mxu2 %v4675_v39  ;;  %4914 = vmatpush.xpose.msra.mxu3 %v7409_v15 }
 0x6da   :  { %4862 = vmatpush.xpose.msra.mxu2 %v4681_v50  ;;  %4916 = vmatpush.xpose.msra.mxu3 %v7418_v24  ;;  %v4476_v15 = vpop.f32.mrf.mxu2  ;;  %v4425_v24 = vadd.f32 %v4424_v48, %v4324_v42 }
 0x6dc   :  { %v4477_v20 = vadd.f32 %v4476_v15, %v4425_v24 }
 0x6de   :  { %4866 = vmatpush.xpose.msra.mxu2 %v4687_v57  ;;  %4918 = vmatpush.xpose.msra.mxu3 %v7429_v6 }
 0x6e2   :  { %4870 = vmatpush.xpose.msra.mxu2 %v4693_v9  ;;  %4920 = vmatpush.xpose.msra.mxu3 %v7440_v33  ;;  %v4513_v33 = vadd.f32 %v4512_v58, %v4477_v20 }
 0x6e6   :  { %4874 = vmatpush.xpose.msra.mxu2 %v4699_v25  ;;  %4922 = vmatpush.xpose.msra.mxu3 %v7452_v34 }
 0x6ea   :  { %4878 = vmatpush.xpose.msra.mxu2 %v4705_v17  ;;  %4924 = vmatpush.xpose.msra.mxu3 %v7464_v26 }
 0x6ee   :  { %4882 = vmatpush.xpose.msra.mxu2 %v4711_v37  ;;  %4926 = vmatpush.xpose.msra.mxu3 %v7476_v7 }
 0x6f2   :  { %4886 = vmatpush.xpose.msra.mxu2 %v4717_v36  ;;  %4928 = vmatpush.xpose.msra.mxu3 %v7488_v46 }
 0x6f6   :  { %4890 = vmatpush.xpose.msra.mxu2 %v4723_v51  ;;  %4930 = vmatpush.xpose.msra.mxu3 %v7500_v47 }
 0x6fa   :  { %4894 = vmatpush.xpose.msra.mxu2 %v4729_v0  ;;  %4932 = vmatpush.xpose.msra.mxu3 %v7512_v56 }
 0x6fe   :  { %4898 = vmatpush.xpose.msra.mxu2 %v4735_v32  ;;  %4934 = vmatpush.xpose.msra.mxu3 %v7524_v18 }
 0x702   :  { %4902 = vmatpush.xpose.msra.mxu2 %v4741_v40  ;;  %4936 = vmatpush.xpose.msra.mxu3 %v7536_v44 }
 0x706   :  { %4906 = vmatpush.xpose.msra.mxu2 %v4747_v21  ;;  %4938 = vmatpush.xpose.msra.mxu3 %v7548_v16 }
 0x708   :  { %v4804_v38 = vpop.f32.mrf.mxu0  ;;  %v4840_v47 = vpop.f32.mrf.mxu1 }
 0x709   :  { %4907 = vmatmul.f32.vlgmr.msra.gmra.mxu2 %v5231_v45 }
 0x70a   :  { %4940 = vmatpush.xpose.msra.mxu3 %v7560_v14 }
 0x70c   :  { %v4580_v43 = vpop.f32.mrf.mxu2 }
 0x70d   :  { %v4581_v22 = vadd.f32 %v4580_v43, %v4513_v33 }
 0x70e   :  { %4942 = vmatpush.xpose.msra.mxu3 %v7574_v31 }
 0x711   :  { %4943 = vmatmul.f32.vlgmr.msra.gmra.mxu3 %v5231_v45 }
 0x714   :  { %v4616_v6 = vpop.f32.mrf.mxu3 }
 0x715   :  { %v4617_v34 = vadd.f32 %v4616_v6, %v4581_v22 }
 0x717   :  { %v5051_v61 = vmul.f32 -1.442695, %v4617_v34 }
 0x719   :  { %5063 = vpow2.f32 %v5051_v61 }
 0x71f   :  { %v5064_v18 = vpop.eup %5063 }
 0x720   :  { %v4953_v16 = vadd.f32 1.0, %v5064_v18 }
 0x722   :  { %5065 = vrcp.f32 %v4953_v16  ;;  %vm4960_vm8 = vweird.f32 %v4953_v16  ;;  %v4966_v17 = vand.u32 2147483648, %v4953_v16  ;;  %v4964_v11 = vand.u32 2147483647, %v4953_v16 }
 0x724   :  { %v4967_v30 = vor.u32 1.1754944e-38, %v4966_v17  ;;  %vm4965_vm14 = vcmp.eq.f32.partialorder %v4964_v11, 8.507059e+37 }
 0x728   :  { %v5066_v54 = vpop.eup %5065 }
 0x729   :  { %v4956_v5 = vmul.f32 %v5066_v54, %v4953_v16  ;;  %vm4961_vm6 = vweird.f32 %v5066_v54 }
 0x72a   :  { %vm7687_vm10 = vmor %vm4960_vm8, %vm4961_vm6 }
 0x72b   :  { %v4957_v39 = vsub.f32 1.0, %v4956_v5 }
 0x72d   :  { %v4958_v9 = vmul.f32 %v5066_v54, %v4957_v39 }
 0x72f   :  { %v4959_v29 = vadd.f32 %v5066_v54, %v4958_v9 }
 0x731   :  { %v4963_v59 = vsel %vm7687_vm10, %v5066_v54, %v4959_v29 }
 0x732   :  { %v4968_v52 = vsel %vm4965_vm14, %v4967_v30, %v4963_v59 }
 0x74c   :  { %v4652_v26 = vpop.f32.mrf.mxu2 }
 0x754   :  { %v4752_v12 = vpop.f32.mrf.mxu3 }
 0x755   :  { %v4753_v7 = vadd.f32 %v4752_v12, %v4652_v26 }
 0x757   :  { %v4805_v46 = vadd.f32 %v4804_v38, %v4753_v7 }
 0x759   :  { %v4841_v45 = vadd.f32 %v4840_v47, %v4805_v46 }
 0x78c   :  { %v4908_v56 = vpop.f32.mrf.mxu2 }
 0x78d   :  { %v4909_v44 = vadd.f32 %v4908_v56, %v4841_v45 }
 0x794   :  { %v4944_v14 = vpop.f32.mrf.mxu3 }
 0x795   :  { %v4945_v19 = vadd.f32 %v4944_v14, %v4909_v44 }
 0x797   :  { %v5052_v31 = vmul.f32 -1.442695, %v4945_v19 }
 0x799   :  { %5067 = vpow2.f32 %v5052_v31 }
 0x79f   :  { %v5068_v53 = vpop.eup %5067 }
 0x7a0   :  { %v4954_v3 = vadd.f32 1.0, %v5068_v53 }
 0x7a2   :  { %5069 = vrcp.f32 %v4954_v3  ;;  %v4981_v23 = vand.u32 2147483648, %v4954_v3  ;;  %v4979_v62 = vand.u32 2147483647, %v4954_v3  ;;  %vm4975_vm9 = vweird.f32 %v4954_v3 }
 0x7a4   :  { %v4982_v8 = vor.u32 1.1754944e-38, %v4981_v23  ;;  %vm4980_vm12 = vcmp.eq.f32.partialorder %v4979_v62, 8.507059e+37 }
 0x7a8   :  { %v5070_v50 = vpop.eup %5069 }
 0x7a9   :  { %v4971_v57 = vmul.f32 %v5070_v50, %v4954_v3  ;;  %vm4976_vm7 = vweird.f32 %v5070_v50 }
 0x7aa   :  { %vm4977_vm11 = vmor %vm4975_vm9, %vm4976_vm7 }
 0x7ab   :  { %v4972_v55 = vsub.f32 1.0, %v4971_v57 }
 0x7ad   :  { %v4973_v25 = vmul.f32 %v5070_v50, %v4972_v55 }
 0x7af   :  { %v4974_v37 = vadd.f32 %v5070_v50, %v4973_v25 }
 0x7b1   :  { %v4978_v36 = vsel %vm4977_vm11, %v5070_v50, %v4974_v37 }
 0x7b2   :  { %v4983_v1 = vsel %vm4980_vm12, %v4982_v8, %v4978_v36 }
 0x7b3   :  { %v4987_v51 = vrot.slane %v4983_v1, 7 }
 0x7b5   :  { %v4989_v0 = vsel %vm4988_vm13, %v4968_v52, %v4987_v51 }
 0x7b6   :  { %4995 = vst.msk [vmem:[#allocation11] sm:$0x3] %vm4993_vm15, %v4989_v0 }
 0x7b7   :  { %5006 = dma.vmem_to_hbm [thread:$0]  %s5002_s4, 32, %s5004_s19, [#allocation4]  }
 0x7b8   :  { %5221 = dma.done.wait [#allocation4], 32  }
 0x7b9   :  { %5222 = vsyncadd [#allocation4], 4294967264 }
 0x7ba   :  { %5011 = vsyncpa [#allocation3], 1 }
 0x7bb   :  { %5012 = vsyncpa [#allocation6], 1 }
 0x7bc   :  { %5013 = vsyncpa [#allocation9], 1 }
 0x7bd   :  { %5014 = vsyncpa [#allocation4], 1 }

</bundles_post_ra>
